<compile_context>
chip_gen: v7x
topology: tpu7x:2x2x1
jax: 0.10.0
libtpu: 0.0.40
codegen_flags: <defaults>
</compile_context>

<pallas_src>
import functools

import jax
import jax.numpy as jnp
from jax.experimental import pallas as pl
from jax.experimental.pallas import tpu as pltpu

HIDDEN = 128
MID = 25


def rnn_single_kernel(
    x_ref,       # (T_BLK*Bp, D) bf16  time-major rows: row r = timestep r//Bp, batch r%Bp
    wih1_ref,    # (D, 4H)   bf16
    whh1_ref,    # (H, 4H)   bf16
    b1_ref,      # (1, 4H)   f32   (b_ih + b_hh, layer 1)
    wih2_ref,    # (H, 4H)   bf16
    whh2_ref,    # (H, 4H)   bf16
    b2_ref,      # (1, 4H)   f32   (b_ih + b_hh, layer 2)
    wout_ref,    # (H, 25)   f32
    bout_ref,    # (1, 25)   f32
    wout2_ref,   # (25, C)   f32
    bout2_ref,   # (1, C)    f32
    o_ref,       # (Bp, C)
    h1_ref, c1_ref, h2_ref, c2_ref,   # VMEM scratch (Bp, H) f32 each
):
    tb = pl.program_id(0)
    n_rows = x_ref.shape[0]
    Bp, H = h1_ref.shape
    t_blk = n_rows // Bp

    @pl.when(tb == 0)
    def _init():
        h1_ref[...] = jnp.zeros_like(h1_ref)
        c1_ref[...] = jnp.zeros_like(c1_ref)
        h2_ref[...] = jnp.zeros_like(h2_ref)
        c2_ref[...] = jnp.zeros_like(c2_ref)

    # Phase 0: layer-1 input projection for the whole time block in one matmul
    # (M = T_BLK*Bp rows) -- off the serial recurrence path.
    xg1 = (
        jnp.dot(x_ref[...], wih1_ref[...], preferred_element_type=jnp.float32)
        + b1_ref[...]
    )  # (T_BLK*Bp, 4H) f32

    # Hoist loop-invariant reads / broadcasts out of the unrolled recurrence.
    whh1 = whh1_ref[...]
    wih2 = wih2_ref[...]
    whh2 = whh2_ref[...]
    b2 = jnp.broadcast_to(b2_ref[...], (Bp, 4 * H))

    h1 = h1_ref[...]
    c1 = c1_ref[...]
    h2 = h2_ref[...]
    c2 = c2_ref[...]

    def gates_to_hc(g, c):
        # PyTorch LSTM gate order: i, f, g, o.  All elementwise math in f32.
        i = jax.nn.sigmoid(g[:, 0 * H:1 * H])
        f = jax.nn.sigmoid(g[:, 1 * H:2 * H])
        gg = jnp.tanh(g[:, 2 * H:3 * H])
        o = jax.nn.sigmoid(g[:, 3 * H:4 * H])
        c_new = f * c + i * gg
        h_new = o * jnp.tanh(c_new)
        return h_new, c_new

    # Fully-unrolled recurrence over the (small, static) time block.
    for t in range(t_blk):
        # Layer-2 h-projection depends only on t-1 state: off the critical path,
        # overlaps layer 1's matmul + nonlinearity.  Bias folded in here too.
        g2_hh = (
            jnp.dot(h2.astype(jnp.bfloat16), whh2, preferred_element_type=jnp.float32)
            + b2
        )

        # Layer 1: only h1 @ Whh1 remains on the serial chain (slice is 8-aligned).
        g1 = xg1[t * Bp:(t + 1) * Bp, :] + jnp.dot(
            h1.astype(jnp.bfloat16), whh1, preferred_element_type=jnp.float32
        )
        h1, c1 = gates_to_hc(g1, c1)

        # Layer 2 serial chain: single K=128 contraction (Whh2 already applied).
        g2 = g2_hh + jnp.dot(
            h1.astype(jnp.bfloat16), wih2, preferred_element_type=jnp.float32
        )
        h2, c2 = gates_to_hc(g2, c2)

    # Persist state across time blocks.
    h1_ref[...] = h1
    c1_ref[...] = c1
    h2_ref[...] = h2
    c2_ref[...] = c2

    # Fused Linear(128,25) -> Linear(25,C) head on the last timestep's h2.
    @pl.when(tb == pl.num_programs(0) - 1)
    def _head():
        y = jnp.dot(h2, wout_ref[...], preferred_element_type=jnp.float32) + bout_ref[...]
        y = jnp.dot(y, wout2_ref[...], preferred_element_type=jnp.float32) + bout2_ref[...]
        o_ref[...] = y.astype(o_ref.dtype)


def _pick_time_block(T, Bp, max_rows=512, max_unroll=32):
    """Largest divisor t of T such that the unrolled block stays code-size and
    VMEM friendly.  Bp is a multiple of 8, so every time-slice is sublane aligned."""
    best = 1
    for cand in range(1, T + 1):
        if T % cand != 0:
            continue
        if cand > max_unroll:
            continue
        if cand * Bp > max_rows:
            continue
        best = cand
    return best


@functools.partial(jax.jit, static_argnames=("t_blk",))
def rnn_single_forward(x_btd, params, t_blk=None):
    """x_btd: (B, T, D) batch_first like PyTorch.  Returns (B, num_classes)."""
    B, T, D = x_btd.shape
    assert T >= 1, "empty sequence: output would be undefined"
    H = HIDDEN
    C = params["bout2"].shape[-1]

    # Pad batch to a full sublane (multiple of 8): the padded rows are already-paid-for
    # masked sublanes, and it keeps the per-step xg1 slices 8-aligned.
    Bp = max(8, ((B + 7) // 8) * 8)
    if Bp != B:
        x_btd = jnp.pad(x_btd, ((0, Bp - B), (0, 0), (0, 0)))

    if t_blk is None:
        t_blk = _pick_time_block(T, Bp)
    assert T % t_blk == 0
    grid_t = T // t_blk

    # Time-major rows, pre-cast to bf16 in the wrapper (halves x DMA bytes).
    x_rows = jnp.transpose(x_btd, (1, 0, 2)).reshape(T * Bp, D).astype(jnp.bfloat16)

    # bf16 operands for the recurrent matmuls (f32 accumulate in-kernel).
    wih1 = params["wih1"].astype(jnp.bfloat16)
    whh1 = params["whh1"].astype(jnp.bfloat16)
    wih2 = params["wih2"].astype(jnp.bfloat16)
    whh2 = params["whh2"].astype(jnp.bfloat16)

    full = lambda arr: pl.BlockSpec(arr.shape, lambda tb: (0,) * arr.ndim)

    grid_spec = pltpu.PrefetchScalarGridSpec(
        num_scalar_prefetch=0,
        grid=(grid_t,),
        in_specs=[
            pl.BlockSpec((t_blk * Bp, D), lambda tb: (tb, 0)),
            full(wih1), full(whh1), full(params["b1"]),
            full(wih2), full(whh2), full(params["b2"]),
            full(params["wout"]), full(params["bout"]),
            full(params["wout2"]), full(params["bout2"]),
        ],
        out_specs=pl.BlockSpec((Bp, C), lambda tb: (0, 0)),
        scratch_shapes=[
            pltpu.VMEM((Bp, H), jnp.float32),   # h1
            pltpu.VMEM((Bp, H), jnp.float32),   # c1
            pltpu.VMEM((Bp, H), jnp.float32),   # h2
            pltpu.VMEM((Bp, H), jnp.float32),   # c2
        ],
    )

    out_p = pl.pallas_call(
        rnn_single_kernel,
        out_shape=jax.ShapeDtypeStruct((Bp, C), jnp.float32),
        grid_spec=grid_spec,
        compiler_params=pltpu.CompilerParams(
            dimension_semantics=("arbitrary",),   # sequential time recurrence
        ),
    )(
        x_rows,
        wih1, whh1, params["b1"],
        wih2, whh2, params["b2"],
        params["wout"], params["bout"],
        params["wout2"], params["bout2"],
    )

    return out_p[:B]


def init_params(key, input_size, num_classes):
    """Deterministic synthetic parameters; weights stored pre-transposed
    ((in, out) layout) so the kernel does x @ W directly.  b_ih + b_hh folded."""
    ks = jax.random.split(key, 12)
    s = 0.1
    H = HIDDEN
    return {
        "wih1": jax.random.normal(ks[0], (input_size, 4 * H), jnp.float32) * s,
        "whh1": jax.random.normal(ks[1], (H, 4 * H), jnp.float32) * s,
        "b1": jax.random.normal(ks[2], (1, 4 * H), jnp.float32) * s,
        "wih2": jax.random.normal(ks[3], (H, 4 * H), jnp.float32) * s,
        "whh2": jax.random.normal(ks[4], (H, 4 * H), jnp.float32) * s,
        "b2": jax.random.normal(ks[5], (1, 4 * H), jnp.float32) * s,
        "wout": jax.random.normal(ks[6], (H, MID), jnp.float32) * s,
        "bout": jax.random.normal(ks[7], (1, MID), jnp.float32) * s,
        "wout2": jax.random.normal(ks[8], (MID, num_classes), jnp.float32) * s,
        "bout2": jax.random.normal(ks[9], (1, num_classes), jnp.float32) * s,
    }


def reference_forward(x_btd, params):
    """Pure-JAX f32 reference (matches PyTorch LSTM semantics, gate order i,f,g,o)."""
    B, T, D = x_btd.shape
    H = HIDDEN

    def cell(x, h, c, wih, whh, b):
        g = x @ wih + h @ whh + b
        i = jax.nn.sigmoid(g[:, 0 * H:1 * H])
        f = jax.nn.sigmoid(g[:, 1 * H:2 * H])
        gg = jnp.tanh(g[:, 2 * H:3 * H])
        o = jax.nn.sigmoid(g[:, 3 * H:4 * H])
        c_new = f * c + i * gg
        h_new = o * jnp.tanh(c_new)
        return h_new, c_new

    def step(carry, x_t):
        h1, c1, h2, c2 = carry
        h1, c1 = cell(x_t, h1, c1, params["wih1"], params["whh1"], params["b1"])
        h2, c2 = cell(h1, h2, c2, params["wih2"], params["whh2"], params["b2"])
        return (h1, c1, h2, c2), h2

    z = jnp.zeros((B, H), jnp.float32)
    (_, _, h2, _), _ = jax.lax.scan(step, (z, z, z, z), jnp.transpose(x_btd, (1, 0, 2)))
    y = h2 @ params["wout"] + params["bout"]
    y = y @ params["wout2"] + params["bout2"]
    return y


if __name__ == "__main__":
    B, T, D = 2, 8, 16
    num_classes = 6

    key = jax.random.PRNGKey(0)
    k_x, k_p = jax.random.split(key)
    x = jax.random.normal(k_x, (B, T, D), jnp.float32)
    params = init_params(k_p, D, num_classes)

    out = rnn_single_forward(x, params)
    out = jax.block_until_ready(out)

    ref = reference_forward(x, params)
    assert out.shape == (B, num_classes)
    # Kernel uses bf16 MXU operands with f32 accumulation; reference is pure f32,
    # so the tolerance is loosened accordingly.
    assert jnp.allclose(out, ref, atol=5e-2, rtol=5e-2), "mismatch vs JAX reference"

    print("KERNEL_OK")
</pallas_src>

<mosaic_0001>
module attributes {stable_mosaic.version = 11 : i64} {
  func.func @rnn_single_kernel(%arg0: i32, %arg1: memref<64x16xbf16, #tpu.memory_space<vmem>>, %arg2: memref<16x512xbf16, #tpu.memory_space<vmem>>, %arg3: memref<128x512xbf16, #tpu.memory_space<vmem>>, %arg4: memref<1x512xf32, #tpu.memory_space<vmem>>, %arg5: memref<128x512xbf16, #tpu.memory_space<vmem>>, %arg6: memref<128x512xbf16, #tpu.memory_space<vmem>>, %arg7: memref<1x512xf32, #tpu.memory_space<vmem>>, %arg8: memref<128x25xf32, #tpu.memory_space<vmem>>, %arg9: memref<1x25xf32, #tpu.memory_space<vmem>>, %arg10: memref<25x6xf32, #tpu.memory_space<vmem>>, %arg11: memref<1x6xf32, #tpu.memory_space<vmem>>, %arg12: memref<8x6xf32, #tpu.memory_space<vmem>>, %arg13: memref<8x128xf32, #tpu.memory_space<vmem>>, %arg14: memref<8x128xf32, #tpu.memory_space<vmem>>, %arg15: memref<8x128xf32, #tpu.memory_space<vmem>>, %arg16: memref<8x128xf32, #tpu.memory_space<vmem>>) attributes {dimension_semantics = [#tpu.dimension_semantics<arbitrary>], iteration_bounds = array<i64: 1>, scalar_prefetch = 0 : i64, scratch_operands = 4 : i64, tpu.core_type = #tpu.core_type<tc>, window_params = [{transform_indices = @transform_0, window_bounds = array<i64: 64, 16>}, {pipeline_mode = #tpu.pipeline_mode<synchronous>, transform_indices = @transform_1, window_bounds = array<i64: 16, 512>}, {pipeline_mode = #tpu.pipeline_mode<synchronous>, transform_indices = @transform_2, window_bounds = array<i64: 128, 512>}, {pipeline_mode = #tpu.pipeline_mode<synchronous>, transform_indices = @transform_3, window_bounds = array<i64: 1, 512>}, {pipeline_mode = #tpu.pipeline_mode<synchronous>, transform_indices = @transform_4, window_bounds = array<i64: 128, 512>}, {pipeline_mode = #tpu.pipeline_mode<synchronous>, transform_indices = @transform_5, window_bounds = array<i64: 128, 512>}, {pipeline_mode = #tpu.pipeline_mode<synchronous>, transform_indices = @transform_6, window_bounds = array<i64: 1, 512>}, {pipeline_mode = #tpu.pipeline_mode<synchronous>, transform_indices = @transform_7, window_bounds = array<i64: 128, 25>}, {pipeline_mode = #tpu.pipeline_mode<synchronous>, transform_indices = @transform_8, window_bounds = array<i64: 1, 25>}, {pipeline_mode = #tpu.pipeline_mode<synchronous>, transform_indices = @transform_9, window_bounds = array<i64: 25, 6>}, {pipeline_mode = #tpu.pipeline_mode<synchronous>, transform_indices = @transform_10, window_bounds = array<i64: 1, 6>}, {pipeline_mode = #tpu.pipeline_mode<synchronous>, transform_indices = @transform_11, window_bounds = array<i64: 8, 6>}]} {
    %c0_i32 = arith.constant 0 : i32
    %0 = arith.cmpi eq, %arg0, %c0_i32 : i32
    %1 = arith.extui %0 : i1 to i32
    %c0_i32_0 = arith.constant 0 : i32
    %2 = arith.cmpi ne, %1, %c0_i32_0 : i32
    scf.if %2 {
      %cst_104 = arith.constant 0.000000e+00 : f32
      %506 = vector.broadcast %cst_104 : f32 to vector<8x128xf32>
      %c0_105 = arith.constant 0 : index
      %c0_106 = arith.constant 0 : index
      %507 = vector.load %arg13[%c0_105, %c0_106] : memref<8x128xf32, #tpu.memory_space<vmem>>, vector<8x128xf32>
      tpu.vector_store %arg13[%c0_105, %c0_106], %506 {strides = array<i32>} : memref<8x128xf32, #tpu.memory_space<vmem>>, vector<8x128xf32>,
      %cst_107 = arith.constant 0.000000e+00 : f32
      %508 = vector.broadcast %cst_107 : f32 to vector<8x128xf32>
      %c0_108 = arith.constant 0 : index
      %c0_109 = arith.constant 0 : index
      %509 = vector.load %arg14[%c0_108, %c0_109] : memref<8x128xf32, #tpu.memory_space<vmem>>, vector<8x128xf32>
      tpu.vector_store %arg14[%c0_108, %c0_109], %508 {strides = array<i32>} : memref<8x128xf32, #tpu.memory_space<vmem>>, vector<8x128xf32>,
      %cst_110 = arith.constant 0.000000e+00 : f32
      %510 = vector.broadcast %cst_110 : f32 to vector<8x128xf32>
      %c0_111 = arith.constant 0 : index
      %c0_112 = arith.constant 0 : index
      %511 = vector.load %arg15[%c0_111, %c0_112] : memref<8x128xf32, #tpu.memory_space<vmem>>, vector<8x128xf32>
      tpu.vector_store %arg15[%c0_111, %c0_112], %510 {strides = array<i32>} : memref<8x128xf32, #tpu.memory_space<vmem>>, vector<8x128xf32>,
      %cst_113 = arith.constant 0.000000e+00 : f32
      %512 = vector.broadcast %cst_113 : f32 to vector<8x128xf32>
      %c0_114 = arith.constant 0 : index
      %c0_115 = arith.constant 0 : index
      %513 = vector.load %arg16[%c0_114, %c0_115] : memref<8x128xf32, #tpu.memory_space<vmem>>, vector<8x128xf32>
      tpu.vector_store %arg16[%c0_114, %c0_115], %512 {strides = array<i32>} : memref<8x128xf32, #tpu.memory_space<vmem>>, vector<8x128xf32>,
    } else {
    }
    %c0 = arith.constant 0 : index
    %c0_1 = arith.constant 0 : index
    %3 = vector.load %arg1[%c0, %c0_1] : memref<64x16xbf16, #tpu.memory_space<vmem>>, vector<64x16xbf16>
    %c0_2 = arith.constant 0 : index
    %c0_3 = arith.constant 0 : index
    %4 = vector.load %arg2[%c0_2, %c0_3] : memref<16x512xbf16, #tpu.memory_space<vmem>>, vector<16x512xbf16>
    %cst = arith.constant dense<0.000000e+00> : vector<64x512xf32>
    %5 = tpu.matmul %3, %4, %cst {dimension_numbers = #tpu.dot_dimension_numbers<[1], [0], [0], [1], [0, 0, 1, 1], [], []>} : vector<64x16xbf16>, vector<16x512xbf16>, vector<64x512xf32> -> vector<64x512xf32>
    %c0_4 = arith.constant 0 : index
    %c0_5 = arith.constant 0 : index
    %6 = vector.load %arg4[%c0_4, %c0_5] : memref<1x512xf32, #tpu.memory_space<vmem>>, vector<1x512xf32>
    %7 = vector.broadcast %6 : vector<1x512xf32> to vector<64x512xf32>
    %8 = arith.addf %5, %7 : vector<64x512xf32>
    %c0_6 = arith.constant 0 : index
    %c0_7 = arith.constant 0 : index
    %9 = vector.load %arg3[%c0_6, %c0_7] : memref<128x512xbf16, #tpu.memory_space<vmem>>, vector<128x512xbf16>
    %c0_8 = arith.constant 0 : index
    %c0_9 = arith.constant 0 : index
    %10 = vector.load %arg5[%c0_8, %c0_9] : memref<128x512xbf16, #tpu.memory_space<vmem>>, vector<128x512xbf16>
    %c0_10 = arith.constant 0 : index
    %c0_11 = arith.constant 0 : index
    %11 = vector.load %arg6[%c0_10, %c0_11] : memref<128x512xbf16, #tpu.memory_space<vmem>>, vector<128x512xbf16>
    %c0_12 = arith.constant 0 : index
    %c0_13 = arith.constant 0 : index
    %12 = vector.load %arg7[%c0_12, %c0_13] : memref<1x512xf32, #tpu.memory_space<vmem>>, vector<1x512xf32>
    %13 = vector.shape_cast %12 : vector<1x512xf32> to vector<1x512xf32>
    %14 = vector.broadcast %13 : vector<1x512xf32> to vector<8x512xf32>
    %c0_14 = arith.constant 0 : index
    %c0_15 = arith.constant 0 : index
    %15 = vector.load %arg13[%c0_14, %c0_15] : memref<8x128xf32, #tpu.memory_space<vmem>>, vector<8x128xf32>
    %c0_16 = arith.constant 0 : index
    %c0_17 = arith.constant 0 : index
    %16 = vector.load %arg14[%c0_16, %c0_17] : memref<8x128xf32, #tpu.memory_space<vmem>>, vector<8x128xf32>
    %c0_18 = arith.constant 0 : index
    %c0_19 = arith.constant 0 : index
    %17 = vector.load %arg15[%c0_18, %c0_19] : memref<8x128xf32, #tpu.memory_space<vmem>>, vector<8x128xf32>
    %c0_20 = arith.constant 0 : index
    %c0_21 = arith.constant 0 : index
    %18 = vector.load %arg16[%c0_20, %c0_21] : memref<8x128xf32, #tpu.memory_space<vmem>>, vector<8x128xf32>
    %19 = arith.truncf %17 : vector<8x128xf32> to vector<8x128xbf16>
    %cst_22 = arith.constant dense<0.000000e+00> : vector<8x512xf32>
    %20 = tpu.matmul %19, %11, %cst_22 {dimension_numbers = #tpu.dot_dimension_numbers<[1], [0], [0], [1], [0, 0, 1, 1], [], []>} : vector<8x128xbf16>, vector<128x512xbf16>, vector<8x512xf32> -> vector<8x512xf32>
    %21 = arith.addf %20, %14 : vector<8x512xf32>
    %22 = vector.extract_strided_slice %8 {offsets = [0, 0], sizes = [8, 512], strides = [1, 1]} : vector<64x512xf32> to vector<8x512xf32>
    %23 = arith.truncf %15 : vector<8x128xf32> to vector<8x128xbf16>
    %cst_23 = arith.constant dense<0.000000e+00> : vector<8x512xf32>
    %24 = tpu.matmul %23, %9, %cst_23 {dimension_numbers = #tpu.dot_dimension_numbers<[1], [0], [0], [1], [0, 0, 1, 1], [], []>} : vector<8x128xbf16>, vector<128x512xbf16>, vector<8x512xf32> -> vector<8x512xf32>
    %25 = arith.addf %22, %24 : vector<8x512xf32>
    %26 = vector.extract_strided_slice %25 {offsets = [0, 0], sizes = [8, 128], strides = [1, 1]} : vector<8x512xf32> to vector<8x128xf32>
    %27 = arith.negf %26 : vector<8x128xf32>
    %28 = math.exp %27 : vector<8x128xf32>
    %cst_24 = arith.constant 1.000000e+00 : f32
    %29 = vector.broadcast %cst_24 : f32 to vector<8x128xf32>
    %30 = arith.addf %29, %28 : vector<8x128xf32>
    %31 = arith.divf %29, %30 : vector<8x128xf32>
    %32 = vector.extract_strided_slice %25 {offsets = [0, 128], sizes = [8, 128], strides = [1, 1]} : vector<8x512xf32> to vector<8x128xf32>
    %33 = arith.negf %32 : vector<8x128xf32>
    %34 = math.exp %33 : vector<8x128xf32>
    %cst_25 = arith.constant 1.000000e+00 : f32
    %35 = vector.broadcast %cst_25 : f32 to vector<8x128xf32>
    %36 = arith.addf %35, %34 : vector<8x128xf32>
    %37 = arith.divf %35, %36 : vector<8x128xf32>
    %38 = vector.extract_strided_slice %25 {offsets = [0, 256], sizes = [8, 128], strides = [1, 1]} : vector<8x512xf32> to vector<8x128xf32>
    %39 = math.tanh %38 : vector<8x128xf32>
    %40 = vector.extract_strided_slice %25 {offsets = [0, 384], sizes = [8, 128], strides = [1, 1]} : vector<8x512xf32> to vector<8x128xf32>
    %41 = arith.negf %40 : vector<8x128xf32>
    %42 = math.exp %41 : vector<8x128xf32>
    %cst_26 = arith.constant 1.000000e+00 : f32
    %43 = vector.broadcast %cst_26 : f32 to vector<8x128xf32>
    %44 = arith.addf %43, %42 : vector<8x128xf32>
    %45 = arith.divf %43, %44 : vector<8x128xf32>
    %46 = arith.mulf %37, %16 : vector<8x128xf32>
    %47 = arith.mulf %31, %39 : vector<8x128xf32>
    %48 = arith.addf %46, %47 : vector<8x128xf32>
    %49 = math.tanh %48 : vector<8x128xf32>
    %50 = arith.mulf %45, %49 : vector<8x128xf32>
    %51 = arith.truncf %50 : vector<8x128xf32> to vector<8x128xbf16>
    %cst_27 = arith.constant dense<0.000000e+00> : vector<8x512xf32>
    %52 = tpu.matmul %51, %10, %cst_27 {dimension_numbers = #tpu.dot_dimension_numbers<[1], [0], [0], [1], [0, 0, 1, 1], [], []>} : vector<8x128xbf16>, vector<128x512xbf16>, vector<8x512xf32> -> vector<8x512xf32>
    %53 = arith.addf %21, %52 : vector<8x512xf32>
    %54 = vector.extract_strided_slice %53 {offsets = [0, 0], sizes = [8, 128], strides = [1, 1]} : vector<8x512xf32> to vector<8x128xf32>
    %55 = arith.negf %54 : vector<8x128xf32>
    %56 = math.exp %55 : vector<8x128xf32>
    %cst_28 = arith.constant 1.000000e+00 : f32
    %57 = vector.broadcast %cst_28 : f32 to vector<8x128xf32>
    %58 = arith.addf %57, %56 : vector<8x128xf32>
    %59 = arith.divf %57, %58 : vector<8x128xf32>
    %60 = vector.extract_strided_slice %53 {offsets = [0, 128], sizes = [8, 128], strides = [1, 1]} : vector<8x512xf32> to vector<8x128xf32>
    %61 = arith.negf %60 : vector<8x128xf32>
    %62 = math.exp %61 : vector<8x128xf32>
    %cst_29 = arith.constant 1.000000e+00 : f32
    %63 = vector.broadcast %cst_29 : f32 to vector<8x128xf32>
    %64 = arith.addf %63, %62 : vector<8x128xf32>
    %65 = arith.divf %63, %64 : vector<8x128xf32>
    %66 = vector.extract_strided_slice %53 {offsets = [0, 256], sizes = [8, 128], strides = [1, 1]} : vector<8x512xf32> to vector<8x128xf32>
    %67 = math.tanh %66 : vector<8x128xf32>
    %68 = vector.extract_strided_slice %53 {offsets = [0, 384], sizes = [8, 128], strides = [1, 1]} : vector<8x512xf32> to vector<8x128xf32>
    %69 = arith.negf %68 : vector<8x128xf32>
    %70 = math.exp %69 : vector<8x128xf32>
    %cst_30 = arith.constant 1.000000e+00 : f32
    %71 = vector.broadcast %cst_30 : f32 to vector<8x128xf32>
    %72 = arith.addf %71, %70 : vector<8x128xf32>
    %73 = arith.divf %71, %72 : vector<8x128xf32>
    %74 = arith.mulf %65, %18 : vector<8x128xf32>
    %75 = arith.mulf %59, %67 : vector<8x128xf32>
    %76 = arith.addf %74, %75 : vector<8x128xf32>
    %77 = math.tanh %76 : vector<8x128xf32>
    %78 = arith.mulf %73, %77 : vector<8x128xf32>
    %79 = arith.truncf %78 : vector<8x128xf32> to vector<8x128xbf16>
    %cst_31 = arith.constant dense<0.000000e+00> : vector<8x512xf32>
    %80 = tpu.matmul %79, %11, %cst_31 {dimension_numbers = #tpu.dot_dimension_numbers<[1], [0], [0], [1], [0, 0, 1, 1], [], []>} : vector<8x128xbf16>, vector<128x512xbf16>, vector<8x512xf32> -> vector<8x512xf32>
    %81 = arith.addf %80, %14 : vector<8x512xf32>
    %82 = vector.extract_strided_slice %8 {offsets = [8, 0], sizes = [8, 512], strides = [1, 1]} : vector<64x512xf32> to vector<8x512xf32>
    %83 = arith.truncf %50 : vector<8x128xf32> to vector<8x128xbf16>
    %cst_32 = arith.constant dense<0.000000e+00> : vector<8x512xf32>
    %84 = tpu.matmul %83, %9, %cst_32 {dimension_numbers = #tpu.dot_dimension_numbers<[1], [0], [0], [1], [0, 0, 1, 1], [], []>} : vector<8x128xbf16>, vector<128x512xbf16>, vector<8x512xf32> -> vector<8x512xf32>
    %85 = arith.addf %82, %84 : vector<8x512xf32>
    %86 = vector.extract_strided_slice %85 {offsets = [0, 0], sizes = [8, 128], strides = [1, 1]} : vector<8x512xf32> to vector<8x128xf32>
    %87 = arith.negf %86 : vector<8x128xf32>
    %88 = math.exp %87 : vector<8x128xf32>
    %cst_33 = arith.constant 1.000000e+00 : f32
    %89 = vector.broadcast %cst_33 : f32 to vector<8x128xf32>
    %90 = arith.addf %89, %88 : vector<8x128xf32>
    %91 = arith.divf %89, %90 : vector<8x128xf32>
    %92 = vector.extract_strided_slice %85 {offsets = [0, 128], sizes = [8, 128], strides = [1, 1]} : vector<8x512xf32> to vector<8x128xf32>
    %93 = arith.negf %92 : vector<8x128xf32>
    %94 = math.exp %93 : vector<8x128xf32>
    %cst_34 = arith.constant 1.000000e+00 : f32
    %95 = vector.broadcast %cst_34 : f32 to vector<8x128xf32>
    %96 = arith.addf %95, %94 : vector<8x128xf32>
    %97 = arith.divf %95, %96 : vector<8x128xf32>
    %98 = vector.extract_strided_slice %85 {offsets = [0, 256], sizes = [8, 128], strides = [1, 1]} : vector<8x512xf32> to vector<8x128xf32>
    %99 = math.tanh %98 : vector<8x128xf32>
    %100 = vector.extract_strided_slice %85 {offsets = [0, 384], sizes = [8, 128], strides = [1, 1]} : vector<8x512xf32> to vector<8x128xf32>
    %101 = arith.negf %100 : vector<8x128xf32>
    %102 = math.exp %101 : vector<8x128xf32>
    %cst_35 = arith.constant 1.000000e+00 : f32
    %103 = vector.broadcast %cst_35 : f32 to vector<8x128xf32>
    %104 = arith.addf %103, %102 : vector<8x128xf32>
    %105 = arith.divf %103, %104 : vector<8x128xf32>
    %106 = arith.mulf %97, %48 : vector<8x128xf32>
    %107 = arith.mulf %91, %99 : vector<8x128xf32>
    %108 = arith.addf %106, %107 : vector<8x128xf32>
    %109 = math.tanh %108 : vector<8x128xf32>
    %110 = arith.mulf %105, %109 : vector<8x128xf32>
    %111 = arith.truncf %110 : vector<8x128xf32> to vector<8x128xbf16>
    %cst_36 = arith.constant dense<0.000000e+00> : vector<8x512xf32>
    %112 = tpu.matmul %111, %10, %cst_36 {dimension_numbers = #tpu.dot_dimension_numbers<[1], [0], [0], [1], [0, 0, 1, 1], [], []>} : vector<8x128xbf16>, vector<128x512xbf16>, vector<8x512xf32> -> vector<8x512xf32>
    %113 = arith.addf %81, %112 : vector<8x512xf32>
    %114 = vector.extract_strided_slice %113 {offsets = [0, 0], sizes = [8, 128], strides = [1, 1]} : vector<8x512xf32> to vector<8x128xf32>
    %115 = arith.negf %114 : vector<8x128xf32>
    %116 = math.exp %115 : vector<8x128xf32>
    %cst_37 = arith.constant 1.000000e+00 : f32
    %117 = vector.broadcast %cst_37 : f32 to vector<8x128xf32>
    %118 = arith.addf %117, %116 : vector<8x128xf32>
    %119 = arith.divf %117, %118 : vector<8x128xf32>
    %120 = vector.extract_strided_slice %113 {offsets = [0, 128], sizes = [8, 128], strides = [1, 1]} : vector<8x512xf32> to vector<8x128xf32>
    %121 = arith.negf %120 : vector<8x128xf32>
    %122 = math.exp %121 : vector<8x128xf32>
    %cst_38 = arith.constant 1.000000e+00 : f32
    %123 = vector.broadcast %cst_38 : f32 to vector<8x128xf32>
    %124 = arith.addf %123, %122 : vector<8x128xf32>
    %125 = arith.divf %123, %124 : vector<8x128xf32>
    %126 = vector.extract_strided_slice %113 {offsets = [0, 256], sizes = [8, 128], strides = [1, 1]} : vector<8x512xf32> to vector<8x128xf32>
    %127 = math.tanh %126 : vector<8x128xf32>
    %128 = vector.extract_strided_slice %113 {offsets = [0, 384], sizes = [8, 128], strides = [1, 1]} : vector<8x512xf32> to vector<8x128xf32>
    %129 = arith.negf %128 : vector<8x128xf32>
    %130 = math.exp %129 : vector<8x128xf32>
    %cst_39 = arith.constant 1.000000e+00 : f32
    %131 = vector.broadcast %cst_39 : f32 to vector<8x128xf32>
    %132 = arith.addf %131, %130 : vector<8x128xf32>
    %133 = arith.divf %131, %132 : vector<8x128xf32>
    %134 = arith.mulf %125, %76 : vector<8x128xf32>
    %135 = arith.mulf %119, %127 : vector<8x128xf32>
    %136 = arith.addf %134, %135 : vector<8x128xf32>
    %137 = math.tanh %136 : vector<8x128xf32>
    %138 = arith.mulf %133, %137 : vector<8x128xf32>
    %139 = arith.truncf %138 : vector<8x128xf32> to vector<8x128xbf16>
    %cst_40 = arith.constant dense<0.000000e+00> : vector<8x512xf32>
    %140 = tpu.matmul %139, %11, %cst_40 {dimension_numbers = #tpu.dot_dimension_numbers<[1], [0], [0], [1], [0, 0, 1, 1], [], []>} : vector<8x128xbf16>, vector<128x512xbf16>, vector<8x512xf32> -> vector<8x512xf32>
    %141 = arith.addf %140, %14 : vector<8x512xf32>
    %142 = vector.extract_strided_slice %8 {offsets = [16, 0], sizes = [8, 512], strides = [1, 1]} : vector<64x512xf32> to vector<8x512xf32>
    %143 = arith.truncf %110 : vector<8x128xf32> to vector<8x128xbf16>
    %cst_41 = arith.constant dense<0.000000e+00> : vector<8x512xf32>
    %144 = tpu.matmul %143, %9, %cst_41 {dimension_numbers = #tpu.dot_dimension_numbers<[1], [0], [0], [1], [0, 0, 1, 1], [], []>} : vector<8x128xbf16>, vector<128x512xbf16>, vector<8x512xf32> -> vector<8x512xf32>
    %145 = arith.addf %142, %144 : vector<8x512xf32>
    %146 = vector.extract_strided_slice %145 {offsets = [0, 0], sizes = [8, 128], strides = [1, 1]} : vector<8x512xf32> to vector<8x128xf32>
    %147 = arith.negf %146 : vector<8x128xf32>
    %148 = math.exp %147 : vector<8x128xf32>
    %cst_42 = arith.constant 1.000000e+00 : f32
    %149 = vector.broadcast %cst_42 : f32 to vector<8x128xf32>
    %150 = arith.addf %149, %148 : vector<8x128xf32>
    %151 = arith.divf %149, %150 : vector<8x128xf32>
    %152 = vector.extract_strided_slice %145 {offsets = [0, 128], sizes = [8, 128], strides = [1, 1]} : vector<8x512xf32> to vector<8x128xf32>
    %153 = arith.negf %152 : vector<8x128xf32>
    %154 = math.exp %153 : vector<8x128xf32>
    %cst_43 = arith.constant 1.000000e+00 : f32
    %155 = vector.broadcast %cst_43 : f32 to vector<8x128xf32>
    %156 = arith.addf %155, %154 : vector<8x128xf32>
    %157 = arith.divf %155, %156 : vector<8x128xf32>
    %158 = vector.extract_strided_slice %145 {offsets = [0, 256], sizes = [8, 128], strides = [1, 1]} : vector<8x512xf32> to vector<8x128xf32>
    %159 = math.tanh %158 : vector<8x128xf32>
    %160 = vector.extract_strided_slice %145 {offsets = [0, 384], sizes = [8, 128], strides = [1, 1]} : vector<8x512xf32> to vector<8x128xf32>
    %161 = arith.negf %160 : vector<8x128xf32>
    %162 = math.exp %161 : vector<8x128xf32>
    %cst_44 = arith.constant 1.000000e+00 : f32
    %163 = vector.broadcast %cst_44 : f32 to vector<8x128xf32>
    %164 = arith.addf %163, %162 : vector<8x128xf32>
    %165 = arith.divf %163, %164 : vector<8x128xf32>
    %166 = arith.mulf %157, %108 : vector<8x128xf32>
    %167 = arith.mulf %151, %159 : vector<8x128xf32>
    %168 = arith.addf %166, %167 : vector<8x128xf32>
    %169 = math.tanh %168 : vector<8x128xf32>
    %170 = arith.mulf %165, %169 : vector<8x128xf32>
    %171 = arith.truncf %170 : vector<8x128xf32> to vector<8x128xbf16>
    %cst_45 = arith.constant dense<0.000000e+00> : vector<8x512xf32>
    %172 = tpu.matmul %171, %10, %cst_45 {dimension_numbers = #tpu.dot_dimension_numbers<[1], [0], [0], [1], [0, 0, 1, 1], [], []>} : vector<8x128xbf16>, vector<128x512xbf16>, vector<8x512xf32> -> vector<8x512xf32>
    %173 = arith.addf %141, %172 : vector<8x512xf32>
    %174 = vector.extract_strided_slice %173 {offsets = [0, 0], sizes = [8, 128], strides = [1, 1]} : vector<8x512xf32> to vector<8x128xf32>
    %175 = arith.negf %174 : vector<8x128xf32>
    %176 = math.exp %175 : vector<8x128xf32>
    %cst_46 = arith.constant 1.000000e+00 : f32
    %177 = vector.broadcast %cst_46 : f32 to vector<8x128xf32>
    %178 = arith.addf %177, %176 : vector<8x128xf32>
    %179 = arith.divf %177, %178 : vector<8x128xf32>
    %180 = vector.extract_strided_slice %173 {offsets = [0, 128], sizes = [8, 128], strides = [1, 1]} : vector<8x512xf32> to vector<8x128xf32>
    %181 = arith.negf %180 : vector<8x128xf32>
    %182 = math.exp %181 : vector<8x128xf32>
    %cst_47 = arith.constant 1.000000e+00 : f32
    %183 = vector.broadcast %cst_47 : f32 to vector<8x128xf32>
    %184 = arith.addf %183, %182 : vector<8x128xf32>
    %185 = arith.divf %183, %184 : vector<8x128xf32>
    %186 = vector.extract_strided_slice %173 {offsets = [0, 256], sizes = [8, 128], strides = [1, 1]} : vector<8x512xf32> to vector<8x128xf32>
    %187 = math.tanh %186 : vector<8x128xf32>
    %188 = vector.extract_strided_slice %173 {offsets = [0, 384], sizes = [8, 128], strides = [1, 1]} : vector<8x512xf32> to vector<8x128xf32>
    %189 = arith.negf %188 : vector<8x128xf32>
    %190 = math.exp %189 : vector<8x128xf32>
    %cst_48 = arith.constant 1.000000e+00 : f32
    %191 = vector.broadcast %cst_48 : f32 to vector<8x128xf32>
    %192 = arith.addf %191, %190 : vector<8x128xf32>
    %193 = arith.divf %191, %192 : vector<8x128xf32>
    %194 = arith.mulf %185, %136 : vector<8x128xf32>
    %195 = arith.mulf %179, %187 : vector<8x128xf32>
    %196 = arith.addf %194, %195 : vector<8x128xf32>
    %197 = math.tanh %196 : vector<8x128xf32>
    %198 = arith.mulf %193, %197 : vector<8x128xf32>
    %199 = arith.truncf %198 : vector<8x128xf32> to vector<8x128xbf16>
    %cst_49 = arith.constant dense<0.000000e+00> : vector<8x512xf32>
    %200 = tpu.matmul %199, %11, %cst_49 {dimension_numbers = #tpu.dot_dimension_numbers<[1], [0], [0], [1], [0, 0, 1, 1], [], []>} : vector<8x128xbf16>, vector<128x512xbf16>, vector<8x512xf32> -> vector<8x512xf32>
    %201 = arith.addf %200, %14 : vector<8x512xf32>
    %202 = vector.extract_strided_slice %8 {offsets = [24, 0], sizes = [8, 512], strides = [1, 1]} : vector<64x512xf32> to vector<8x512xf32>
    %203 = arith.truncf %170 : vector<8x128xf32> to vector<8x128xbf16>
    %cst_50 = arith.constant dense<0.000000e+00> : vector<8x512xf32>
    %204 = tpu.matmul %203, %9, %cst_50 {dimension_numbers = #tpu.dot_dimension_numbers<[1], [0], [0], [1], [0, 0, 1, 1], [], []>} : vector<8x128xbf16>, vector<128x512xbf16>, vector<8x512xf32> -> vector<8x512xf32>
    %205 = arith.addf %202, %204 : vector<8x512xf32>
    %206 = vector.extract_strided_slice %205 {offsets = [0, 0], sizes = [8, 128], strides = [1, 1]} : vector<8x512xf32> to vector<8x128xf32>
    %207 = arith.negf %206 : vector<8x128xf32>
    %208 = math.exp %207 : vector<8x128xf32>
    %cst_51 = arith.constant 1.000000e+00 : f32
    %209 = vector.broadcast %cst_51 : f32 to vector<8x128xf32>
    %210 = arith.addf %209, %208 : vector<8x128xf32>
    %211 = arith.divf %209, %210 : vector<8x128xf32>
    %212 = vector.extract_strided_slice %205 {offsets = [0, 128], sizes = [8, 128], strides = [1, 1]} : vector<8x512xf32> to vector<8x128xf32>
    %213 = arith.negf %212 : vector<8x128xf32>
    %214 = math.exp %213 : vector<8x128xf32>
    %cst_52 = arith.constant 1.000000e+00 : f32
    %215 = vector.broadcast %cst_52 : f32 to vector<8x128xf32>
    %216 = arith.addf %215, %214 : vector<8x128xf32>
    %217 = arith.divf %215, %216 : vector<8x128xf32>
    %218 = vector.extract_strided_slice %205 {offsets = [0, 256], sizes = [8, 128], strides = [1, 1]} : vector<8x512xf32> to vector<8x128xf32>
    %219 = math.tanh %218 : vector<8x128xf32>
    %220 = vector.extract_strided_slice %205 {offsets = [0, 384], sizes = [8, 128], strides = [1, 1]} : vector<8x512xf32> to vector<8x128xf32>
    %221 = arith.negf %220 : vector<8x128xf32>
    %222 = math.exp %221 : vector<8x128xf32>
    %cst_53 = arith.constant 1.000000e+00 : f32
    %223 = vector.broadcast %cst_53 : f32 to vector<8x128xf32>
    %224 = arith.addf %223, %222 : vector<8x128xf32>
    %225 = arith.divf %223, %224 : vector<8x128xf32>
    %226 = arith.mulf %217, %168 : vector<8x128xf32>
    %227 = arith.mulf %211, %219 : vector<8x128xf32>
    %228 = arith.addf %226, %227 : vector<8x128xf32>
    %229 = math.tanh %228 : vector<8x128xf32>
    %230 = arith.mulf %225, %229 : vector<8x128xf32>
    %231 = arith.truncf %230 : vector<8x128xf32> to vector<8x128xbf16>
    %cst_54 = arith.constant dense<0.000000e+00> : vector<8x512xf32>
    %232 = tpu.matmul %231, %10, %cst_54 {dimension_numbers = #tpu.dot_dimension_numbers<[1], [0], [0], [1], [0, 0, 1, 1], [], []>} : vector<8x128xbf16>, vector<128x512xbf16>, vector<8x512xf32> -> vector<8x512xf32>
    %233 = arith.addf %201, %232 : vector<8x512xf32>
    %234 = vector.extract_strided_slice %233 {offsets = [0, 0], sizes = [8, 128], strides = [1, 1]} : vector<8x512xf32> to vector<8x128xf32>
    %235 = arith.negf %234 : vector<8x128xf32>
    %236 = math.exp %235 : vector<8x128xf32>
    %cst_55 = arith.constant 1.000000e+00 : f32
    %237 = vector.broadcast %cst_55 : f32 to vector<8x128xf32>
    %238 = arith.addf %237, %236 : vector<8x128xf32>
    %239 = arith.divf %237, %238 : vector<8x128xf32>
    %240 = vector.extract_strided_slice %233 {offsets = [0, 128], sizes = [8, 128], strides = [1, 1]} : vector<8x512xf32> to vector<8x128xf32>
    %241 = arith.negf %240 : vector<8x128xf32>
    %242 = math.exp %241 : vector<8x128xf32>
    %cst_56 = arith.constant 1.000000e+00 : f32
    %243 = vector.broadcast %cst_56 : f32 to vector<8x128xf32>
    %244 = arith.addf %243, %242 : vector<8x128xf32>
    %245 = arith.divf %243, %244 : vector<8x128xf32>
    %246 = vector.extract_strided_slice %233 {offsets = [0, 256], sizes = [8, 128], strides = [1, 1]} : vector<8x512xf32> to vector<8x128xf32>
    %247 = math.tanh %246 : vector<8x128xf32>
    %248 = vector.extract_strided_slice %233 {offsets = [0, 384], sizes = [8, 128], strides = [1, 1]} : vector<8x512xf32> to vector<8x128xf32>
    %249 = arith.negf %248 : vector<8x128xf32>
    %250 = math.exp %249 : vector<8x128xf32>
    %cst_57 = arith.constant 1.000000e+00 : f32
    %251 = vector.broadcast %cst_57 : f32 to vector<8x128xf32>
    %252 = arith.addf %251, %250 : vector<8x128xf32>
    %253 = arith.divf %251, %252 : vector<8x128xf32>
    %254 = arith.mulf %245, %196 : vector<8x128xf32>
    %255 = arith.mulf %239, %247 : vector<8x128xf32>
    %256 = arith.addf %254, %255 : vector<8x128xf32>
    %257 = math.tanh %256 : vector<8x128xf32>
    %258 = arith.mulf %253, %257 : vector<8x128xf32>
    %259 = arith.truncf %258 : vector<8x128xf32> to vector<8x128xbf16>
    %cst_58 = arith.constant dense<0.000000e+00> : vector<8x512xf32>
    %260 = tpu.matmul %259, %11, %cst_58 {dimension_numbers = #tpu.dot_dimension_numbers<[1], [0], [0], [1], [0, 0, 1, 1], [], []>} : vector<8x128xbf16>, vector<128x512xbf16>, vector<8x512xf32> -> vector<8x512xf32>
    %261 = arith.addf %260, %14 : vector<8x512xf32>
    %262 = vector.extract_strided_slice %8 {offsets = [32, 0], sizes = [8, 512], strides = [1, 1]} : vector<64x512xf32> to vector<8x512xf32>
    %263 = arith.truncf %230 : vector<8x128xf32> to vector<8x128xbf16>
    %cst_59 = arith.constant dense<0.000000e+00> : vector<8x512xf32>
    %264 = tpu.matmul %263, %9, %cst_59 {dimension_numbers = #tpu.dot_dimension_numbers<[1], [0], [0], [1], [0, 0, 1, 1], [], []>} : vector<8x128xbf16>, vector<128x512xbf16>, vector<8x512xf32> -> vector<8x512xf32>
    %265 = arith.addf %262, %264 : vector<8x512xf32>
    %266 = vector.extract_strided_slice %265 {offsets = [0, 0], sizes = [8, 128], strides = [1, 1]} : vector<8x512xf32> to vector<8x128xf32>
    %267 = arith.negf %266 : vector<8x128xf32>
    %268 = math.exp %267 : vector<8x128xf32>
    %cst_60 = arith.constant 1.000000e+00 : f32
    %269 = vector.broadcast %cst_60 : f32 to vector<8x128xf32>
    %270 = arith.addf %269, %268 : vector<8x128xf32>
    %271 = arith.divf %269, %270 : vector<8x128xf32>
    %272 = vector.extract_strided_slice %265 {offsets = [0, 128], sizes = [8, 128], strides = [1, 1]} : vector<8x512xf32> to vector<8x128xf32>
    %273 = arith.negf %272 : vector<8x128xf32>
    %274 = math.exp %273 : vector<8x128xf32>
    %cst_61 = arith.constant 1.000000e+00 : f32
    %275 = vector.broadcast %cst_61 : f32 to vector<8x128xf32>
    %276 = arith.addf %275, %274 : vector<8x128xf32>
    %277 = arith.divf %275, %276 : vector<8x128xf32>
    %278 = vector.extract_strided_slice %265 {offsets = [0, 256], sizes = [8, 128], strides = [1, 1]} : vector<8x512xf32> to vector<8x128xf32>
    %279 = math.tanh %278 : vector<8x128xf32>
    %280 = vector.extract_strided_slice %265 {offsets = [0, 384], sizes = [8, 128], strides = [1, 1]} : vector<8x512xf32> to vector<8x128xf32>
    %281 = arith.negf %280 : vector<8x128xf32>
    %282 = math.exp %281 : vector<8x128xf32>
    %cst_62 = arith.constant 1.000000e+00 : f32
    %283 = vector.broadcast %cst_62 : f32 to vector<8x128xf32>
    %284 = arith.addf %283, %282 : vector<8x128xf32>
    %285 = arith.divf %283, %284 : vector<8x128xf32>
    %286 = arith.mulf %277, %228 : vector<8x128xf32>
    %287 = arith.mulf %271, %279 : vector<8x128xf32>
    %288 = arith.addf %286, %287 : vector<8x128xf32>
    %289 = math.tanh %288 : vector<8x128xf32>
    %290 = arith.mulf %285, %289 : vector<8x128xf32>
    %291 = arith.truncf %290 : vector<8x128xf32> to vector<8x128xbf16>
    %cst_63 = arith.constant dense<0.000000e+00> : vector<8x512xf32>
    %292 = tpu.matmul %291, %10, %cst_63 {dimension_numbers = #tpu.dot_dimension_numbers<[1], [0], [0], [1], [0, 0, 1, 1], [], []>} : vector<8x128xbf16>, vector<128x512xbf16>, vector<8x512xf32> -> vector<8x512xf32>
    %293 = arith.addf %261, %292 : vector<8x512xf32>
    %294 = vector.extract_strided_slice %293 {offsets = [0, 0], sizes = [8, 128], strides = [1, 1]} : vector<8x512xf32> to vector<8x128xf32>
    %295 = arith.negf %294 : vector<8x128xf32>
    %296 = math.exp %295 : vector<8x128xf32>
    %cst_64 = arith.constant 1.000000e+00 : f32
    %297 = vector.broadcast %cst_64 : f32 to vector<8x128xf32>
    %298 = arith.addf %297, %296 : vector<8x128xf32>
    %299 = arith.divf %297, %298 : vector<8x128xf32>
    %300 = vector.extract_strided_slice %293 {offsets = [0, 128], sizes = [8, 128], strides = [1, 1]} : vector<8x512xf32> to vector<8x128xf32>
    %301 = arith.negf %300 : vector<8x128xf32>
    %302 = math.exp %301 : vector<8x128xf32>
    %cst_65 = arith.constant 1.000000e+00 : f32
    %303 = vector.broadcast %cst_65 : f32 to vector<8x128xf32>
    %304 = arith.addf %303, %302 : vector<8x128xf32>
    %305 = arith.divf %303, %304 : vector<8x128xf32>
    %306 = vector.extract_strided_slice %293 {offsets = [0, 256], sizes = [8, 128], strides = [1, 1]} : vector<8x512xf32> to vector<8x128xf32>
    %307 = math.tanh %306 : vector<8x128xf32>
    %308 = vector.extract_strided_slice %293 {offsets = [0, 384], sizes = [8, 128], strides = [1, 1]} : vector<8x512xf32> to vector<8x128xf32>
    %309 = arith.negf %308 : vector<8x128xf32>
    %310 = math.exp %309 : vector<8x128xf32>
    %cst_66 = arith.constant 1.000000e+00 : f32
    %311 = vector.broadcast %cst_66 : f32 to vector<8x128xf32>
    %312 = arith.addf %311, %310 : vector<8x128xf32>
    %313 = arith.divf %311, %312 : vector<8x128xf32>
    %314 = arith.mulf %305, %256 : vector<8x128xf32>
    %315 = arith.mulf %299, %307 : vector<8x128xf32>
    %316 = arith.addf %314, %315 : vector<8x128xf32>
    %317 = math.tanh %316 : vector<8x128xf32>
    %318 = arith.mulf %313, %317 : vector<8x128xf32>
    %319 = arith.truncf %318 : vector<8x128xf32> to vector<8x128xbf16>
    %cst_67 = arith.constant dense<0.000000e+00> : vector<8x512xf32>
    %320 = tpu.matmul %319, %11, %cst_67 {dimension_numbers = #tpu.dot_dimension_numbers<[1], [0], [0], [1], [0, 0, 1, 1], [], []>} : vector<8x128xbf16>, vector<128x512xbf16>, vector<8x512xf32> -> vector<8x512xf32>
    %321 = arith.addf %320, %14 : vector<8x512xf32>
    %322 = vector.extract_strided_slice %8 {offsets = [40, 0], sizes = [8, 512], strides = [1, 1]} : vector<64x512xf32> to vector<8x512xf32>
    %323 = arith.truncf %290 : vector<8x128xf32> to vector<8x128xbf16>
    %cst_68 = arith.constant dense<0.000000e+00> : vector<8x512xf32>
    %324 = tpu.matmul %323, %9, %cst_68 {dimension_numbers = #tpu.dot_dimension_numbers<[1], [0], [0], [1], [0, 0, 1, 1], [], []>} : vector<8x128xbf16>, vector<128x512xbf16>, vector<8x512xf32> -> vector<8x512xf32>
    %325 = arith.addf %322, %324 : vector<8x512xf32>
    %326 = vector.extract_strided_slice %325 {offsets = [0, 0], sizes = [8, 128], strides = [1, 1]} : vector<8x512xf32> to vector<8x128xf32>
    %327 = arith.negf %326 : vector<8x128xf32>
    %328 = math.exp %327 : vector<8x128xf32>
    %cst_69 = arith.constant 1.000000e+00 : f32
    %329 = vector.broadcast %cst_69 : f32 to vector<8x128xf32>
    %330 = arith.addf %329, %328 : vector<8x128xf32>
    %331 = arith.divf %329, %330 : vector<8x128xf32>
    %332 = vector.extract_strided_slice %325 {offsets = [0, 128], sizes = [8, 128], strides = [1, 1]} : vector<8x512xf32> to vector<8x128xf32>
    %333 = arith.negf %332 : vector<8x128xf32>
    %334 = math.exp %333 : vector<8x128xf32>
    %cst_70 = arith.constant 1.000000e+00 : f32
    %335 = vector.broadcast %cst_70 : f32 to vector<8x128xf32>
    %336 = arith.addf %335, %334 : vector<8x128xf32>
    %337 = arith.divf %335, %336 : vector<8x128xf32>
    %338 = vector.extract_strided_slice %325 {offsets = [0, 256], sizes = [8, 128], strides = [1, 1]} : vector<8x512xf32> to vector<8x128xf32>
    %339 = math.tanh %338 : vector<8x128xf32>
    %340 = vector.extract_strided_slice %325 {offsets = [0, 384], sizes = [8, 128], strides = [1, 1]} : vector<8x512xf32> to vector<8x128xf32>
    %341 = arith.negf %340 : vector<8x128xf32>
    %342 = math.exp %341 : vector<8x128xf32>
    %cst_71 = arith.constant 1.000000e+00 : f32
    %343 = vector.broadcast %cst_71 : f32 to vector<8x128xf32>
    %344 = arith.addf %343, %342 : vector<8x128xf32>
    %345 = arith.divf %343, %344 : vector<8x128xf32>
    %346 = arith.mulf %337, %288 : vector<8x128xf32>
    %347 = arith.mulf %331, %339 : vector<8x128xf32>
    %348 = arith.addf %346, %347 : vector<8x128xf32>
    %349 = math.tanh %348 : vector<8x128xf32>
    %350 = arith.mulf %345, %349 : vector<8x128xf32>
    %351 = arith.truncf %350 : vector<8x128xf32> to vector<8x128xbf16>
    %cst_72 = arith.constant dense<0.000000e+00> : vector<8x512xf32>
    %352 = tpu.matmul %351, %10, %cst_72 {dimension_numbers = #tpu.dot_dimension_numbers<[1], [0], [0], [1], [0, 0, 1, 1], [], []>} : vector<8x128xbf16>, vector<128x512xbf16>, vector<8x512xf32> -> vector<8x512xf32>
    %353 = arith.addf %321, %352 : vector<8x512xf32>
    %354 = vector.extract_strided_slice %353 {offsets = [0, 0], sizes = [8, 128], strides = [1, 1]} : vector<8x512xf32> to vector<8x128xf32>
    %355 = arith.negf %354 : vector<8x128xf32>
    %356 = math.exp %355 : vector<8x128xf32>
    %cst_73 = arith.constant 1.000000e+00 : f32
    %357 = vector.broadcast %cst_73 : f32 to vector<8x128xf32>
    %358 = arith.addf %357, %356 : vector<8x128xf32>
    %359 = arith.divf %357, %358 : vector<8x128xf32>
    %360 = vector.extract_strided_slice %353 {offsets = [0, 128], sizes = [8, 128], strides = [1, 1]} : vector<8x512xf32> to vector<8x128xf32>
    %361 = arith.negf %360 : vector<8x128xf32>
    %362 = math.exp %361 : vector<8x128xf32>
    %cst_74 = arith.constant 1.000000e+00 : f32
    %363 = vector.broadcast %cst_74 : f32 to vector<8x128xf32>
    %364 = arith.addf %363, %362 : vector<8x128xf32>
    %365 = arith.divf %363, %364 : vector<8x128xf32>
    %366 = vector.extract_strided_slice %353 {offsets = [0, 256], sizes = [8, 128], strides = [1, 1]} : vector<8x512xf32> to vector<8x128xf32>
    %367 = math.tanh %366 : vector<8x128xf32>
    %368 = vector.extract_strided_slice %353 {offsets = [0, 384], sizes = [8, 128], strides = [1, 1]} : vector<8x512xf32> to vector<8x128xf32>
    %369 = arith.negf %368 : vector<8x128xf32>
    %370 = math.exp %369 : vector<8x128xf32>
    %cst_75 = arith.constant 1.000000e+00 : f32
    %371 = vector.broadcast %cst_75 : f32 to vector<8x128xf32>
    %372 = arith.addf %371, %370 : vector<8x128xf32>
    %373 = arith.divf %371, %372 : vector<8x128xf32>
    %374 = arith.mulf %365, %316 : vector<8x128xf32>
    %375 = arith.mulf %359, %367 : vector<8x128xf32>
    %376 = arith.addf %374, %375 : vector<8x128xf32>
    %377 = math.tanh %376 : vector<8x128xf32>
    %378 = arith.mulf %373, %377 : vector<8x128xf32>
    %379 = arith.truncf %378 : vector<8x128xf32> to vector<8x128xbf16>
    %cst_76 = arith.constant dense<0.000000e+00> : vector<8x512xf32>
    %380 = tpu.matmul %379, %11, %cst_76 {dimension_numbers = #tpu.dot_dimension_numbers<[1], [0], [0], [1], [0, 0, 1, 1], [], []>} : vector<8x128xbf16>, vector<128x512xbf16>, vector<8x512xf32> -> vector<8x512xf32>
    %381 = arith.addf %380, %14 : vector<8x512xf32>
    %382 = vector.extract_strided_slice %8 {offsets = [48, 0], sizes = [8, 512], strides = [1, 1]} : vector<64x512xf32> to vector<8x512xf32>
    %383 = arith.truncf %350 : vector<8x128xf32> to vector<8x128xbf16>
    %cst_77 = arith.constant dense<0.000000e+00> : vector<8x512xf32>
    %384 = tpu.matmul %383, %9, %cst_77 {dimension_numbers = #tpu.dot_dimension_numbers<[1], [0], [0], [1], [0, 0, 1, 1], [], []>} : vector<8x128xbf16>, vector<128x512xbf16>, vector<8x512xf32> -> vector<8x512xf32>
    %385 = arith.addf %382, %384 : vector<8x512xf32>
    %386 = vector.extract_strided_slice %385 {offsets = [0, 0], sizes = [8, 128], strides = [1, 1]} : vector<8x512xf32> to vector<8x128xf32>
    %387 = arith.negf %386 : vector<8x128xf32>
    %388 = math.exp %387 : vector<8x128xf32>
    %cst_78 = arith.constant 1.000000e+00 : f32
    %389 = vector.broadcast %cst_78 : f32 to vector<8x128xf32>
    %390 = arith.addf %389, %388 : vector<8x128xf32>
    %391 = arith.divf %389, %390 : vector<8x128xf32>
    %392 = vector.extract_strided_slice %385 {offsets = [0, 128], sizes = [8, 128], strides = [1, 1]} : vector<8x512xf32> to vector<8x128xf32>
    %393 = arith.negf %392 : vector<8x128xf32>
    %394 = math.exp %393 : vector<8x128xf32>
    %cst_79 = arith.constant 1.000000e+00 : f32
    %395 = vector.broadcast %cst_79 : f32 to vector<8x128xf32>
    %396 = arith.addf %395, %394 : vector<8x128xf32>
    %397 = arith.divf %395, %396 : vector<8x128xf32>
    %398 = vector.extract_strided_slice %385 {offsets = [0, 256], sizes = [8, 128], strides = [1, 1]} : vector<8x512xf32> to vector<8x128xf32>
    %399 = math.tanh %398 : vector<8x128xf32>
    %400 = vector.extract_strided_slice %385 {offsets = [0, 384], sizes = [8, 128], strides = [1, 1]} : vector<8x512xf32> to vector<8x128xf32>
    %401 = arith.negf %400 : vector<8x128xf32>
    %402 = math.exp %401 : vector<8x128xf32>
    %cst_80 = arith.constant 1.000000e+00 : f32
    %403 = vector.broadcast %cst_80 : f32 to vector<8x128xf32>
    %404 = arith.addf %403, %402 : vector<8x128xf32>
    %405 = arith.divf %403, %404 : vector<8x128xf32>
    %406 = arith.mulf %397, %348 : vector<8x128xf32>
    %407 = arith.mulf %391, %399 : vector<8x128xf32>
    %408 = arith.addf %406, %407 : vector<8x128xf32>
    %409 = math.tanh %408 : vector<8x128xf32>
    %410 = arith.mulf %405, %409 : vector<8x128xf32>
    %411 = arith.truncf %410 : vector<8x128xf32> to vector<8x128xbf16>
    %cst_81 = arith.constant dense<0.000000e+00> : vector<8x512xf32>
    %412 = tpu.matmul %411, %10, %cst_81 {dimension_numbers = #tpu.dot_dimension_numbers<[1], [0], [0], [1], [0, 0, 1, 1], [], []>} : vector<8x128xbf16>, vector<128x512xbf16>, vector<8x512xf32> -> vector<8x512xf32>
    %413 = arith.addf %381, %412 : vector<8x512xf32>
    %414 = vector.extract_strided_slice %413 {offsets = [0, 0], sizes = [8, 128], strides = [1, 1]} : vector<8x512xf32> to vector<8x128xf32>
    %415 = arith.negf %414 : vector<8x128xf32>
    %416 = math.exp %415 : vector<8x128xf32>
    %cst_82 = arith.constant 1.000000e+00 : f32
    %417 = vector.broadcast %cst_82 : f32 to vector<8x128xf32>
    %418 = arith.addf %417, %416 : vector<8x128xf32>
    %419 = arith.divf %417, %418 : vector<8x128xf32>
    %420 = vector.extract_strided_slice %413 {offsets = [0, 128], sizes = [8, 128], strides = [1, 1]} : vector<8x512xf32> to vector<8x128xf32>
    %421 = arith.negf %420 : vector<8x128xf32>
    %422 = math.exp %421 : vector<8x128xf32>
    %cst_83 = arith.constant 1.000000e+00 : f32
    %423 = vector.broadcast %cst_83 : f32 to vector<8x128xf32>
    %424 = arith.addf %423, %422 : vector<8x128xf32>
    %425 = arith.divf %423, %424 : vector<8x128xf32>
    %426 = vector.extract_strided_slice %413 {offsets = [0, 256], sizes = [8, 128], strides = [1, 1]} : vector<8x512xf32> to vector<8x128xf32>
    %427 = math.tanh %426 : vector<8x128xf32>
    %428 = vector.extract_strided_slice %413 {offsets = [0, 384], sizes = [8, 128], strides = [1, 1]} : vector<8x512xf32> to vector<8x128xf32>
    %429 = arith.negf %428 : vector<8x128xf32>
    %430 = math.exp %429 : vector<8x128xf32>
    %cst_84 = arith.constant 1.000000e+00 : f32
    %431 = vector.broadcast %cst_84 : f32 to vector<8x128xf32>
    %432 = arith.addf %431, %430 : vector<8x128xf32>
    %433 = arith.divf %431, %432 : vector<8x128xf32>
    %434 = arith.mulf %425, %376 : vector<8x128xf32>
    %435 = arith.mulf %419, %427 : vector<8x128xf32>
    %436 = arith.addf %434, %435 : vector<8x128xf32>
    %437 = math.tanh %436 : vector<8x128xf32>
    %438 = arith.mulf %433, %437 : vector<8x128xf32>
    %439 = arith.truncf %438 : vector<8x128xf32> to vector<8x128xbf16>
    %cst_85 = arith.constant dense<0.000000e+00> : vector<8x512xf32>
    %440 = tpu.matmul %439, %11, %cst_85 {dimension_numbers = #tpu.dot_dimension_numbers<[1], [0], [0], [1], [0, 0, 1, 1], [], []>} : vector<8x128xbf16>, vector<128x512xbf16>, vector<8x512xf32> -> vector<8x512xf32>
    %441 = arith.addf %440, %14 : vector<8x512xf32>
    %442 = vector.extract_strided_slice %8 {offsets = [56, 0], sizes = [8, 512], strides = [1, 1]} : vector<64x512xf32> to vector<8x512xf32>
    %443 = arith.truncf %410 : vector<8x128xf32> to vector<8x128xbf16>
    %cst_86 = arith.constant dense<0.000000e+00> : vector<8x512xf32>
    %444 = tpu.matmul %443, %9, %cst_86 {dimension_numbers = #tpu.dot_dimension_numbers<[1], [0], [0], [1], [0, 0, 1, 1], [], []>} : vector<8x128xbf16>, vector<128x512xbf16>, vector<8x512xf32> -> vector<8x512xf32>
    %445 = arith.addf %442, %444 : vector<8x512xf32>
    %446 = vector.extract_strided_slice %445 {offsets = [0, 0], sizes = [8, 128], strides = [1, 1]} : vector<8x512xf32> to vector<8x128xf32>
    %447 = arith.negf %446 : vector<8x128xf32>
    %448 = math.exp %447 : vector<8x128xf32>
    %cst_87 = arith.constant 1.000000e+00 : f32
    %449 = vector.broadcast %cst_87 : f32 to vector<8x128xf32>
    %450 = arith.addf %449, %448 : vector<8x128xf32>
    %451 = arith.divf %449, %450 : vector<8x128xf32>
    %452 = vector.extract_strided_slice %445 {offsets = [0, 128], sizes = [8, 128], strides = [1, 1]} : vector<8x512xf32> to vector<8x128xf32>
    %453 = arith.negf %452 : vector<8x128xf32>
    %454 = math.exp %453 : vector<8x128xf32>
    %cst_88 = arith.constant 1.000000e+00 : f32
    %455 = vector.broadcast %cst_88 : f32 to vector<8x128xf32>
    %456 = arith.addf %455, %454 : vector<8x128xf32>
    %457 = arith.divf %455, %456 : vector<8x128xf32>
    %458 = vector.extract_strided_slice %445 {offsets = [0, 256], sizes = [8, 128], strides = [1, 1]} : vector<8x512xf32> to vector<8x128xf32>
    %459 = math.tanh %458 : vector<8x128xf32>
    %460 = vector.extract_strided_slice %445 {offsets = [0, 384], sizes = [8, 128], strides = [1, 1]} : vector<8x512xf32> to vector<8x128xf32>
    %461 = arith.negf %460 : vector<8x128xf32>
    %462 = math.exp %461 : vector<8x128xf32>
    %cst_89 = arith.constant 1.000000e+00 : f32
    %463 = vector.broadcast %cst_89 : f32 to vector<8x128xf32>
    %464 = arith.addf %463, %462 : vector<8x128xf32>
    %465 = arith.divf %463, %464 : vector<8x128xf32>
    %466 = arith.mulf %457, %408 : vector<8x128xf32>
    %467 = arith.mulf %451, %459 : vector<8x128xf32>
    %468 = arith.addf %466, %467 : vector<8x128xf32>
    %469 = math.tanh %468 : vector<8x128xf32>
    %470 = arith.mulf %465, %469 : vector<8x128xf32>
    %471 = arith.truncf %470 : vector<8x128xf32> to vector<8x128xbf16>
    %cst_90 = arith.constant dense<0.000000e+00> : vector<8x512xf32>
    %472 = tpu.matmul %471, %10, %cst_90 {dimension_numbers = #tpu.dot_dimension_numbers<[1], [0], [0], [1], [0, 0, 1, 1], [], []>} : vector<8x128xbf16>, vector<128x512xbf16>, vector<8x512xf32> -> vector<8x512xf32>
    %473 = arith.addf %441, %472 : vector<8x512xf32>
    %474 = vector.extract_strided_slice %473 {offsets = [0, 0], sizes = [8, 128], strides = [1, 1]} : vector<8x512xf32> to vector<8x128xf32>
    %475 = arith.negf %474 : vector<8x128xf32>
    %476 = math.exp %475 : vector<8x128xf32>
    %cst_91 = arith.constant 1.000000e+00 : f32
    %477 = vector.broadcast %cst_91 : f32 to vector<8x128xf32>
    %478 = arith.addf %477, %476 : vector<8x128xf32>
    %479 = arith.divf %477, %478 : vector<8x128xf32>
    %480 = vector.extract_strided_slice %473 {offsets = [0, 128], sizes = [8, 128], strides = [1, 1]} : vector<8x512xf32> to vector<8x128xf32>
    %481 = arith.negf %480 : vector<8x128xf32>
    %482 = math.exp %481 : vector<8x128xf32>
    %cst_92 = arith.constant 1.000000e+00 : f32
    %483 = vector.broadcast %cst_92 : f32 to vector<8x128xf32>
    %484 = arith.addf %483, %482 : vector<8x128xf32>
    %485 = arith.divf %483, %484 : vector<8x128xf32>
    %486 = vector.extract_strided_slice %473 {offsets = [0, 256], sizes = [8, 128], strides = [1, 1]} : vector<8x512xf32> to vector<8x128xf32>
    %487 = math.tanh %486 : vector<8x128xf32>
    %488 = vector.extract_strided_slice %473 {offsets = [0, 384], sizes = [8, 128], strides = [1, 1]} : vector<8x512xf32> to vector<8x128xf32>
    %489 = arith.negf %488 : vector<8x128xf32>
    %490 = math.exp %489 : vector<8x128xf32>
    %cst_93 = arith.constant 1.000000e+00 : f32
    %491 = vector.broadcast %cst_93 : f32 to vector<8x128xf32>
    %492 = arith.addf %491, %490 : vector<8x128xf32>
    %493 = arith.divf %491, %492 : vector<8x128xf32>
    %494 = arith.mulf %485, %436 : vector<8x128xf32>
    %495 = arith.mulf %479, %487 : vector<8x128xf32>
    %496 = arith.addf %494, %495 : vector<8x128xf32>
    %497 = math.tanh %496 : vector<8x128xf32>
    %498 = arith.mulf %493, %497 : vector<8x128xf32>
    %c0_94 = arith.constant 0 : index
    %c0_95 = arith.constant 0 : index
    %499 = vector.load %arg13[%c0_94, %c0_95] : memref<8x128xf32, #tpu.memory_space<vmem>>, vector<8x128xf32>
    tpu.vector_store %arg13[%c0_94, %c0_95], %470 {strides = array<i32>} : memref<8x128xf32, #tpu.memory_space<vmem>>, vector<8x128xf32>,
    %c0_96 = arith.constant 0 : index
    %c0_97 = arith.constant 0 : index
    %500 = vector.load %arg14[%c0_96, %c0_97] : memref<8x128xf32, #tpu.memory_space<vmem>>, vector<8x128xf32>
    tpu.vector_store %arg14[%c0_96, %c0_97], %468 {strides = array<i32>} : memref<8x128xf32, #tpu.memory_space<vmem>>, vector<8x128xf32>,
    %c0_98 = arith.constant 0 : index
    %c0_99 = arith.constant 0 : index
    %501 = vector.load %arg15[%c0_98, %c0_99] : memref<8x128xf32, #tpu.memory_space<vmem>>, vector<8x128xf32>
    tpu.vector_store %arg15[%c0_98, %c0_99], %498 {strides = array<i32>} : memref<8x128xf32, #tpu.memory_space<vmem>>, vector<8x128xf32>,
    %c0_100 = arith.constant 0 : index
    %c0_101 = arith.constant 0 : index
    %502 = vector.load %arg16[%c0_100, %c0_101] : memref<8x128xf32, #tpu.memory_space<vmem>>, vector<8x128xf32>
    tpu.vector_store %arg16[%c0_100, %c0_101], %496 {strides = array<i32>} : memref<8x128xf32, #tpu.memory_space<vmem>>, vector<8x128xf32>,
    %c0_i32_102 = arith.constant 0 : i32
    %503 = arith.cmpi eq, %arg0, %c0_i32_102 : i32
    %504 = arith.extui %503 : i1 to i32
    %c0_i32_103 = arith.constant 0 : i32
    %505 = arith.cmpi ne, %504, %c0_i32_103 : i32
    scf.if %505 {
      %c0_104 = arith.constant 0 : index
      %c0_105 = arith.constant 0 : index
      %506 = vector.load %arg8[%c0_104, %c0_105] : memref<128x25xf32, #tpu.memory_space<vmem>>, vector<128x25xf32>
      %cst_106 = arith.constant dense<0.000000e+00> : vector<8x25xf32>
      %507 = tpu.matmul %498, %506, %cst_106 {dimension_numbers = #tpu.dot_dimension_numbers<[1], [0], [0], [1], [0, 0, 1, 1], [], []>} : vector<8x128xf32>, vector<128x25xf32>, vector<8x25xf32> -> vector<8x25xf32>
      %c0_107 = arith.constant 0 : index
      %c0_108 = arith.constant 0 : index
      %508 = vector.load %arg9[%c0_107, %c0_108] : memref<1x25xf32, #tpu.memory_space<vmem>>, vector<1x25xf32>
      %509 = vector.broadcast %508 : vector<1x25xf32> to vector<8x25xf32>
      %510 = arith.addf %507, %509 : vector<8x25xf32>
      %c0_109 = arith.constant 0 : index
      %c0_110 = arith.constant 0 : index
      %511 = vector.load %arg10[%c0_109, %c0_110] : memref<25x6xf32, #tpu.memory_space<vmem>>, vector<25x6xf32>
      %cst_111 = arith.constant dense<0.000000e+00> : vector<8x6xf32>
      %512 = tpu.matmul %510, %511, %cst_111 {dimension_numbers = #tpu.dot_dimension_numbers<[1], [0], [0], [1], [0, 0, 1, 1], [], []>} : vector<8x25xf32>, vector<25x6xf32>, vector<8x6xf32> -> vector<8x6xf32>
      %c0_112 = arith.constant 0 : index
      %c0_113 = arith.constant 0 : index
      %513 = vector.load %arg11[%c0_112, %c0_113] : memref<1x6xf32, #tpu.memory_space<vmem>>, vector<1x6xf32>
      %514 = vector.broadcast %513 : vector<1x6xf32> to vector<8x6xf32>
      %515 = arith.addf %512, %514 : vector<8x6xf32>
      %c0_114 = arith.constant 0 : index
      %c0_115 = arith.constant 0 : index
      %516 = vector.load %arg12[%c0_114, %c0_115] : memref<8x6xf32, #tpu.memory_space<vmem>>, vector<8x6xf32>
      tpu.vector_store %arg12[%c0_114, %c0_115], %515 {strides = array<i32>} : memref<8x6xf32, #tpu.memory_space<vmem>>, vector<8x6xf32>,
    } else {
    }
    return
  }
  func.func @transform_0(%arg0: i32) -> (i32, i32) {
    %c0_i32 = arith.constant 0 : i32
    %c0_i32_0 = arith.constant 0 : i32
    return %arg0, %c0_i32 : i32, i32
  }
  func.func @transform_1(%arg0: i32) -> (i32, i32) {
    %c0_i32 = arith.constant 0 : i32
    %c0_i32_0 = arith.constant 0 : i32
    %c0_i32_1 = arith.constant 0 : i32
    return %c0_i32, %c0_i32_0 : i32, i32
  }
  func.func @transform_2(%arg0: i32) -> (i32, i32) {
    %c0_i32 = arith.constant 0 : i32
    %c0_i32_0 = arith.constant 0 : i32
    %c0_i32_1 = arith.constant 0 : i32
    return %c0_i32, %c0_i32_0 : i32, i32
  }
  func.func @transform_3(%arg0: i32) -> (i32, i32) {
    %c0_i32 = arith.constant 0 : i32
    %c0_i32_0 = arith.constant 0 : i32
    %c0_i32_1 = arith.constant 0 : i32
    return %c0_i32, %c0_i32_0 : i32, i32
  }
  func.func @transform_4(%arg0: i32) -> (i32, i32) {
    %c0_i32 = arith.constant 0 : i32
    %c0_i32_0 = arith.constant 0 : i32
    %c0_i32_1 = arith.constant 0 : i32
    return %c0_i32, %c0_i32_0 : i32, i32
  }
  func.func @transform_5(%arg0: i32) -> (i32, i32) {
    %c0_i32 = arith.constant 0 : i32
    %c0_i32_0 = arith.constant 0 : i32
    %c0_i32_1 = arith.constant 0 : i32
    return %c0_i32, %c0_i32_0 : i32, i32
  }
  func.func @transform_6(%arg0: i32) -> (i32, i32) {
    %c0_i32 = arith.constant 0 : i32
    %c0_i32_0 = arith.constant 0 : i32
    %c0_i32_1 = arith.constant 0 : i32
    return %c0_i32, %c0_i32_0 : i32, i32
  }
  func.func @transform_7(%arg0: i32) -> (i32, i32) {
    %c0_i32 = arith.constant 0 : i32
    %c0_i32_0 = arith.constant 0 : i32
    %c0_i32_1 = arith.constant 0 : i32
    return %c0_i32, %c0_i32_0 : i32, i32
  }
  func.func @transform_8(%arg0: i32) -> (i32, i32) {
    %c0_i32 = arith.constant 0 : i32
    %c0_i32_0 = arith.constant 0 : i32
    %c0_i32_1 = arith.constant 0 : i32
    return %c0_i32, %c0_i32_0 : i32, i32
  }
  func.func @transform_9(%arg0: i32) -> (i32, i32) {
    %c0_i32 = arith.constant 0 : i32
    %c0_i32_0 = arith.constant 0 : i32
    %c0_i32_1 = arith.constant 0 : i32
    return %c0_i32, %c0_i32_0 : i32, i32
  }
  func.func @transform_10(%arg0: i32) -> (i32, i32) {
    %c0_i32 = arith.constant 0 : i32
    %c0_i32_0 = arith.constant 0 : i32
    %c0_i32_1 = arith.constant 0 : i32
    return %c0_i32, %c0_i32_0 : i32, i32
  }
  func.func @transform_11(%arg0: i32) -> (i32, i32) {
    %c0_i32 = arith.constant 0 : i32
    %c0_i32_0 = arith.constant 0 : i32
    %c0_i32_1 = arith.constant 0 : i32
    return %c0_i32, %c0_i32_0 : i32, i32
  }
}

</mosaic_0001>

<bundles_post_ra>
// kernel: rnn_single_forward.1
= control target key start
LH: loop header
LB: loop body
LE: loop exit
PB: predicated region body
PF: predicated region fallthrough
CT: control target
= control target key end

     0   :  { %v7215_v1 = vmov 0   ;;  %vm121_vm0 = vcmask 130048   ;;  %v7217_v47 = vmov 0.0|0.0   ;;  %vm4478_vm1 = vmmov 0   ;;  %s7203_s1 = inlined_call_operand.vmem [shape: bf16[16,512], index: 1, kind: input, shape index: {}]   ;;  %s7204_s0 = inlined_call_operand.vmem [shape: bf16[64,16], index: 0, kind: input, shape index: {}]   ;;  %s7205_s5 = inlined_call_operand.vmem [shape: bf16[128,512], index: 5, kind: input, shape index: {}]   ;;  %s7206_s2 = inlined_call_operand.vmem [shape: bf16[128,512], index: 2, kind: input, shape index: {}]   ;;  %s7207_s4 = inlined_call_operand.vmem [shape: bf16[128,512], index: 4, kind: input, shape index: {}]   ;;  %s7208_s3 = inlined_call_operand.vmem [shape: f32[1,512], index: 3, kind: input, shape index: {}]   ;;  %s7209_s6 = inlined_call_operand.vmem [shape: f32[1,512], index: 6, kind: input, shape index: {}]   ;;  %s7210_s7 = inlined_call_operand.vmem [shape: f32[128,25], index: 7, kind: input, shape index: {}]   ;;  %s7211_s9 = inlined_call_operand.vmem [shape: f32[25,6], index: 9, kind: input, shape index: {}]   ;;  %s7212_s8 = inlined_call_operand.vmem [shape: f32[1,25], index: 8, kind: input, shape index: {}]   ;;  %s7213_s10 = inlined_call_operand.vmem [shape: f32[1,6], index: 10, kind: input, shape index: {}]   ;;  %s7214_s11 = inlined_call_operand.vmem [shape: f32[8,6], index: 11, kind: output, shape index: {}]  }
   0x1   :  { %v3874_v0 = vld [vmem:[%s7203_s1 + $0x4] ss:$16 sps:$4 sm:$0xff]   ;;  %166 = vmatprep.mubr.bf16.mxu0 %v7215_v1  ;;  %239 = vmatprep.mubr.bf16.mxu1 %v7215_v1  ;;  %v3876_v2 = vld [vmem:[%s7203_s1 + $0xc] ss:$16 sps:$4 sm:$0xff]   ;;  %v3878_v3 = vld [vmem:[%s7203_s1] ss:$16 sps:$4 sm:$0xff]  }
   0x2   :  { %134 = vmatprep.subr.bf16.mxu0 %v3874_v0  ;;  %v3879_v4 = vld [vmem:[%s7203_s1 + $0x8] ss:$16 sps:$4 sm:$0xff]   ;;  %207 = vmatprep.subr.bf16.mxu1 %v3876_v2  ;;  %v3880_v5 = vld [vmem:[%s7204_s0] sm:$0xff]   ;;  %v4566_v7 = vld [vmem:[%s7205_s5 + $0xc] ss:$16 sps:$4 sm:$0xff]   ;;  %vm3430_vm2 = vcmask 1040384  }
   0x3   :  { %135 = vmatpush1.bf16.msra.mxu0 %v3878_v3  ;;  %208 = vmatpush1.bf16.msra.mxu1 %v3879_v4  ;;  %v4561_v6 = vld [vmem:[%s7205_s5 + $0x4] ss:$16 sps:$4 sm:$0xff]   ;;  %v4571_v8 = vld [vmem:[%s7205_s5] ss:$16 sps:$4 sm:$0xff]   ;;  %v4577_v9 = vld [vmem:[%s7205_s5 + $0x8] ss:$16 sps:$4 sm:$0xff]  }
   0x4   :  { %563 = vmatprep.subr.bf16.mxu0 %v4561_v6  ;;  %604 = vmatprep.subr.bf16.mxu1 %v4566_v7  ;;  %v4584_v10 = vld [vmem:[%s7205_s5 + $0x24] ss:$16 sps:$4 sm:$0xff]   ;;  %v4591_v11 = vld [vmem:[%s7205_s5 + $0x2c] ss:$16 sps:$4 sm:$0xff]   ;;  %v4596_v12 = vld [vmem:[%s7205_s5 + $0x20] ss:$16 sps:$4 sm:$0xff]  }
   0x5   :  { %v4601_v13 = vld [vmem:[%s7205_s5 + $0x28] ss:$16 sps:$4 sm:$0xff]   ;;  %v4613_v15 = vld [vmem:[%s7205_s5 + $0x44] ss:$16 sps:$4 sm:$0xff]   ;;  %v4619_v16 = vld [vmem:[%s7205_s5 + $0x4c] ss:$16 sps:$4 sm:$0xff]  }
   0x6   :  { %3518 = vmatmul.mubr.msk.bf16.vlgmr.msra.gmra.mrb[0].mxu0 %vm121_vm0, %v3880_v5  ;;  %3522 = vmatmul.mubr.msk.bf16.vlgmr.msra.gmra.mrb[0].mxu1 %vm121_vm0, %v3880_v5  ;;  %v3893_v14 = vld [vmem:[%s7204_s0 + $0x8] sm:$0xff]   ;;  %v4625_v17 = vld [vmem:[%s7205_s5 + $0x40] ss:$16 sps:$4 sm:$0xff]   ;;  %v4637_v19 = vld [vmem:[%s7205_s5 + $0x64] ss:$16 sps:$4 sm:$0xff]   ;;  %vm4480_vm3 = vmmov 1  }
   0x7   :  { %564 = vmatpush1.bf16.msra.mxu0 %v4571_v8  ;;  %605 = vmatpush1.bf16.msra.mxu1 %v4577_v9  ;;  %v4630_v18 = vld [vmem:[%s7205_s5 + $0x48] ss:$16 sps:$4 sm:$0xff]   ;;  %v4643_v20 = vld [vmem:[%s7205_s5 + $0x6c] ss:$16 sps:$4 sm:$0xff]   ;;  %v4649_v21 = vld [vmem:[%s7205_s5 + $0x60] ss:$16 sps:$4 sm:$0xff]  }
   0x8   :  { %565 = vmatprep.subr.bf16.mxu0 %v4584_v10  ;;  %606 = vmatprep.subr.bf16.mxu1 %v4591_v11  ;;  %v4656_v22 = vld [vmem:[%s7205_s5 + $0x68] ss:$16 sps:$4 sm:$0xff]   ;;  %v4663_v23 = vld [vmem:[%s7205_s5 + $0x84] ss:$16 sps:$4 sm:$0xff]   ;;  %v4670_v24 = vld [vmem:[%s7205_s5 + $0x8c] ss:$16 sps:$4 sm:$0xff]  }
   0x9   :  { %176 = vmatprep.mubr.bf16.mxu0 %v7215_v1  ;;  %249 = vmatprep.mubr.bf16.mxu1 %v7215_v1  ;;  %v3906_v25 = vld [vmem:[%s7204_s0 + $0x10] sm:$0xff]   ;;  %v4687_v27 = vld [vmem:[%s7205_s5 + $0x88] ss:$16 sps:$4 sm:$0xff]   ;;  %v4698_v29 = vld [vmem:[%s7205_s5 + $0xac] ss:$16 sps:$4 sm:$0xff]   ;;  %vm3426_vm5 = vcmask 203776  }
   0xa   :  { %v4680_v26 = vld [vmem:[%s7205_s5 + $0x80] ss:$16 sps:$4 sm:$0xff]   ;;  %v4692_v28 = vld [vmem:[%s7205_s5 + $0xa4] ss:$16 sps:$4 sm:$0xff]   ;;  %v4711_v31 = vld [vmem:[%s7205_s5 + $0xa8] ss:$16 sps:$4 sm:$0xff]  }
   0xb   :  { %566 = vmatpush1.bf16.msra.mxu0 %v4596_v12  ;;  %607 = vmatpush1.bf16.msra.mxu1 %v4601_v13  ;;  %v4706_v30 = vld [vmem:[%s7205_s5 + $0xa0] ss:$16 sps:$4 sm:$0xff]   ;;  %v4718_v32 = vld [vmem:[%s7205_s5 + $0xc4] ss:$16 sps:$4 sm:$0xff]   ;;  %v4725_v33 = vld [vmem:[%s7205_s5 + $0xcc] ss:$16 sps:$4 sm:$0xff]  }
   0xc   :  { %567 = vmatprep.subr.bf16.mxu0 %v4613_v15  ;;  %608 = vmatprep.subr.bf16.mxu1 %v4619_v16  ;;  %v3919_v34 = vld [vmem:[%s7204_s0 + $0x18] sm:$0xff]   ;;  %v4734_v35 = vld [vmem:[%s7205_s5 + $0xc0] ss:$16 sps:$4 sm:$0xff]   ;;  %v4747_v37 = vld [vmem:[%s7205_s5 + $0xe4] ss:$16 sps:$4 sm:$0xff]   ;;  %vm3504_vm6 = vcmask 48128  }
   0xd   :  { %v4740_v36 = vld [vmem:[%s7205_s5 + $0xc8] ss:$16 sps:$4 sm:$0xff]   ;;  %v4753_v38 = vld [vmem:[%s7205_s5 + $0xec] ss:$16 sps:$4 sm:$0xff]   ;;  %v4761_v39 = vld [vmem:[%s7205_s5 + $0xe0] ss:$16 sps:$4 sm:$0xff]  }
   0xe   :  { %3519 = vmatmul.mubr.msk.bf16.gmra.mrb[4].mxu0 %vm121_vm0, %v3893_v14  ;;  %3523 = vmatmul.mubr.msk.bf16.gmra.mrb[4].mxu1 %vm121_vm0, %v3893_v14  ;;  %v4766_v40 = vld [vmem:[%s7205_s5 + $0xe8] ss:$16 sps:$4 sm:$0xff]   ;;  %v4773_v41 = vld [vmem:[%s7206_s2 + $0x4] ss:$16 sps:$4 sm:$0xff]   ;;  %v4780_v42 = vld [vmem:[%s7206_s2 + $0xc] ss:$16 sps:$4 sm:$0xff]  }
   0xf   :  { %568 = vmatpush1.bf16.msra.mxu0 %v4625_v17  ;;  %609 = vmatpush1.bf16.msra.mxu1 %v4630_v18  ;;  %v4786_v43 = vld [vmem:[%s7206_s2] ss:$16 sps:$4 sm:$0xff]   ;;  %v4792_v44 = vld [vmem:[%s7206_s2 + $0x8] ss:$16 sps:$4 sm:$0xff]   ;;  %v4799_v45 = vld [vmem:[%s7206_s2 + $0x24] ss:$16 sps:$4 sm:$0xff]  }
  0x10   :  { %569 = vmatprep.subr.bf16.mxu0 %v4637_v19  ;;  %610 = vmatprep.subr.bf16.mxu1 %v4643_v20  ;;  %v4805_v46 = vld [vmem:[%s7206_s2 + $0x2c] ss:$16 sps:$4 sm:$0xff]   ;;  %v4813_v48 = vld [vmem:[%s7206_s2 + $0x20] ss:$16 sps:$4 sm:$0xff]   ;;  %v4818_v49 = vld [vmem:[%s7206_s2 + $0x28] ss:$16 sps:$4 sm:$0xff]  }
  0x11   :  { %186 = vmatprep.mubr.bf16.mxu0 %v7215_v1  ;;  %259 = vmatprep.mubr.bf16.mxu1 %v7215_v1  ;;  %7573 = vst [vmem:[#allocation6_spill] sm:$0xff] %v4813_v48  ;;  %7574 = vst [vmem:[#allocation7_spill] sm:$0xff] %v4818_v49  ;;  %v4825_v50 = vld [vmem:[%s7206_s2 + $0x44] ss:$16 sps:$4 sm:$0xff]   ;;  %v4831_v51 = vld [vmem:[%s7206_s2 + $0x4c] ss:$16 sps:$4 sm:$0xff]  }
  0x12   :  { %7575 = vst [vmem:[#allocation8_spill] sm:$0xff] %v4825_v50  ;;  %7576 = vst [vmem:[#allocation9_spill] sm:$0xff] %v4831_v51  ;;  %v4837_v52 = vld [vmem:[%s7206_s2 + $0x40] ss:$16 sps:$4 sm:$0xff]   ;;  %v4844_v53 = vld [vmem:[%s7206_s2 + $0x48] ss:$16 sps:$4 sm:$0xff]  }
  0x13   :  { %570 = vmatpush1.bf16.msra.mxu0 %v4649_v21  ;;  %611 = vmatpush1.bf16.msra.mxu1 %v4656_v22  ;;  %7577 = vst [vmem:[#allocation10_spill] sm:$0xff] %v4837_v52  ;;  %7578 = vst [vmem:[#allocation11_spill] sm:$0xff] %v4844_v53  ;;  %v4851_v54 = vld [vmem:[%s7206_s2 + $0x64] ss:$16 sps:$4 sm:$0xff]   ;;  %v4857_v55 = vld [vmem:[%s7206_s2 + $0x6c] ss:$16 sps:$4 sm:$0xff]  }
  0x14   :  { %571 = vmatprep.subr.bf16.mxu0 %v4663_v23  ;;  %612 = vmatprep.subr.bf16.mxu1 %v4670_v24  ;;  %7579 = vst [vmem:[#allocation12_spill] sm:$0xff] %v4851_v54  ;;  %7580 = vst [vmem:[#allocation13_spill] sm:$0xff] %v4857_v55  ;;  %v4863_v56 = vld [vmem:[%s7206_s2 + $0x60] ss:$16 sps:$4 sm:$0xff]   ;;  %v4870_v57 = vld [vmem:[%s7206_s2 + $0x68] ss:$16 sps:$4 sm:$0xff]  }
  0x15   :  { %7581 = vst [vmem:[#allocation14_spill] sm:$0xff] %v4863_v56  ;;  %7582 = vst [vmem:[#allocation15_spill] sm:$0xff] %v4870_v57  ;;  %v4875_v58 = vld [vmem:[%s7206_s2 + $0x84] ss:$16 sps:$4 sm:$0xff]   ;;  %v4881_v59 = vld [vmem:[%s7206_s2 + $0x8c] ss:$16 sps:$4 sm:$0xff]  }
  0x16   :  { %3520 = vmatmul.mubr.msk.bf16.gmra.mrb[8].mxu0 %vm121_vm0, %v3906_v25  ;;  %3524 = vmatmul.mubr.msk.bf16.gmra.mrb[8].mxu1 %vm121_vm0, %v3906_v25  ;;  %7583 = vst [vmem:[#allocation16_spill] sm:$0xff] %v4875_v58  ;;  %7584 = vst [vmem:[#allocation17_spill] sm:$0xff] %v4881_v59  ;;  %v4887_v60 = vld [vmem:[%s7206_s2 + $0x80] ss:$16 sps:$4 sm:$0xff]   ;;  %v4894_v61 = vld [vmem:[%s7206_s2 + $0x88] ss:$16 sps:$4 sm:$0xff]  }
  0x17   :  { %572 = vmatpush1.bf16.msra.mxu0 %v4680_v26  ;;  %613 = vmatpush1.bf16.msra.mxu1 %v4687_v27  ;;  %7585 = vst [vmem:[#allocation18_spill] sm:$0xff] %v4887_v60  ;;  %7586 = vst [vmem:[#allocation19_spill] sm:$0xff] %v4894_v61  ;;  %v4899_v62 = vld [vmem:[%s7206_s2 + $0xa4] ss:$16 sps:$4 sm:$0xff]   ;;  %v4905_v63 = vld [vmem:[%s7206_s2 + $0xac] ss:$16 sps:$4 sm:$0xff]  }
  0x18   :  { %573 = vmatprep.subr.bf16.mxu0 %v4692_v28  ;;  %614 = vmatprep.subr.bf16.mxu1 %v4698_v29  ;;  %7587 = vst [vmem:[#allocation20_spill] sm:$0xff] %v4899_v62  ;;  %7588 = vst [vmem:[#allocation21_spill] sm:$0xff] %v4905_v63  ;;  %v4911_v0 = vld [vmem:[%s7206_s2 + $0xa0] ss:$16 sps:$4 sm:$0xff]   ;;  %v4918_v2 = vld [vmem:[%s7206_s2 + $0xa8] ss:$16 sps:$4 sm:$0xff]  }
  0x19   :  { %196 = vmatprep.mubr.bf16.mxu0 %v7215_v1  ;;  %269 = vmatprep.mubr.bf16.mxu1 %v7215_v1  ;;  %7589 = vst [vmem:[#allocation22_spill] sm:$0xff] %v4911_v0  ;;  %7590 = vst [vmem:[#allocation23_spill] sm:$0xff] %v4918_v2  ;;  %v4923_v3 = vld [vmem:[%s7206_s2 + $0xc4] ss:$16 sps:$4 sm:$0xff]   ;;  %v4929_v4 = vld [vmem:[%s7206_s2 + $0xcc] ss:$16 sps:$4 sm:$0xff]  }
  0x1a   :  { %7591 = vst [vmem:[#allocation24_spill] sm:$0xff] %v4923_v3  ;;  %7592 = vst [vmem:[#allocation25_spill] sm:$0xff] %v4929_v4  ;;  %v4935_v5 = vld [vmem:[%s7206_s2 + $0xc0] ss:$16 sps:$4 sm:$0xff]   ;;  %v4942_v14 = vld [vmem:[%s7206_s2 + $0xc8] ss:$16 sps:$4 sm:$0xff]  }
  0x1b   :  { %574 = vmatpush1.bf16.msra.mxu0 %v4706_v30  ;;  %615 = vmatpush1.bf16.msra.mxu1 %v4711_v31  ;;  %7593 = vst [vmem:[#allocation26_spill] sm:$0xff] %v4935_v5  ;;  %7594 = vst [vmem:[#allocation27_spill] sm:$0xff] %v4942_v14  ;;  %v4947_v25 = vld [vmem:[%s7206_s2 + $0xe4] ss:$16 sps:$4 sm:$0xff]  }
  0x1c   :  { %575 = vmatprep.subr.bf16.mxu0 %v4718_v32  ;;  %616 = vmatprep.subr.bf16.mxu1 %v4725_v33  ;;  %7595 = vst [vmem:[#allocation28_spill] sm:$0xff] %v4947_v25  ;;  %vm3771_vm4 = vmpackc.low %vm3430_vm2, %vm4480_vm3 }
  0x1e   :  { %3521 = vmatmul.mubr.msk.bf16.gmra.mrb[12].mxu0 %vm121_vm0, %v3919_v34  ;;  %3525 = vmatmul.mubr.msk.bf16.gmra.mrb[12].mxu1 %vm121_vm0, %v3919_v34  ;;  %v4953_v34 = vld [vmem:[%s7206_s2 + $0xec] ss:$16 sps:$4 sm:$0xff]  }
  0x1f   :  { %576 = vmatpush1.bf16.msra.mxu0 %v4734_v35  ;;  %617 = vmatpush1.bf16.msra.mxu1 %v4740_v36  ;;  %7596 = vst [vmem:[#allocation29_spill] sm:$0xff] %v4953_v34 }
  0x20   :  { %577 = vmatprep.subr.bf16.mxu0 %v4747_v37  ;;  %618 = vmatprep.subr.bf16.mxu1 %v4753_v38 }
  0x21   :  { %595 = vmatprep.mubr.bf16.mxu0 %v7215_v1  ;;  %636 = vmatprep.mubr.bf16.mxu1 %v7215_v1 }
  0x23   :  { %578 = vmatpush1.bf16.msra.mxu0 %v4761_v39  ;;  %619 = vmatpush1.bf16.msra.mxu1 %v4766_v40 }
  0x24   :  { %806 = vmatprep.subr.bf16.mxu0 %v4773_v41  ;;  %847 = vmatprep.subr.bf16.mxu1 %v4780_v42 }
  0x26   :  { %596 = vmatmul.mubr.bf16.vlgmr.msra.gmra.mrb[16].mxu0 %v7217_v47  ;;  %637 = vmatmul.mubr.bf16.vlgmr.msra.gmra.mrb[16].mxu1 %v7217_v47  ;;  %v4966_v47 = vld [vmem:[%s7206_s2 + $0xe8] ss:$16 sps:$4 sm:$0xff]  }
  0x27   :  { %807 = vmatpush1.bf16.msra.mxu0 %v4786_v43  ;;  %848 = vmatpush1.bf16.msra.mxu1 %v4792_v44  ;;  %7598 = vst [vmem:[#allocation31_spill] sm:$0xff] %v4966_v47 }
  0x28   :  { %808 = vmatprep.subr.bf16.mxu0 %v4799_v45  ;;  %849 = vmatprep.subr.bf16.mxu1 %v4805_v46 }
  0x29   :  { %838 = vmatprep.mubr.bf16.mxu0 %v7215_v1  ;;  %879 = vmatprep.mubr.bf16.mxu1 %v7215_v1  ;;  %v4959_v1 = vld [vmem:[%s7206_s2 + $0xe0] ss:$16 sps:$4 sm:$0xff]  }
  0x2a   :  { %7597 = vst [vmem:[#allocation30_spill] sm:$0xff] %v4959_v1 }
  0x2b   :  { %809 = vmatpush1.bf16.msra.mxu0 %v4813_v48  ;;  %850 = vmatpush1.bf16.msra.mxu1 %v4818_v49 }
  0x2c   :  { %810 = vmatprep.subr.bf16.mxu0 %v4825_v50  ;;  %851 = vmatprep.subr.bf16.mxu1 %v4831_v51 }
  0x2f   :  { %811 = vmatpush1.bf16.msra.mxu0 %v4837_v52  ;;  %852 = vmatpush1.bf16.msra.mxu1 %v4844_v53 }
  0x30   :  { %812 = vmatprep.subr.bf16.mxu0 %v4851_v54  ;;  %853 = vmatprep.subr.bf16.mxu1 %v4857_v55 }
  0x33   :  { %813 = vmatpush1.bf16.msra.mxu0 %v4863_v56  ;;  %854 = vmatpush1.bf16.msra.mxu1 %v4870_v57 }
  0x34   :  { %814 = vmatprep.subr.bf16.mxu0 %v4875_v58  ;;  %855 = vmatprep.subr.bf16.mxu1 %v4881_v59 }
  0x37   :  { %815 = vmatpush1.bf16.msra.mxu0 %v4887_v60  ;;  %856 = vmatpush1.bf16.msra.mxu1 %v4894_v61 }
  0x38   :  { %816 = vmatprep.subr.bf16.mxu0 %v4899_v62  ;;  %857 = vmatprep.subr.bf16.mxu1 %v4905_v63 }
  0x3b   :  { %817 = vmatpush1.bf16.msra.mxu0 %v4911_v0  ;;  %858 = vmatpush1.bf16.msra.mxu1 %v4918_v2  ;;  %v59_v2 = vld [vmem:[%s7208_s3] sm:$0xf] }
  0x3c   :  { %818 = vmatprep.subr.bf16.mxu0 %v4923_v3  ;;  %859 = vmatprep.subr.bf16.mxu1 %v4929_v4  ;;  %v7600_v4 = vmov 0  }
  0x3f   :  { %819 = vmatpush1.bf16.msra.mxu0 %v4935_v5  ;;  %860 = vmatpush1.bf16.msra.mxu1 %v4942_v14  ;;  %v7599_v5 = vmov 0.0|0.0   ;;  %v5012_v14 = vld [vmem:[%s7207_s4 + $0x20] ss:$16 sps:$4 sm:$0xff]  }
  0x40   :  { %820 = vmatprep.subr.bf16.mxu0 %v4947_v25  ;;  %861 = vmatprep.subr.bf16.mxu1 %v4953_v34  ;;  %v4978_v25 = vld [vmem:[%s7207_s4 + $0x4] ss:$16 sps:$4 sm:$0xff]   ;;  %v4983_v34 = vld [vmem:[%s7207_s4 + $0xc] ss:$16 sps:$4 sm:$0xff]   ;;  %7607 = vst [vmem:[#allocation38_spill] sm:$0xff] %v5012_v14 }
  0x41   :  { %7601 = vst [vmem:[#allocation32_spill] sm:$0xff] %v4978_v25  ;;  %7602 = vst [vmem:[#allocation33_spill] sm:$0xff] %v4983_v34 }
  0x43   :  { %821 = vmatpush1.bf16.msra.mxu0 %v4959_v1  ;;  %862 = vmatpush1.bf16.msra.mxu1 %v4966_v47  ;;  %v4994_v47 = vld [vmem:[%s7207_s4 + $0x8] ss:$16 sps:$4 sm:$0xff]   ;;  %v5007_v1 = vld [vmem:[%s7207_s4 + $0x2c] ss:$16 sps:$4 sm:$0xff]  }
  0x44   :  { %1077 = vmatprep.subr.bf16.mxu0 %v4978_v25  ;;  %7604 = vst [vmem:[#allocation35_spill] sm:$0xff] %v4994_v47  ;;  %1118 = vmatprep.subr.bf16.mxu1 %v4983_v34  ;;  %v5002_v25 = vld [vmem:[%s7207_s4 + $0x24] ss:$16 sps:$4 sm:$0xff]   ;;  %7606 = vst [vmem:[#allocation37_spill] sm:$0xff] %v5007_v1  ;;  %v5031_v34 = vld [vmem:[%s7207_s4 + $0x4c] ss:$16 sps:$4 sm:$0xff]  }
  0x45   :  { %7605 = vst [vmem:[#allocation36_spill] sm:$0xff] %v5002_v25  ;;  %7610 = vst [vmem:[#allocation41_spill] sm:$0xff] %v5031_v34 }
  0x46   :  { %839 = vmatmul.mubr.bf16.vlgmr.msra.gmra.mrb[20].mxu0 %v7599_v5  ;;  %880 = vmatmul.mubr.bf16.vlgmr.msra.gmra.mrb[20].mxu1 %v7599_v5  ;;  %v4989_v5 = vld [vmem:[%s7207_s4] ss:$16 sps:$4 sm:$0xff]  }
  0x47   :  { %1109 = vmatprep.mubr.bf16.mxu0 %v7600_v4  ;;  %1150 = vmatprep.mubr.bf16.mxu1 %v7600_v4  ;;  %7603 = vst [vmem:[#allocation34_spill] sm:$0xff] %v4989_v5 }
  0x48   :  { %1078 = vmatpush1.bf16.msra.mxu0 %v4989_v5  ;;  %1119 = vmatpush1.bf16.msra.mxu1 %v4994_v47  ;;  %v5017_v5 = vld [vmem:[%s7207_s4 + $0x28] ss:$16 sps:$4 sm:$0xff]   ;;  %v5026_v47 = vld [vmem:[%s7207_s4 + $0x44] ss:$16 sps:$4 sm:$0xff]  }
  0x49   :  { %7608 = vst [vmem:[#allocation39_spill] sm:$0xff] %v5017_v5  ;;  %1079 = vmatprep.subr.bf16.mxu0 %v5002_v25  ;;  %1120 = vmatprep.subr.bf16.mxu1 %v5007_v1  ;;  %7609 = vst [vmem:[#allocation40_spill] sm:$0xff] %v5026_v47  ;;  %v5036_v25 = vld [vmem:[%s7207_s4 + $0x40] ss:$16 sps:$4 sm:$0xff]   ;;  %v5055_v1 = vld [vmem:[%s7207_s4 + $0x6c] ss:$16 sps:$4 sm:$0xff]  }
  0x4a   :  { %7611 = vst [vmem:[#allocation42_spill] sm:$0xff] %v5036_v25  ;;  %7614 = vst [vmem:[#allocation45_spill] sm:$0xff] %v5055_v1 }
  0x4c   :  { %1080 = vmatpush1.bf16.msra.mxu0 %v5012_v14  ;;  %1121 = vmatpush1.bf16.msra.mxu1 %v5017_v5  ;;  %v5041_v14 = vld [vmem:[%s7207_s4 + $0x48] ss:$16 sps:$4 sm:$0xff]   ;;  %v5050_v5 = vld [vmem:[%s7207_s4 + $0x64] ss:$16 sps:$4 sm:$0xff]  }
  0x4d   :  { %7612 = vst [vmem:[#allocation43_spill] sm:$0xff] %v5041_v14  ;;  %1081 = vmatprep.subr.bf16.mxu0 %v5026_v47  ;;  %1122 = vmatprep.subr.bf16.mxu1 %v5031_v34  ;;  %7613 = vst [vmem:[#allocation44_spill] sm:$0xff] %v5050_v5  ;;  %v5060_v47 = vld [vmem:[%s7207_s4 + $0x60] ss:$16 sps:$4 sm:$0xff]   ;;  %v5079_v34 = vld [vmem:[%s7207_s4 + $0x8c] ss:$16 sps:$4 sm:$0xff]  }
  0x4e   :  { %7615 = vst [vmem:[#allocation46_spill] sm:$0xff] %v5060_v47  ;;  %7618 = vst [vmem:[#allocation49_spill] sm:$0xff] %v5079_v34 }
  0x50   :  { %1082 = vmatpush1.bf16.msra.mxu0 %v5036_v25  ;;  %1123 = vmatpush1.bf16.msra.mxu1 %v5041_v14  ;;  %v5065_v25 = vld [vmem:[%s7207_s4 + $0x68] ss:$16 sps:$4 sm:$0xff]   ;;  %v5074_v14 = vld [vmem:[%s7207_s4 + $0x84] ss:$16 sps:$4 sm:$0xff]  }
  0x51   :  { %7616 = vst [vmem:[#allocation47_spill] sm:$0xff] %v5065_v25  ;;  %1083 = vmatprep.subr.bf16.mxu0 %v5050_v5  ;;  %1124 = vmatprep.subr.bf16.mxu1 %v5055_v1  ;;  %7617 = vst [vmem:[#allocation48_spill] sm:$0xff] %v5074_v14  ;;  %v5084_v5 = vld [vmem:[%s7207_s4 + $0x80] ss:$16 sps:$4 sm:$0xff]   ;;  %v5101_v1 = vld [vmem:[%s7207_s4 + $0xac] ss:$16 sps:$4 sm:$0xff]  }
  0x52   :  { %7619 = vst [vmem:[#allocation50_spill] sm:$0xff] %v5084_v5  ;;  %7622 = vst [vmem:[#allocation53_spill] sm:$0xff] %v5101_v1 }
  0x54   :  { %1084 = vmatpush1.bf16.msra.mxu0 %v5060_v47  ;;  %1125 = vmatpush1.bf16.msra.mxu1 %v5065_v25  ;;  %v5089_v47 = vld [vmem:[%s7207_s4 + $0x88] ss:$16 sps:$4 sm:$0xff]   ;;  %v5096_v25 = vld [vmem:[%s7207_s4 + $0xa4] ss:$16 sps:$4 sm:$0xff]  }
  0x55   :  { %7620 = vst [vmem:[#allocation51_spill] sm:$0xff] %v5089_v47  ;;  %1085 = vmatprep.subr.bf16.mxu0 %v5074_v14  ;;  %1126 = vmatprep.subr.bf16.mxu1 %v5079_v34  ;;  %7621 = vst [vmem:[#allocation52_spill] sm:$0xff] %v5096_v25  ;;  %v5108_v14 = vld [vmem:[%s7207_s4 + $0xa0] ss:$16 sps:$4 sm:$0xff]   ;;  %v5113_v34 = vld [vmem:[%s7207_s4 + $0xa8] ss:$16 sps:$4 sm:$0xff]  }
  0x56   :  { %7623 = vst [vmem:[#allocation54_spill] sm:$0xff] %v5108_v14  ;;  %7624 = vst [vmem:[#allocation55_spill] sm:$0xff] %v5113_v34 }
  0x58   :  { %1086 = vmatpush1.bf16.msra.mxu0 %v5084_v5  ;;  %1127 = vmatpush1.bf16.msra.mxu1 %v5089_v47  ;;  %v5120_v5 = vld [vmem:[%s7207_s4 + $0xc4] ss:$16 sps:$4 sm:$0xff]   ;;  %v5125_v47 = vld [vmem:[%s7207_s4 + $0xcc] ss:$16 sps:$4 sm:$0xff]  }
  0x59   :  { %1087 = vmatprep.subr.bf16.mxu0 %v5096_v25  ;;  %1128 = vmatprep.subr.bf16.mxu1 %v5101_v1  ;;  %7625 = vst [vmem:[#allocation56_spill] sm:$0xff] %v5120_v5  ;;  %7626 = vst [vmem:[#allocation57_spill] sm:$0xff] %v5125_v47  ;;  %v5132_v25 = vld [vmem:[%s7207_s4 + $0xc0] ss:$16 sps:$4 sm:$0xff]   ;;  %v5137_v1 = vld [vmem:[%s7207_s4 + $0xc8] ss:$16 sps:$4 sm:$0xff]  }
  0x5a   :  { %7627 = vst [vmem:[#allocation58_spill] sm:$0xff] %v5132_v25  ;;  %7628 = vst [vmem:[#allocation59_spill] sm:$0xff] %v5137_v1 }
  0x5c   :  { %1088 = vmatpush1.bf16.msra.mxu0 %v5108_v14  ;;  %1129 = vmatpush1.bf16.msra.mxu1 %v5113_v34  ;;  %v5144_v14 = vld [vmem:[%s7207_s4 + $0xe4] ss:$16 sps:$4 sm:$0xff]   ;;  %v5149_v34 = vld [vmem:[%s7207_s4 + $0xec] ss:$16 sps:$4 sm:$0xff]  }
  0x5d   :  { %1089 = vmatprep.subr.bf16.mxu0 %v5120_v5  ;;  %1130 = vmatprep.subr.bf16.mxu1 %v5125_v47  ;;  %7629 = vst [vmem:[#allocation60_spill] sm:$0xff] %v5144_v14  ;;  %7630 = vst [vmem:[#allocation61_spill] sm:$0xff] %v5149_v34  ;;  %v5156_v5 = vld [vmem:[%s7207_s4 + $0xe0] ss:$16 sps:$4 sm:$0xff]   ;;  %v5161_v47 = vld [vmem:[%s7207_s4 + $0xe8] ss:$16 sps:$4 sm:$0xff]  }
  0x5e   :  { %7631 = vst [vmem:[#allocation62_spill] sm:$0xff] %v5156_v5  ;;  %7632 = vst [vmem:[#allocation63_spill] sm:$0xff] %v5161_v47 }
  0x60   :  { %1090 = vmatpush1.bf16.msra.mxu0 %v5132_v25  ;;  %1131 = vmatpush1.bf16.msra.mxu1 %v5137_v1  ;;  %v61_v1 = vlaneseq }
  0x61   :  { %1091 = vmatprep.subr.bf16.mxu0 %v5144_v14  ;;  %1132 = vmatprep.subr.bf16.mxu1 %v5149_v34 }
  0x62   :  { %v5169_v25 = vshrl.u32 %v61_v1, 7 }
  0x64   :  { %1092 = vmatpush1.bf16.msra.mxu0 %v5156_v5  ;;  %1133 = vmatpush1.bf16.msra.mxu1 %v5161_v47  ;;  %v7297_v3 = vsub.s32 0, %v5169_v25  ;;  %v7301_v14 = vsub.s32 2, %v5169_v25  ;;  %v7304_v34 = vsub.s32 3, %v5169_v25  ;;  %v7306_v5 = vsub.s32 1, %v5169_v25 }
  0x65   :  { %1188 = vmatprep.subr.bf16.mxu0 %v4561_v6  ;;  %1229 = vmatprep.subr.bf16.mxu1 %v4566_v7 }
  0x66   :  { %v5180_v6 = vrot.slane %v59_v2, %v7297_v3  ;;  %v5186_v1 = vrot.slane %v59_v2, %v7301_v14  ;;  %v5190_v63 = vrot.slane %v59_v2, %v7304_v34  ;;  %v68_v62 = vrot.slane %v59_v2, %v7306_v5 }
  0xd9   :  { %v5182_v7 = vpop.f32.mrb[0].mxu0  ;;  %v241_v0 = vpop.f32.mrb[0].mxu1 }
  0xda   :  { %v170_v47 = vpop.f32.mrb[1].mxu0  ;;  %v243_v60 = vpop.f32.mrb[1].mxu1 }
  0xdb   :  { %v172_v61 = vpop.f32.mrb[2].mxu0  ;;  %v245_v58 = vpop.f32.mrb[2].mxu1 }
  0xdc   :  { %v5195_v3 = vadd.f32 %v172_v61, %v5180_v6  ;;  %v174_v59 = vpop.f32.mrb[3].mxu0  ;;  %v5200_v14 = vadd.f32 %v245_v58, %v5186_v1  ;;  %v247_v56 = vpop.f32.mrb[3].mxu1 }
  0xdd   :  { %v5197_v57 = vadd.f32 %v174_v59, %v68_v62  ;;  %v5203_v55 = vadd.f32 %v247_v56, %v5190_v63 }
  0xde   :  { %7633 = vst [vmem:[#allocation64_spill] sm:$0xff] %v5195_v3  ;;  %7635 = vst [vmem:[#allocation66_spill] sm:$0xff] %v5200_v14 }
  0xdf   :  { %7634 = vst [vmem:[#allocation65_spill] sm:$0xff] %v5197_v57  ;;  %7636 = vst [vmem:[#allocation67_spill] sm:$0xff] %v5203_v55 }
  0xe1   :  { %v178_v34 = vpop.f32.mrb[4].mxu0  ;;  %v251_v5 = vpop.f32.mrb[4].mxu1 }
  0xe2   :  { %v5206_v54 = vadd.f32 %v178_v34, %v5180_v6  ;;  %v180_v2 = vpop.f32.mrb[5].mxu0  ;;  %v5211_v3 = vadd.f32 %v251_v5, %v5186_v1  ;;  %v253_v59 = vpop.f32.mrb[5].mxu1 }
  0xe3   :  { %v5208_v53 = vadd.f32 %v180_v2, %v68_v62  ;;  %v182_v61 = vpop.f32.mrb[6].mxu0  ;;  %v5217_v56 = vadd.f32 %v253_v59, %v5190_v63  ;;  %v255_v55 = vpop.f32.mrb[6].mxu1 }
  0xe4   :  { %7637 = vst [vmem:[#allocation68_spill] sm:$0xff] %v5206_v54  ;;  %7639 = vst [vmem:[#allocation70_spill] sm:$0xff] %v5211_v3  ;;  %v5214_v58 = vadd.f32 %v182_v61, %v5180_v6  ;;  %v184_v57 = vpop.f32.mrb[7].mxu0  ;;  %v5222_v34 = vadd.f32 %v255_v55, %v5186_v1  ;;  %v257_v2 = vpop.f32.mrb[7].mxu1 }
  0xe5   :  { %7638 = vst [vmem:[#allocation69_spill] sm:$0xff] %v5208_v53  ;;  %7641 = vst [vmem:[#allocation72_spill] sm:$0xff] %v5217_v56  ;;  %v5219_v14 = vadd.f32 %v184_v57, %v68_v62  ;;  %v5225_v53 = vadd.f32 %v257_v2, %v5190_v63 }
  0xe6   :  { %7640 = vst [vmem:[#allocation71_spill] sm:$0xff] %v5214_v58  ;;  %7643 = vst [vmem:[#allocation74_spill] sm:$0xff] %v5222_v34 }
  0xe7   :  { %7642 = vst [vmem:[#allocation73_spill] sm:$0xff] %v5219_v14  ;;  %7644 = vst [vmem:[#allocation75_spill] sm:$0xff] %v5225_v53 }
  0xe9   :  { %v188_v5 = vpop.f32.mrb[8].mxu0  ;;  %v261_v58 = vpop.f32.mrb[8].mxu1 }
  0xea   :  { %v5228_v3 = vadd.f32 %v188_v5, %v5180_v6  ;;  %v190_v61 = vpop.f32.mrb[9].mxu0  ;;  %v5233_v56 = vadd.f32 %v261_v58, %v5186_v1  ;;  %v263_v57 = vpop.f32.mrb[9].mxu1 }
  0xeb   :  { %v5230_v54 = vadd.f32 %v190_v61, %v68_v62  ;;  %v192_v59 = vpop.f32.mrb[10].mxu0  ;;  %v5239_v2 = vadd.f32 %v263_v57, %v5190_v63  ;;  %v265_v53 = vpop.f32.mrb[10].mxu1 }
  0xec   :  { %7645 = vst [vmem:[#allocation76_spill] sm:$0xff] %v5228_v3  ;;  %7647 = vst [vmem:[#allocation78_spill] sm:$0xff] %v5233_v56  ;;  %v5236_v55 = vadd.f32 %v192_v59, %v5180_v6  ;;  %v194_v14 = vpop.f32.mrb[11].mxu0  ;;  %v5244_v5 = vadd.f32 %v265_v53, %v5186_v1  ;;  %v267_v61 = vpop.f32.mrb[11].mxu1 }
  0xed   :  { %7646 = vst [vmem:[#allocation77_spill] sm:$0xff] %v5230_v54  ;;  %7649 = vst [vmem:[#allocation80_spill] sm:$0xff] %v5239_v2  ;;  %v5241_v34 = vadd.f32 %v194_v14, %v68_v62  ;;  %v5247_v54 = vadd.f32 %v267_v61, %v5190_v63 }
  0xee   :  { %7648 = vst [vmem:[#allocation79_spill] sm:$0xff] %v5236_v55  ;;  %7651 = vst [vmem:[#allocation82_spill] sm:$0xff] %v5244_v5 }
  0xef   :  { %7650 = vst [vmem:[#allocation81_spill] sm:$0xff] %v5241_v34  ;;  %7652 = vst [vmem:[#allocation83_spill] sm:$0xff] %v5247_v54 }
  0xf1   :  { %v198_v58 = vpop.f32.mrb[12].mxu0  ;;  %v271_v55 = vpop.f32.mrb[12].mxu1 }
  0xf2   :  { %v5250_v56 = vadd.f32 %v198_v58, %v5180_v6  ;;  %v200_v59 = vpop.f32.mrb[13].mxu0  ;;  %v5255_v2 = vadd.f32 %v271_v55, %v5186_v1  ;;  %v273_v14 = vpop.f32.mrb[13].mxu1  ;;  %v169_v55 = vadd.f32 %v5182_v7, %v5180_v6 }
  0xf3   :  { %v5252_v3 = vadd.f32 %v200_v59, %v68_v62  ;;  %v202_v57 = vpop.f32.mrb[14].mxu0  ;;  %v5261_v61 = vadd.f32 %v273_v14, %v5190_v63  ;;  %v275_v54 = vpop.f32.mrb[14].mxu1  ;;  %v244_v14 = vadd.f32 %v243_v60, %v5190_v63 }
  0xf4   :  { %7653 = vst [vmem:[#allocation84_spill] sm:$0xff] %v5250_v56  ;;  %7655 = vst [vmem:[#allocation86_spill] sm:$0xff] %v5255_v2  ;;  %v5258_v53 = vadd.f32 %v202_v57, %v5180_v6  ;;  %v204_v34 = vpop.f32.mrb[15].mxu0  ;;  %v5266_v58 = vadd.f32 %v275_v54, %v5186_v1  ;;  %v277_v59 = vpop.f32.mrb[15].mxu1  ;;  %v171_v2 = vadd.f32 %v170_v47, %v68_v62 }
  0xf5   :  { %7654 = vst [vmem:[#allocation85_spill] sm:$0xff] %v5252_v3  ;;  %7657 = vst [vmem:[#allocation88_spill] sm:$0xff] %v5261_v61  ;;  %v5263_v5 = vadd.f32 %v204_v34, %v68_v62  ;;  %v5269_v3 = vadd.f32 %v277_v59, %v5190_v63  ;;  %v242_v57 = vadd.f32 %v241_v0, %v5186_v1 }
  0xf6   :  { %7656 = vst [vmem:[#allocation87_spill] sm:$0xff] %v5258_v53  ;;  %7659 = vst [vmem:[#allocation90_spill] sm:$0xff] %v5266_v58 }
  0xf7   :  { %7658 = vst [vmem:[#allocation89_spill] sm:$0xff] %v5263_v5  ;;  %7660 = vst [vmem:[#allocation91_spill] sm:$0xff] %v5269_v3 }
 0x119   :  { %v840_v53 = vpop.f32.mrb[20].mxu0  ;;  %v881_v56 = vpop.f32.mrb[20].mxu1 }
 0x11a   :  { %v888_v61 = vadd.f32 %v840_v53, %v169_v55  ;;  %v842_v34 = vpop.f32.mrb[21].mxu0  ;;  %v890_v5 = vadd.f32 %v881_v56, %v242_v57  ;;  %v883_v54 = vpop.f32.mrb[21].mxu1 }
 0x11b   :  { %v889_v52 = vadd.f32 %v842_v34, %v171_v2  ;;  %v844_v58 = vpop.f32.mrb[22].mxu0  ;;  %v891_v50 = vadd.f32 %v883_v54, %v244_v14  ;;  %v885_v3 = vpop.f32.mrb[22].mxu1  ;;  %v7666_v54 = vld [vmem:[#allocation6_spill] sm:$0xff] }
 0x11c   :  { %v3590_v51 = vmul.f32 -1.442695, %v888_v61  ;;  %v845_v59 = vpop.f32.mrb[23].mxu0  ;;  %v886_v48 = vpop.f32.mrb[23].mxu1 }
 0x11d   :  { %v3591_v49 = vmul.f32 -1.442695, %v889_v52  ;;  %v3592_v47 = vmul.f32 -1.442695, %v891_v50  ;;  %v7667_v59 = vld [vmem:[#allocation7_spill] sm:$0xff] }
 0x11e   :  { %4028 = vpow2.f32 %v3590_v51 }
 0x11f   :  { %4030 = vpow2.f32 %v3591_v49 }
 0x120   :  { %4032 = vpow2.f32 %v3592_v47  ;;  %v7668_v47 = vld [vmem:[#allocation8_spill] sm:$0xff] }
 0x121   :  { %4034 = vtanh.f32 %v890_v5 }
 0x128   :  { %v4029_v62 = vpop.eup %4028 }
 0x129   :  { %v4031_v0 = vpop.eup %4030  ;;  %v895_v6 = vadd.f32 1.0, %v4029_v62  ;;  %v7669_v62 = vld [vmem:[#allocation9_spill] sm:$0xff] }
 0x12a   :  { %v901_v60 = vadd.f32 1.0, %v4031_v0  ;;  %v4033_v63 = vpop.eup %4032  ;;  %v7670_v0 = vld [vmem:[#allocation10_spill] sm:$0xff] }
 0x12b   :  { %4036 = vrcp.f32 %v895_v6  ;;  %v4035_v7 = vpop.eup %4034  ;;  %v908_v53 = vadd.f32 1.0, %v4033_v63  ;;  %v7675_v6 = vld [vmem:[#allocation15_spill] sm:$0xff]  ;;  %v7677_v63 = vld [vmem:[#allocation17_spill] sm:$0xff] }
 0x12c   :  { %4038 = vrcp.f32 %v901_v60  ;;  %v7676_v60 = vld [vmem:[#allocation16_spill] sm:$0xff] }
 0x12d   :  { %4040 = vrcp.f32 %v908_v53  ;;  %v7682_v53 = vld [vmem:[#allocation22_spill] sm:$0xff] }
 0x135   :  { %v4037_v1 = vpop.eup %4036 }
 0x136   :  { %v4039_v56 = vpop.eup %4038  ;;  %v912_v2 = vmul.f32 %v4037_v1, %v4035_v7  ;;  %v7678_v7 = vld [vmem:[#allocation18_spill] sm:$0xff]  ;;  %v7679_v1 = vld [vmem:[#allocation19_spill] sm:$0xff] }
 0x137   :  { %v911_v3 = vmul.f32 0.0, %v4039_v56  ;;  %v4041_v48 = vpop.eup %4040  ;;  %v7680_v56 = vld [vmem:[#allocation20_spill] sm:$0xff] }
 0x139   :  { %v5275_v52 = vadd.f32 %v912_v2, %v911_v3  ;;  %v7681_v2 = vld [vmem:[#allocation21_spill] sm:$0xff]  ;;  %v7683_v3 = vld [vmem:[#allocation23_spill] sm:$0xff] }
 0x13b   :  { %4042 = vtanh.f32 %v5275_v52 }
 0x145   :  { %v4043_v49 = vpop.eup %4042 }
 0x146   :  { %v915_v50 = vmul.f32 %v4043_v49, %v4041_v48  ;;  %v7684_v48 = vld [vmem:[#allocation24_spill] sm:$0xff]  ;;  %v7685_v49 = vld [vmem:[#allocation25_spill] sm:$0xff] }
 0x148   :  { %v5278_v51 = vpack.c.bf16 %v915_v50, %v915_v50  ;;  %v7686_v50 = vld [vmem:[#allocation26_spill] sm:$0xff] }
 0x14a   :  { %1110 = vmatmul.mubr.bf16.vlgmr.msra.gmra.mrb[16].mxu0 %v5278_v51  ;;  %1151 = vmatmul.mubr.bf16.vlgmr.msra.gmra.mrb[16].mxu1 %v5278_v51 }
 0x14b   :  { %1189 = vmatpush1.bf16.msra.mxu0 %v4571_v8  ;;  %1230 = vmatpush1.bf16.msra.mxu1 %v4577_v9  ;;  %v376_v8 = vld [vmem:[%s7209_s6] sm:$0xf]  ;;  %v7661_v9 = vsub.s32 0, %v5169_v25 }
 0x14c   :  { %1190 = vmatprep.subr.bf16.mxu0 %v4584_v10  ;;  %1231 = vmatprep.subr.bf16.mxu1 %v4591_v11  ;;  %v7663_v11 = vsub.s32 1, %v5169_v25 }
 0x14d   :  { %1220 = vmatprep.mubr.bf16.mxu0 %v7600_v4  ;;  %1261 = vmatprep.mubr.bf16.mxu1 %v7600_v4  ;;  %v5321_v10 = vrot.slane %v376_v8, %v7661_v9  ;;  %v7688_v9 = vld [vmem:[#allocation28_spill] sm:$0xff] }
 0x14f   :  { %1191 = vmatpush1.bf16.msra.mxu0 %v4596_v12  ;;  %1232 = vmatpush1.bf16.msra.mxu1 %v4601_v13  ;;  %7662 = vst [vmem:[#allocation92_spill] sm:$0xff] %v5321_v10  ;;  %v5325_v12 = vrot.slane %v376_v8, %v7663_v11  ;;  %v7689_v11 = vld [vmem:[#allocation29_spill] sm:$0xff] }
 0x150   :  { %1192 = vmatprep.subr.bf16.mxu0 %v4613_v15  ;;  %1233 = vmatprep.subr.bf16.mxu1 %v4619_v16 }
 0x153   :  { %1193 = vmatpush1.bf16.msra.mxu0 %v4625_v17  ;;  %1234 = vmatpush1.bf16.msra.mxu1 %v4630_v18 }
 0x154   :  { %1194 = vmatprep.subr.bf16.mxu0 %v4637_v19  ;;  %1235 = vmatprep.subr.bf16.mxu1 %v4643_v20 }
 0x157   :  { %1195 = vmatpush1.bf16.msra.mxu0 %v4649_v21  ;;  %1236 = vmatpush1.bf16.msra.mxu1 %v4656_v22 }
 0x158   :  { %1196 = vmatprep.subr.bf16.mxu0 %v4663_v23  ;;  %1237 = vmatprep.subr.bf16.mxu1 %v4670_v24 }
 0x15b   :  { %1197 = vmatpush1.bf16.msra.mxu0 %v4680_v26  ;;  %1238 = vmatpush1.bf16.msra.mxu1 %v4687_v27  ;;  %v7664_v27 = vsub.s32 3, %v5169_v25 }
 0x15c   :  { %1198 = vmatprep.subr.bf16.mxu0 %v4692_v28  ;;  %1239 = vmatprep.subr.bf16.mxu1 %v4698_v29 }
 0x15d   :  { %v5331_v28 = vrot.slane %v376_v8, %v7664_v27  ;;  %v7703_v27 = vld [vmem:[#allocation43_spill] sm:$0xff] }
 0x15f   :  { %1199 = vmatpush1.bf16.msra.mxu0 %v4706_v30  ;;  %1240 = vmatpush1.bf16.msra.mxu1 %v4711_v31  ;;  %v7665_v30 = vsub.s32 2, %v5169_v25 }
 0x160   :  { %1200 = vmatprep.subr.bf16.mxu0 %v4718_v32  ;;  %1241 = vmatprep.subr.bf16.mxu1 %v4725_v33 }
 0x161   :  { %v5336_v31 = vrot.slane %v376_v8, %v7665_v30  ;;  %v7687_v8 = vld [vmem:[#allocation27_spill] sm:$0xff]  ;;  %v7705_v30 = vld [vmem:[#allocation45_spill] sm:$0xff] }
 0x163   :  { %1201 = vmatpush1.bf16.msra.mxu0 %v4734_v35  ;;  %1242 = vmatpush1.bf16.msra.mxu1 %v4740_v36 }
 0x164   :  { %1202 = vmatprep.subr.bf16.mxu0 %v4747_v37  ;;  %1243 = vmatprep.subr.bf16.mxu1 %v4753_v38 }
 0x167   :  { %1203 = vmatpush1.bf16.msra.mxu0 %v4761_v39  ;;  %1244 = vmatpush1.bf16.msra.mxu1 %v4766_v40 }
 0x168   :  { %1270 = vmatprep.subr.bf16.mxu0 %v4773_v41  ;;  %1311 = vmatprep.subr.bf16.mxu1 %v4780_v42 }
 0x21d   :  { %v1111_v13 = vpop.f32.mrb[16].mxu0  ;;  %v1152_v15 = vpop.f32.mrb[16].mxu1 }
 0x21e   :  { %v3773_v16 = vadd.f32 %v1111_v13, %v5321_v10  ;;  %v1113_v17 = vpop.f32.mrb[17].mxu0  ;;  %v1154_v18 = vpop.f32.mrb[17].mxu1  ;;  %v3775_v33 = vadd.f32 %v1152_v15, %v5336_v31  ;;  %v7690_v13 = vld [vmem:[#allocation30_spill] sm:$0xff]  ;;  %v7691_v15 = vld [vmem:[#allocation31_spill] sm:$0xff] }
 0x21f   :  { %v3774_v19 = vadd.f32 %v1113_v17, %v5325_v12  ;;  %v1115_v20 = vpop.f32.mrb[18].mxu0  ;;  %v1156_v21 = vpop.f32.mrb[18].mxu1  ;;  %v3776_v29 = vadd.f32 %v1154_v18, %v5331_v28  ;;  %v7693_v17 = vld [vmem:[#allocation33_spill] sm:$0xff]  ;;  %v7694_v18 = vld [vmem:[#allocation34_spill] sm:$0xff] }
 0x220   :  { %v3625_v22 = vmul.f32 -1.442695, %v3773_v16  ;;  %v1116_v23 = vpop.f32.mrb[19].mxu0  ;;  %v1157_v24 = vpop.f32.mrb[19].mxu1  ;;  %v7692_v16 = vld [vmem:[#allocation32_spill] sm:$0xff]  ;;  %v7697_v21 = vld [vmem:[#allocation37_spill] sm:$0xff] }
 0x221   :  { %v3626_v26 = vmul.f32 -1.442695, %v3774_v19  ;;  %v3627_v32 = vmul.f32 -1.442695, %v3776_v29  ;;  %v7695_v19 = vld [vmem:[#allocation35_spill] sm:$0xff]  ;;  %v7696_v20 = vld [vmem:[#allocation36_spill] sm:$0xff] }
 0x222   :  { %4044 = vpow2.f32 %v3625_v22  ;;  %v7698_v22 = vld [vmem:[#allocation38_spill] sm:$0xff]  ;;  %v7699_v23 = vld [vmem:[#allocation39_spill] sm:$0xff]  ;;  %v7700_v24 = vld [vmem:[#allocation40_spill] sm:$0xff] }
 0x223   :  { %4046 = vpow2.f32 %v3626_v26  ;;  %v7701_v26 = vld [vmem:[#allocation41_spill] sm:$0xff]  ;;  %v7704_v29 = vld [vmem:[#allocation44_spill] sm:$0xff] }
 0x224   :  { %4048 = vpow2.f32 %v3627_v32  ;;  %v7706_v32 = vld [vmem:[#allocation46_spill] sm:$0xff] }
 0x225   :  { %4050 = vtanh.f32 %v3775_v33  ;;  %v7707_v33 = vld [vmem:[#allocation47_spill] sm:$0xff] }
 0x22c   :  { %v4045_v35 = vpop.eup %4044 }
 0x22d   :  { %v4047_v36 = vpop.eup %4046  ;;  %v1166_v37 = vadd.f32 1.0, %v4045_v35  ;;  %v7708_v35 = vld [vmem:[#allocation48_spill] sm:$0xff] }
 0x22e   :  { %v1172_v38 = vadd.f32 1.0, %v4047_v36  ;;  %v4049_v39 = vpop.eup %4048  ;;  %v7709_v36 = vld [vmem:[#allocation49_spill] sm:$0xff] }
 0x22f   :  { %4052 = vrcp.f32 %v1166_v37  ;;  %v4051_v40 = vpop.eup %4050  ;;  %v1179_v61 = vadd.f32 1.0, %v4049_v39  ;;  %v7710_v37 = vld [vmem:[#allocation50_spill] sm:$0xff]  ;;  %v7712_v39 = vld [vmem:[#allocation52_spill] sm:$0xff] }
 0x230   :  { %4054 = vrcp.f32 %v1172_v38  ;;  %v7711_v38 = vld [vmem:[#allocation51_spill] sm:$0xff] }
 0x231   :  { %4056 = vrcp.f32 %v1179_v61  ;;  %v7717_v61 = vld [vmem:[#allocation57_spill] sm:$0xff] }
 0x239   :  { %v4053_v41 = vpop.eup %4052 }
 0x23a   :  { %v4055_v42 = vpop.eup %4054  ;;  %v1183_v5 = vmul.f32 %v4053_v41, %v4051_v40  ;;  %v7713_v40 = vld [vmem:[#allocation53_spill] sm:$0xff]  ;;  %v7714_v41 = vld [vmem:[#allocation54_spill] sm:$0xff] }
 0x23b   :  { %v1182_v25 = vmul.f32 0.0, %v4055_v42  ;;  %v4057_v55 = vpop.eup %4056  ;;  %v7715_v42 = vld [vmem:[#allocation55_spill] sm:$0xff] }
 0x23d   :  { %v5339_v58 = vadd.f32 %v1183_v5, %v1182_v25  ;;  %v7716_v5 = vld [vmem:[#allocation56_spill] sm:$0xff]  ;;  %v7718_v25 = vld [vmem:[#allocation58_spill] sm:$0xff] }
 0x23f   :  { %4058 = vtanh.f32 %v5339_v58 }
 0x249   :  { %v4059_v57 = vpop.eup %4058 }
 0x24a   :  { %v1186_v14 = vmul.f32 %v4059_v57, %v4057_v55  ;;  %v7719_v55 = vld [vmem:[#allocation59_spill] sm:$0xff]  ;;  %v7720_v57 = vld [vmem:[#allocation60_spill] sm:$0xff] }
 0x24c   :  { %v1187_v34 = vpack.c.bf16 %v1186_v14, %v1186_v14  ;;  %v7721_v14 = vld [vmem:[#allocation61_spill] sm:$0xff] }
 0x24e   :  { %1221 = vmatmul.mubr.bf16.vlgmr.msra.gmra.mrb[24].mxu0 %v1187_v34  ;;  %1262 = vmatmul.mubr.bf16.vlgmr.msra.gmra.mrb[24].mxu1 %v1187_v34  ;;  %v7722_v34 = vld [vmem:[#allocation62_spill] sm:$0xff] }
 0x24f   :  { %1271 = vmatpush1.bf16.msra.mxu0 %v4786_v43  ;;  %1312 = vmatpush1.bf16.msra.mxu1 %v4792_v44  ;;  %v7671_v43 = vld [vmem:[#allocation11_spill] sm:$0xff]  ;;  %v7672_v44 = vld [vmem:[#allocation12_spill] sm:$0xff] }
 0x250   :  { %1272 = vmatprep.subr.bf16.mxu0 %v4799_v45  ;;  %1313 = vmatprep.subr.bf16.mxu1 %v4805_v46  ;;  %v7673_v45 = vld [vmem:[#allocation13_spill] sm:$0xff]  ;;  %v7674_v46 = vld [vmem:[#allocation14_spill] sm:$0xff] }
 0x251   :  { %1302 = vmatprep.mubr.bf16.mxu0 %v7600_v4  ;;  %1343 = vmatprep.mubr.bf16.mxu1 %v7600_v4 }
 0x253   :  { %1273 = vmatpush1.bf16.msra.mxu0 %v7666_v54  ;;  %1314 = vmatpush1.bf16.msra.mxu1 %v7667_v59  ;;  %v7723_v54 = vld [vmem:[#allocation63_spill] sm:$0xff]  ;;  %v5413_v59 = vld [vmem:[%s7205_s5 + $0x4] ss:$16 sps:$4 sm:$0xff]  }
 0x254   :  { %1274 = vmatprep.subr.bf16.mxu0 %v7668_v47  ;;  %1315 = vmatprep.subr.bf16.mxu1 %v7669_v62  ;;  %v5419_v47 = vld [vmem:[%s7205_s5 + $0xc] ss:$16 sps:$4 sm:$0xff]  }
 0x257   :  { %1275 = vmatpush1.bf16.msra.mxu0 %v7670_v0  ;;  %1316 = vmatpush1.bf16.msra.mxu1 %v7671_v43  ;;  %v7724_v43 = vld [vmem:[#allocation64_spill] sm:$0xff] }
 0x258   :  { %1276 = vmatprep.subr.bf16.mxu0 %v7672_v44  ;;  %1317 = vmatprep.subr.bf16.mxu1 %v7673_v45  ;;  %v7725_v45 = vld [vmem:[#allocation66_spill] sm:$0xff] }
 0x25b   :  { %1277 = vmatpush1.bf16.msra.mxu0 %v7674_v46  ;;  %1318 = vmatpush1.bf16.msra.mxu1 %v7675_v6 }
 0x25c   :  { %1278 = vmatprep.subr.bf16.mxu0 %v7676_v60  ;;  %1319 = vmatprep.subr.bf16.mxu1 %v7677_v63  ;;  %v7726_v63 = vld [vmem:[#allocation65_spill] sm:$0xff] }
 0x25f   :  { %1279 = vmatpush1.bf16.msra.mxu0 %v7678_v7  ;;  %1320 = vmatpush1.bf16.msra.mxu1 %v7679_v1  ;;  %v7727_v1 = vld [vmem:[#allocation67_spill] sm:$0xff] }
 0x260   :  { %1280 = vmatprep.subr.bf16.mxu0 %v7680_v56  ;;  %1321 = vmatprep.subr.bf16.mxu1 %v7681_v2 }
 0x263   :  { %1281 = vmatpush1.bf16.msra.mxu0 %v7682_v53  ;;  %1322 = vmatpush1.bf16.msra.mxu1 %v7683_v3 }
 0x264   :  { %1282 = vmatprep.subr.bf16.mxu0 %v7684_v48  ;;  %1323 = vmatprep.subr.bf16.mxu1 %v7685_v49 }
 0x267   :  { %1283 = vmatpush1.bf16.msra.mxu0 %v7686_v50  ;;  %1324 = vmatpush1.bf16.msra.mxu1 %v7687_v8 }
 0x268   :  { %1284 = vmatprep.subr.bf16.mxu0 %v7688_v9  ;;  %1325 = vmatprep.subr.bf16.mxu1 %v7689_v11 }
 0x26b   :  { %1285 = vmatpush1.bf16.msra.mxu0 %v7690_v13  ;;  %1326 = vmatpush1.bf16.msra.mxu1 %v7691_v15 }
 0x26c   :  { %1381 = vmatprep.subr.bf16.mxu0 %v7692_v16  ;;  %1422 = vmatprep.subr.bf16.mxu1 %v7693_v17 }
 0x26e   :  { %1303 = vmatmul.mubr.bf16.vlgmr.msra.gmra.mrb[28].mxu0 %v5278_v51  ;;  %1344 = vmatmul.mubr.bf16.vlgmr.msra.gmra.mrb[28].mxu1 %v5278_v51  ;;  %v7702_v51 = vld [vmem:[#allocation42_spill] sm:$0xff] }
 0x26f   :  { %1382 = vmatpush1.bf16.msra.mxu0 %v7694_v18  ;;  %1423 = vmatpush1.bf16.msra.mxu1 %v7695_v19 }
 0x270   :  { %1383 = vmatprep.subr.bf16.mxu0 %v7696_v20  ;;  %1424 = vmatprep.subr.bf16.mxu1 %v7697_v21 }
 0x271   :  { %1413 = vmatprep.mubr.bf16.mxu0 %v7600_v4  ;;  %1454 = vmatprep.mubr.bf16.mxu1 %v7600_v4 }
 0x273   :  { %1384 = vmatpush1.bf16.msra.mxu0 %v7698_v22  ;;  %1425 = vmatpush1.bf16.msra.mxu1 %v7699_v23 }
 0x274   :  { %1385 = vmatprep.subr.bf16.mxu0 %v7700_v24  ;;  %1426 = vmatprep.subr.bf16.mxu1 %v7701_v26 }
 0x277   :  { %1386 = vmatpush1.bf16.msra.mxu0 %v7702_v51  ;;  %1427 = vmatpush1.bf16.msra.mxu1 %v7703_v27 }
 0x278   :  { %1387 = vmatprep.subr.bf16.mxu0 %v7704_v29  ;;  %1428 = vmatprep.subr.bf16.mxu1 %v7705_v30 }
 0x27b   :  { %1388 = vmatpush1.bf16.msra.mxu0 %v7706_v32  ;;  %1429 = vmatpush1.bf16.msra.mxu1 %v7707_v33 }
 0x27c   :  { %1389 = vmatprep.subr.bf16.mxu0 %v7708_v35  ;;  %1430 = vmatprep.subr.bf16.mxu1 %v7709_v36 }
 0x27f   :  { %1390 = vmatpush1.bf16.msra.mxu0 %v7710_v37  ;;  %1431 = vmatpush1.bf16.msra.mxu1 %v7711_v38 }
 0x280   :  { %1391 = vmatprep.subr.bf16.mxu0 %v7712_v39  ;;  %1432 = vmatprep.subr.bf16.mxu1 %v7713_v40 }
 0x283   :  { %1392 = vmatpush1.bf16.msra.mxu0 %v7714_v41  ;;  %1433 = vmatpush1.bf16.msra.mxu1 %v7715_v42 }
 0x284   :  { %1393 = vmatprep.subr.bf16.mxu0 %v7716_v5  ;;  %1434 = vmatprep.subr.bf16.mxu1 %v7717_v61 }
 0x287   :  { %1394 = vmatpush1.bf16.msra.mxu0 %v7718_v25  ;;  %1435 = vmatpush1.bf16.msra.mxu1 %v7719_v55 }
 0x288   :  { %1395 = vmatprep.subr.bf16.mxu0 %v7720_v57  ;;  %1436 = vmatprep.subr.bf16.mxu1 %v7721_v14 }
 0x28b   :  { %1396 = vmatpush1.bf16.msra.mxu0 %v7722_v34  ;;  %1437 = vmatpush1.bf16.msra.mxu1 %v7723_v54 }
 0x28c   :  { %1492 = vmatprep.subr.bf16.mxu0 %v5413_v59  ;;  %1533 = vmatprep.subr.bf16.mxu1 %v5419_v47 }
 0x341   :  { %v1304_v62 = vpop.f32.mrb[28].mxu0  ;;  %v1345_v0 = vpop.f32.mrb[28].mxu1 }
 0x342   :  { %v1352_v44 = vadd.f32 %v1304_v62, %v7724_v43  ;;  %v1354_v46 = vadd.f32 %v1345_v0, %v7725_v45  ;;  %v1306_v6 = vpop.f32.mrb[29].mxu0  ;;  %v1347_v60 = vpop.f32.mrb[29].mxu1 }
 0x343   :  { %v1353_v7 = vadd.f32 %v1306_v6, %v7726_v63  ;;  %v1355_v56 = vadd.f32 %v1347_v60, %v7727_v1  ;;  %v1308_v2 = vpop.f32.mrb[30].mxu0  ;;  %v1349_v53 = vpop.f32.mrb[30].mxu1 }
 0x344   :  { %v3628_v3 = vmul.f32 -1.442695, %v1352_v44  ;;  %v1309_v48 = vpop.f32.mrb[31].mxu0  ;;  %v1350_v49 = vpop.f32.mrb[31].mxu1  ;;  %v5449_v2 = vld [vmem:[%s7205_s5 + $0x24] ss:$16 sps:$4 sm:$0xff]  }
 0x345   :  { %v3629_v50 = vmul.f32 -1.442695, %v1353_v7  ;;  %v3630_v8 = vmul.f32 -1.442695, %v1355_v56  ;;  %v5437_v56 = vld [vmem:[%s7205_s5] ss:$16 sps:$4 sm:$0xff]  }
 0x346   :  { %4060 = vpow2.f32 %v3628_v3  ;;  %v5455_v53 = vld [vmem:[%s7205_s5 + $0x2c] ss:$16 sps:$4 sm:$0xff]   ;;  %v5463_v3 = vld [vmem:[%s7205_s5 + $0x20] ss:$16 sps:$4 sm:$0xff]   ;;  %v5469_v48 = vld [vmem:[%s7205_s5 + $0x28] ss:$16 sps:$4 sm:$0xff]  }
 0x347   :  { %4062 = vpow2.f32 %v3629_v50  ;;  %v5475_v49 = vld [vmem:[%s7205_s5 + $0x44] ss:$16 sps:$4 sm:$0xff]   ;;  %v5481_v50 = vld [vmem:[%s7205_s5 + $0x4c] ss:$16 sps:$4 sm:$0xff]  }
 0x348   :  { %4064 = vpow2.f32 %v3630_v8  ;;  %7728 = vst [vmem:[#allocation6_spill] sm:$0xff] %v5475_v49  ;;  %7729 = vst [vmem:[#allocation7_spill] sm:$0xff] %v5481_v50  ;;  %v5487_v8 = vld [vmem:[%s7205_s5 + $0x40] ss:$16 sps:$4 sm:$0xff]  }
 0x349   :  { %4066 = vtanh.f32 %v1354_v46  ;;  %7730 = vst [vmem:[#allocation8_spill] sm:$0xff] %v5487_v8 }
 0x350   :  { %v4061_v9 = vpop.eup %4060 }
 0x351   :  { %v4063_v11 = vpop.eup %4062  ;;  %v1359_v13 = vadd.f32 1.0, %v4061_v9  ;;  %v5493_v9 = vld [vmem:[%s7205_s5 + $0x48] ss:$16 sps:$4 sm:$0xff]  }
 0x352   :  { %v1365_v15 = vadd.f32 1.0, %v4063_v11  ;;  %v4065_v16 = vpop.eup %4064  ;;  %7731 = vst [vmem:[#allocation9_spill] sm:$0xff] %v5493_v9  ;;  %v5499_v11 = vld [vmem:[%s7205_s5 + $0x64] ss:$16 sps:$4 sm:$0xff]  }
 0x353   :  { %4068 = vrcp.f32 %v1359_v13  ;;  %v4067_v62 = vpop.eup %4066  ;;  %v1372_v44 = vadd.f32 1.0, %v4065_v16  ;;  %7732 = vst [vmem:[#allocation10_spill] sm:$0xff] %v5499_v11  ;;  %v5505_v13 = vld [vmem:[%s7205_s5 + $0x6c] ss:$16 sps:$4 sm:$0xff]   ;;  %v5517_v16 = vld [vmem:[%s7205_s5 + $0x68] ss:$16 sps:$4 sm:$0xff]  }
 0x354   :  { %4070 = vrcp.f32 %v1365_v15  ;;  %7733 = vst [vmem:[#allocation11_spill] sm:$0xff] %v5505_v13  ;;  %v5511_v15 = vld [vmem:[%s7205_s5 + $0x60] ss:$16 sps:$4 sm:$0xff]   ;;  %7735 = vst [vmem:[#allocation13_spill] sm:$0xff] %v5517_v16 }
 0x355   :  { %4072 = vrcp.f32 %v1372_v44  ;;  %7734 = vst [vmem:[#allocation12_spill] sm:$0xff] %v5511_v15  ;;  %v5547_v44 = vld [vmem:[%s7205_s5 + $0xa4] ss:$16 sps:$4 sm:$0xff]  }
 0x356   :  { %7740 = vst [vmem:[#allocation18_spill] sm:$0xff] %v5547_v44 }
 0x35d   :  { %v4069_v0 = vpop.eup %4068 }
 0x35e   :  { %v4071_v43 = vpop.eup %4070  ;;  %v1376_v45 = vmul.f32 %v4069_v0, %v4067_v62  ;;  %v5523_v62 = vld [vmem:[%s7205_s5 + $0x84] ss:$16 sps:$4 sm:$0xff]   ;;  %v5529_v0 = vld [vmem:[%s7205_s5 + $0x8c] ss:$16 sps:$4 sm:$0xff]  }
 0x35f   :  { %v1375_v6 = vmul.f32 %v4071_v43, %v5275_v52  ;;  %v4073_v63 = vpop.eup %4072  ;;  %v5443_v52 = vld [vmem:[%s7205_s5 + $0x8] ss:$16 sps:$4 sm:$0xff]   ;;  %7736 = vst [vmem:[#allocation14_spill] sm:$0xff] %v5523_v62  ;;  %7737 = vst [vmem:[#allocation15_spill] sm:$0xff] %v5529_v0  ;;  %v5535_v43 = vld [vmem:[%s7205_s5 + $0x80] ss:$16 sps:$4 sm:$0xff]  }
 0x360   :  { %7738 = vst [vmem:[#allocation16_spill] sm:$0xff] %v5535_v43 }
 0x361   :  { %v5427_v60 = vadd.f32 %v1376_v45, %v1375_v6  ;;  %v5541_v45 = vld [vmem:[%s7205_s5 + $0x88] ss:$16 sps:$4 sm:$0xff]   ;;  %v5553_v6 = vld [vmem:[%s7205_s5 + $0xac] ss:$16 sps:$4 sm:$0xff]  }
 0x362   :  { %7739 = vst [vmem:[#allocation17_spill] sm:$0xff] %v5541_v45  ;;  %7741 = vst [vmem:[#allocation19_spill] sm:$0xff] %v5553_v6 }
 0x363   :  { %4074 = vtanh.f32 %v5427_v60 }
 0x36d   :  { %v4075_v7 = vpop.eup %4074 }
 0x36e   :  { %v1379_v1 = vmul.f32 %v4075_v7, %v4073_v63  ;;  %v5559_v63 = vld [vmem:[%s7205_s5 + $0xa0] ss:$16 sps:$4 sm:$0xff]   ;;  %v5565_v7 = vld [vmem:[%s7205_s5 + $0xa8] ss:$16 sps:$4 sm:$0xff]  }
 0x36f   :  { %7742 = vst [vmem:[#allocation20_spill] sm:$0xff] %v5559_v63  ;;  %7743 = vst [vmem:[#allocation21_spill] sm:$0xff] %v5565_v7 }
 0x370   :  { %v5430_v46 = vpack.c.bf16 %v1379_v1, %v1379_v1  ;;  %v5571_v1 = vld [vmem:[%s7205_s5 + $0xc4] ss:$16 sps:$4 sm:$0xff]  }
 0x371   :  { %7744 = vst [vmem:[#allocation22_spill] sm:$0xff] %v5571_v1 }
 0x372   :  { %1414 = vmatmul.mubr.bf16.vlgmr.msra.gmra.mrb[24].mxu0 %v5430_v46  ;;  %1455 = vmatmul.mubr.bf16.vlgmr.msra.gmra.mrb[24].mxu1 %v5430_v46 }
 0x373   :  { %1493 = vmatpush1.bf16.msra.mxu0 %v5437_v56  ;;  %1534 = vmatpush1.bf16.msra.mxu1 %v5443_v52 }
 0x374   :  { %1494 = vmatprep.subr.bf16.mxu0 %v5449_v2  ;;  %1535 = vmatprep.subr.bf16.mxu1 %v5455_v53 }
 0x375   :  { %1524 = vmatprep.mubr.bf16.mxu0 %v7600_v4  ;;  %1565 = vmatprep.mubr.bf16.mxu1 %v7600_v4 }
 0x377   :  { %1495 = vmatpush1.bf16.msra.mxu0 %v5463_v3  ;;  %1536 = vmatpush1.bf16.msra.mxu1 %v5469_v48 }
 0x378   :  { %1496 = vmatprep.subr.bf16.mxu0 %v5475_v49  ;;  %1537 = vmatprep.subr.bf16.mxu1 %v5481_v50 }
 0x37b   :  { %1497 = vmatpush1.bf16.msra.mxu0 %v5487_v8  ;;  %1538 = vmatpush1.bf16.msra.mxu1 %v5493_v9 }
 0x37c   :  { %1498 = vmatprep.subr.bf16.mxu0 %v5499_v11  ;;  %1539 = vmatprep.subr.bf16.mxu1 %v5505_v13 }
 0x37f   :  { %1499 = vmatpush1.bf16.msra.mxu0 %v5511_v15  ;;  %1540 = vmatpush1.bf16.msra.mxu1 %v5517_v16 }
 0x380   :  { %1500 = vmatprep.subr.bf16.mxu0 %v5523_v62  ;;  %1541 = vmatprep.subr.bf16.mxu1 %v5529_v0 }
 0x383   :  { %1501 = vmatpush1.bf16.msra.mxu0 %v5535_v43  ;;  %1542 = vmatpush1.bf16.msra.mxu1 %v5541_v45 }
 0x384   :  { %1502 = vmatprep.subr.bf16.mxu0 %v5547_v44  ;;  %1543 = vmatprep.subr.bf16.mxu1 %v5553_v6  ;;  %v5577_v6 = vld [vmem:[%s7205_s5 + $0xcc] ss:$16 sps:$4 sm:$0xff]  }
 0x385   :  { %7745 = vst [vmem:[#allocation23_spill] sm:$0xff] %v5577_v6 }
 0x387   :  { %1503 = vmatpush1.bf16.msra.mxu0 %v5559_v63  ;;  %1544 = vmatpush1.bf16.msra.mxu1 %v5565_v7  ;;  %v5583_v63 = vld [vmem:[%s7205_s5 + $0xc0] ss:$16 sps:$4 sm:$0xff]   ;;  %v5589_v7 = vld [vmem:[%s7205_s5 + $0xc8] ss:$16 sps:$4 sm:$0xff]  }
 0x388   :  { %1504 = vmatprep.subr.bf16.mxu0 %v5571_v1  ;;  %1545 = vmatprep.subr.bf16.mxu1 %v5577_v6  ;;  %7746 = vst [vmem:[#allocation24_spill] sm:$0xff] %v5583_v63  ;;  %7747 = vst [vmem:[#allocation25_spill] sm:$0xff] %v5589_v7  ;;  %v5595_v1 = vld [vmem:[%s7205_s5 + $0xe4] ss:$16 sps:$4 sm:$0xff]   ;;  %v5601_v6 = vld [vmem:[%s7205_s5 + $0xec] ss:$16 sps:$4 sm:$0xff]  }
 0x389   :  { %7748 = vst [vmem:[#allocation26_spill] sm:$0xff] %v5595_v1  ;;  %7749 = vst [vmem:[#allocation27_spill] sm:$0xff] %v5601_v6 }
 0x38b   :  { %1505 = vmatpush1.bf16.msra.mxu0 %v5583_v63  ;;  %1546 = vmatpush1.bf16.msra.mxu1 %v5589_v7  ;;  %v5607_v63 = vld [vmem:[%s7205_s5 + $0xe0] ss:$16 sps:$4 sm:$0xff]   ;;  %v5613_v7 = vld [vmem:[%s7205_s5 + $0xe8] ss:$16 sps:$4 sm:$0xff]  }
 0x38c   :  { %1506 = vmatprep.subr.bf16.mxu0 %v5595_v1  ;;  %1547 = vmatprep.subr.bf16.mxu1 %v5601_v6  ;;  %7750 = vst [vmem:[#allocation28_spill] sm:$0xff] %v5607_v63  ;;  %7751 = vst [vmem:[#allocation29_spill] sm:$0xff] %v5613_v7  ;;  %v5619_v1 = vld [vmem:[%s7206_s2 + $0x4] ss:$16 sps:$4 sm:$0xff]   ;;  %v5625_v6 = vld [vmem:[%s7206_s2 + $0xc] ss:$16 sps:$4 sm:$0xff]  }
 0x38d   :  { %7752 = vst [vmem:[#allocation30_spill] sm:$0xff] %v5619_v1  ;;  %7753 = vst [vmem:[#allocation31_spill] sm:$0xff] %v5625_v6 }
 0x38f   :  { %1507 = vmatpush1.bf16.msra.mxu0 %v5607_v63  ;;  %1548 = vmatpush1.bf16.msra.mxu1 %v5613_v7 }
 0x390   :  { %1574 = vmatprep.subr.bf16.mxu0 %v5619_v1  ;;  %1615 = vmatprep.subr.bf16.mxu1 %v5625_v6 }
 0x445   :  { %v1415_v63 = vpop.f32.mrb[24].mxu0  ;;  %v1456_v44 = vpop.f32.mrb[24].mxu1 }
 0x446   :  { %v3777_v45 = vadd.f32 %v1415_v63, %v5321_v10  ;;  %v1417_v43 = vpop.f32.mrb[25].mxu0  ;;  %v1458_v7 = vpop.f32.mrb[25].mxu1  ;;  %v3779_v6 = vadd.f32 %v1456_v44, %v5336_v31 }
 0x447   :  { %v3778_v0 = vadd.f32 %v1417_v43, %v5325_v12  ;;  %v1419_v62 = vpop.f32.mrb[26].mxu0  ;;  %v1460_v16 = vpop.f32.mrb[26].mxu1  ;;  %v3780_v9 = vadd.f32 %v1458_v7, %v5331_v28  ;;  %v5665_v7 = vld [vmem:[%s7206_s2 + $0x20] ss:$16 sps:$4 sm:$0xff]  }
 0x448   :  { %v3631_v15 = vmul.f32 -1.442695, %v3777_v45  ;;  %v1420_v13 = vpop.f32.mrb[27].mxu0  ;;  %v1461_v1 = vpop.f32.mrb[27].mxu1 }
 0x449   :  { %v3632_v11 = vmul.f32 -1.442695, %v3778_v0  ;;  %v3633_v8 = vmul.f32 -1.442695, %v3780_v9  ;;  %v5671_v1 = vld [vmem:[%s7206_s2 + $0x28] ss:$16 sps:$4 sm:$0xff]  }
 0x44a   :  { %4076 = vpow2.f32 %v3631_v15 }
 0x44b   :  { %4078 = vpow2.f32 %v3632_v11 }
 0x44c   :  { %4080 = vpow2.f32 %v3633_v8 }
 0x44d   :  { %4082 = vtanh.f32 %v3779_v6  ;;  %v5657_v6 = vld [vmem:[%s7206_s2 + $0x2c] ss:$16 sps:$4 sm:$0xff]  }
 0x454   :  { %v4077_v50 = vpop.eup %4076 }
 0x455   :  { %v4079_v49 = vpop.eup %4078  ;;  %v1470_v63 = vadd.f32 1.0, %v4077_v50 }
 0x456   :  { %v1476_v10 = vadd.f32 1.0, %v4079_v49  ;;  %v4081_v16 = vpop.eup %4080  ;;  %v5651_v49 = vld [vmem:[%s7206_s2 + $0x24] ss:$16 sps:$4 sm:$0xff]  }
 0x457   :  { %4084 = vrcp.f32 %v1470_v63  ;;  %v4083_v62 = vpop.eup %4082  ;;  %v1483_v15 = vadd.f32 1.0, %v4081_v16  ;;  %v5677_v63 = vld [vmem:[%s7206_s2 + $0x44] ss:$16 sps:$4 sm:$0xff]   ;;  %v5683_v16 = vld [vmem:[%s7206_s2 + $0x4c] ss:$16 sps:$4 sm:$0xff]  }
 0x458   :  { %4086 = vrcp.f32 %v1476_v10  ;;  %v5639_v10 = vld [vmem:[%s7206_s2] ss:$16 sps:$4 sm:$0xff]  }
 0x459   :  { %4088 = vrcp.f32 %v1483_v15  ;;  %v5713_v15 = vld [vmem:[%s7206_s2 + $0x60] ss:$16 sps:$4 sm:$0xff]  }
 0x461   :  { %v4085_v13 = vpop.eup %4084 }
 0x462   :  { %v4087_v43 = vpop.eup %4086  ;;  %v1487_v0 = vmul.f32 %v4085_v13, %v4083_v62  ;;  %v5689_v62 = vld [vmem:[%s7206_s2 + $0x40] ss:$16 sps:$4 sm:$0xff]   ;;  %v5695_v13 = vld [vmem:[%s7206_s2 + $0x48] ss:$16 sps:$4 sm:$0xff]  }
 0x463   :  { %v1486_v11 = vmul.f32 %v4087_v43, %v5339_v58  ;;  %v4089_v9 = vpop.eup %4088  ;;  %v5645_v58 = vld [vmem:[%s7206_s2 + $0x8] ss:$16 sps:$4 sm:$0xff]   ;;  %v5701_v43 = vld [vmem:[%s7206_s2 + $0x64] ss:$16 sps:$4 sm:$0xff]  }
 0x465   :  { %v5633_v45 = vadd.f32 %v1487_v0, %v1486_v11  ;;  %v5707_v0 = vld [vmem:[%s7206_s2 + $0x6c] ss:$16 sps:$4 sm:$0xff]   ;;  %v5719_v11 = vld [vmem:[%s7206_s2 + $0x68] ss:$16 sps:$4 sm:$0xff]  }
 0x467   :  { %4090 = vtanh.f32 %v5633_v45 }
 0x471   :  { %v4091_v50 = vpop.eup %4090 }
 0x472   :  { %v1490_v8 = vmul.f32 %v4091_v50, %v4089_v9  ;;  %v5725_v9 = vld [vmem:[%s7206_s2 + $0x84] ss:$16 sps:$4 sm:$0xff]   ;;  %v5731_v50 = vld [vmem:[%s7206_s2 + $0x8c] ss:$16 sps:$4 sm:$0xff]  }
 0x473   :  { %7754 = vst [vmem:[#allocation32_spill] sm:$0xff] %v5725_v9  ;;  %7755 = vst [vmem:[#allocation33_spill] sm:$0xff] %v5731_v50 }
 0x474   :  { %v1491_v44 = vpack.c.bf16 %v1490_v8, %v1490_v8  ;;  %v5737_v8 = vld [vmem:[%s7206_s2 + $0x80] ss:$16 sps:$4 sm:$0xff]  }
 0x475   :  { %7756 = vst [vmem:[#allocation34_spill] sm:$0xff] %v5737_v8 }
 0x476   :  { %1525 = vmatmul.mubr.bf16.vlgmr.msra.gmra.mrb[32].mxu0 %v1491_v44  ;;  %1566 = vmatmul.mubr.bf16.vlgmr.msra.gmra.mrb[32].mxu1 %v1491_v44  ;;  %v5743_v44 = vld [vmem:[%s7206_s2 + $0x88] ss:$16 sps:$4 sm:$0xff]  }
 0x477   :  { %1575 = vmatpush1.bf16.msra.mxu0 %v5639_v10  ;;  %1616 = vmatpush1.bf16.msra.mxu1 %v5645_v58  ;;  %7757 = vst [vmem:[#allocation35_spill] sm:$0xff] %v5743_v44 }
 0x478   :  { %1576 = vmatprep.subr.bf16.mxu0 %v5651_v49  ;;  %1617 = vmatprep.subr.bf16.mxu1 %v5657_v6 }
 0x479   :  { %1606 = vmatprep.mubr.bf16.mxu0 %v7600_v4  ;;  %1647 = vmatprep.mubr.bf16.mxu1 %v7600_v4 }
 0x47b   :  { %1577 = vmatpush1.bf16.msra.mxu0 %v5665_v7  ;;  %1618 = vmatpush1.bf16.msra.mxu1 %v5671_v1 }
 0x47c   :  { %1578 = vmatprep.subr.bf16.mxu0 %v5677_v63  ;;  %1619 = vmatprep.subr.bf16.mxu1 %v5683_v16 }
 0x47f   :  { %1579 = vmatpush1.bf16.msra.mxu0 %v5689_v62  ;;  %1620 = vmatpush1.bf16.msra.mxu1 %v5695_v13 }
 0x480   :  { %1580 = vmatprep.subr.bf16.mxu0 %v5701_v43  ;;  %1621 = vmatprep.subr.bf16.mxu1 %v5707_v0 }
 0x483   :  { %1581 = vmatpush1.bf16.msra.mxu0 %v5713_v15  ;;  %1622 = vmatpush1.bf16.msra.mxu1 %v5719_v11 }
 0x484   :  { %1582 = vmatprep.subr.bf16.mxu0 %v5725_v9  ;;  %1623 = vmatprep.subr.bf16.mxu1 %v5731_v50  ;;  %v5749_v9 = vld [vmem:[%s7206_s2 + $0xa4] ss:$16 sps:$4 sm:$0xff]   ;;  %v5755_v50 = vld [vmem:[%s7206_s2 + $0xac] ss:$16 sps:$4 sm:$0xff]  }
 0x485   :  { %7758 = vst [vmem:[#allocation36_spill] sm:$0xff] %v5749_v9  ;;  %7759 = vst [vmem:[#allocation37_spill] sm:$0xff] %v5755_v50 }
 0x487   :  { %1583 = vmatpush1.bf16.msra.mxu0 %v5737_v8  ;;  %1624 = vmatpush1.bf16.msra.mxu1 %v5743_v44  ;;  %v5761_v8 = vld [vmem:[%s7206_s2 + $0xa0] ss:$16 sps:$4 sm:$0xff]   ;;  %v5767_v44 = vld [vmem:[%s7206_s2 + $0xa8] ss:$16 sps:$4 sm:$0xff]  }
 0x488   :  { %1584 = vmatprep.subr.bf16.mxu0 %v5749_v9  ;;  %1625 = vmatprep.subr.bf16.mxu1 %v5755_v50  ;;  %7760 = vst [vmem:[#allocation38_spill] sm:$0xff] %v5761_v8  ;;  %7761 = vst [vmem:[#allocation39_spill] sm:$0xff] %v5767_v44  ;;  %v5773_v9 = vld [vmem:[%s7206_s2 + $0xc4] ss:$16 sps:$4 sm:$0xff]   ;;  %v5779_v50 = vld [vmem:[%s7206_s2 + $0xcc] ss:$16 sps:$4 sm:$0xff]  }
 0x489   :  { %7762 = vst [vmem:[#allocation40_spill] sm:$0xff] %v5773_v9  ;;  %7763 = vst [vmem:[#allocation41_spill] sm:$0xff] %v5779_v50 }
 0x48b   :  { %1585 = vmatpush1.bf16.msra.mxu0 %v5761_v8  ;;  %1626 = vmatpush1.bf16.msra.mxu1 %v5767_v44  ;;  %v5785_v8 = vld [vmem:[%s7206_s2 + $0xc0] ss:$16 sps:$4 sm:$0xff]   ;;  %v5791_v44 = vld [vmem:[%s7206_s2 + $0xc8] ss:$16 sps:$4 sm:$0xff]  }
 0x48c   :  { %1586 = vmatprep.subr.bf16.mxu0 %v5773_v9  ;;  %1627 = vmatprep.subr.bf16.mxu1 %v5779_v50  ;;  %7764 = vst [vmem:[#allocation42_spill] sm:$0xff] %v5785_v8  ;;  %7765 = vst [vmem:[#allocation43_spill] sm:$0xff] %v5791_v44  ;;  %v5797_v9 = vld [vmem:[%s7206_s2 + $0xe4] ss:$16 sps:$4 sm:$0xff]   ;;  %v5803_v50 = vld [vmem:[%s7206_s2 + $0xec] ss:$16 sps:$4 sm:$0xff]  }
 0x48d   :  { %7766 = vst [vmem:[#allocation44_spill] sm:$0xff] %v5797_v9  ;;  %7767 = vst [vmem:[#allocation45_spill] sm:$0xff] %v5803_v50 }
 0x48f   :  { %1587 = vmatpush1.bf16.msra.mxu0 %v5785_v8  ;;  %1628 = vmatpush1.bf16.msra.mxu1 %v5791_v44  ;;  %v5809_v8 = vld [vmem:[%s7206_s2 + $0xe0] ss:$16 sps:$4 sm:$0xff]   ;;  %v5815_v44 = vld [vmem:[%s7206_s2 + $0xe8] ss:$16 sps:$4 sm:$0xff]  }
 0x490   :  { %1588 = vmatprep.subr.bf16.mxu0 %v5797_v9  ;;  %1629 = vmatprep.subr.bf16.mxu1 %v5803_v50  ;;  %7768 = vst [vmem:[#allocation46_spill] sm:$0xff] %v5809_v8  ;;  %7769 = vst [vmem:[#allocation47_spill] sm:$0xff] %v5815_v44  ;;  %v5821_v9 = vld [vmem:[%s7207_s4 + $0x4] ss:$16 sps:$4 sm:$0xff]  }
 0x491   :  { %7770 = vst [vmem:[#allocation48_spill] sm:$0xff] %v5821_v9 }
 0x493   :  { %1589 = vmatpush1.bf16.msra.mxu0 %v5809_v8  ;;  %1630 = vmatpush1.bf16.msra.mxu1 %v5815_v44 }
 0x494   :  { %1685 = vmatprep.subr.bf16.mxu0 %v5821_v9  ;;  %1726 = vmatprep.subr.bf16.mxu1 %v7693_v17 }
 0x496   :  { %1607 = vmatmul.mubr.bf16.vlgmr.msra.gmra.mrb[36].mxu0 %v5430_v46  ;;  %1648 = vmatmul.mubr.bf16.vlgmr.msra.gmra.mrb[36].mxu1 %v5430_v46 }
 0x497   :  { %1686 = vmatpush1.bf16.msra.mxu0 %v7694_v18  ;;  %1727 = vmatpush1.bf16.msra.mxu1 %v7695_v19  ;;  %v7771_v19 = vld [vmem:[#allocation68_spill] sm:$0xff] }
 0x498   :  { %1687 = vmatprep.subr.bf16.mxu0 %v7696_v20  ;;  %1728 = vmatprep.subr.bf16.mxu1 %v7697_v21  ;;  %v7772_v21 = vld [vmem:[#allocation70_spill] sm:$0xff] }
 0x499   :  { %1717 = vmatprep.mubr.bf16.mxu0 %v7600_v4  ;;  %1758 = vmatprep.mubr.bf16.mxu1 %v7600_v4 }
 0x49b   :  { %1688 = vmatpush1.bf16.msra.mxu0 %v7698_v22  ;;  %1729 = vmatpush1.bf16.msra.mxu1 %v7699_v23 }
 0x49c   :  { %1689 = vmatprep.subr.bf16.mxu0 %v7700_v24  ;;  %1730 = vmatprep.subr.bf16.mxu1 %v7701_v26  ;;  %v7773_v26 = vld [vmem:[#allocation69_spill] sm:$0xff] }
 0x49f   :  { %1690 = vmatpush1.bf16.msra.mxu0 %v7702_v51  ;;  %1731 = vmatpush1.bf16.msra.mxu1 %v7703_v27  ;;  %v7774_v27 = vld [vmem:[#allocation72_spill] sm:$0xff] }
 0x4a0   :  { %1691 = vmatprep.subr.bf16.mxu0 %v7704_v29  ;;  %1732 = vmatprep.subr.bf16.mxu1 %v7705_v30 }
 0x4a3   :  { %1692 = vmatpush1.bf16.msra.mxu0 %v7706_v32  ;;  %1733 = vmatpush1.bf16.msra.mxu1 %v7707_v33 }
 0x4a4   :  { %1693 = vmatprep.subr.bf16.mxu0 %v7708_v35  ;;  %1734 = vmatprep.subr.bf16.mxu1 %v7709_v36 }
 0x4a7   :  { %1694 = vmatpush1.bf16.msra.mxu0 %v7710_v37  ;;  %1735 = vmatpush1.bf16.msra.mxu1 %v7711_v38 }
 0x4a8   :  { %1695 = vmatprep.subr.bf16.mxu0 %v7712_v39  ;;  %1736 = vmatprep.subr.bf16.mxu1 %v7713_v40 }
 0x4ab   :  { %1696 = vmatpush1.bf16.msra.mxu0 %v7714_v41  ;;  %1737 = vmatpush1.bf16.msra.mxu1 %v7715_v42 }
 0x4ac   :  { %1697 = vmatprep.subr.bf16.mxu0 %v7716_v5  ;;  %1738 = vmatprep.subr.bf16.mxu1 %v7717_v61 }
 0x4af   :  { %1698 = vmatpush1.bf16.msra.mxu0 %v7718_v25  ;;  %1739 = vmatpush1.bf16.msra.mxu1 %v7719_v55 }
 0x4b0   :  { %1699 = vmatprep.subr.bf16.mxu0 %v7720_v57  ;;  %1740 = vmatprep.subr.bf16.mxu1 %v7721_v14 }
 0x4b3   :  { %1700 = vmatpush1.bf16.msra.mxu0 %v7722_v34  ;;  %1741 = vmatpush1.bf16.msra.mxu1 %v7723_v54 }
 0x4b4   :  { %1796 = vmatprep.subr.bf16.mxu0 %v5413_v59  ;;  %1837 = vmatprep.subr.bf16.mxu1 %v5419_v47 }
 0x569   :  { %v1608_v17 = vpop.f32.mrb[36].mxu0  ;;  %v1649_v18 = vpop.f32.mrb[36].mxu1 }
 0x56a   :  { %v1656_v20 = vadd.f32 %v1608_v17, %v7771_v19  ;;  %v1658_v22 = vadd.f32 %v1649_v18, %v7772_v21  ;;  %v1610_v23 = vpop.f32.mrb[37].mxu0  ;;  %v1651_v24 = vpop.f32.mrb[37].mxu1  ;;  %v7777_v21 = vld [vmem:[#allocation8_spill] sm:$0xff] }
 0x56b   :  { %v1657_v51 = vadd.f32 %v1610_v23, %v7773_v26  ;;  %v1659_v29 = vadd.f32 %v1651_v24, %v7774_v27  ;;  %v1612_v30 = vpop.f32.mrb[38].mxu0  ;;  %v1653_v32 = vpop.f32.mrb[38].mxu1  ;;  %v7779_v23 = vld [vmem:[#allocation10_spill] sm:$0xff]  ;;  %v7780_v24 = vld [vmem:[#allocation11_spill] sm:$0xff]  ;;  %v7781_v26 = vld [vmem:[#allocation12_spill] sm:$0xff] }
 0x56c   :  { %v3634_v33 = vmul.f32 -1.442695, %v1656_v20  ;;  %v1613_v35 = vpop.f32.mrb[39].mxu0  ;;  %v1654_v36 = vpop.f32.mrb[39].mxu1  ;;  %v7776_v20 = vld [vmem:[#allocation7_spill] sm:$0xff]  ;;  %v7783_v27 = vld [vmem:[#allocation14_spill] sm:$0xff] }
 0x56d   :  { %v3635_v37 = vmul.f32 -1.442695, %v1657_v51  ;;  %v3636_v38 = vmul.f32 -1.442695, %v1659_v29  ;;  %v7782_v51 = vld [vmem:[#allocation13_spill] sm:$0xff]  ;;  %v7784_v29 = vld [vmem:[#allocation15_spill] sm:$0xff] }
 0x56e   :  { %4092 = vpow2.f32 %v3634_v33  ;;  %v7785_v30 = vld [vmem:[#allocation16_spill] sm:$0xff]  ;;  %v7786_v32 = vld [vmem:[#allocation17_spill] sm:$0xff]  ;;  %v7787_v33 = vld [vmem:[#allocation18_spill] sm:$0xff] }
 0x56f   :  { %4094 = vpow2.f32 %v3635_v37  ;;  %v7788_v35 = vld [vmem:[#allocation19_spill] sm:$0xff]  ;;  %v7789_v36 = vld [vmem:[#allocation20_spill] sm:$0xff]  ;;  %v7790_v37 = vld [vmem:[#allocation21_spill] sm:$0xff] }
 0x570   :  { %4096 = vpow2.f32 %v3636_v38  ;;  %v7791_v38 = vld [vmem:[#allocation22_spill] sm:$0xff] }
 0x571   :  { %4098 = vtanh.f32 %v1658_v22  ;;  %v7778_v22 = vld [vmem:[#allocation9_spill] sm:$0xff] }
 0x578   :  { %v4093_v39 = vpop.eup %4092 }
 0x579   :  { %v4095_v40 = vpop.eup %4094  ;;  %v1663_v41 = vadd.f32 1.0, %v4093_v39  ;;  %v7792_v39 = vld [vmem:[#allocation23_spill] sm:$0xff] }
 0x57a   :  { %v1669_v42 = vadd.f32 1.0, %v4095_v40  ;;  %v4097_v5 = vpop.eup %4096  ;;  %v7793_v40 = vld [vmem:[#allocation24_spill] sm:$0xff] }
 0x57b   :  { %4100 = vrcp.f32 %v1663_v41  ;;  %v4099_v61 = vpop.eup %4098  ;;  %v1676_v14 = vadd.f32 1.0, %v4097_v5  ;;  %v7794_v41 = vld [vmem:[#allocation25_spill] sm:$0xff]  ;;  %v7796_v5 = vld [vmem:[#allocation27_spill] sm:$0xff] }
 0x57c   :  { %4102 = vrcp.f32 %v1669_v42  ;;  %v7795_v42 = vld [vmem:[#allocation26_spill] sm:$0xff] }
 0x57d   :  { %4104 = vrcp.f32 %v1676_v14 }
 0x585   :  { %v4101_v25 = vpop.eup %4100 }
 0x586   :  { %v4103_v55 = vpop.eup %4102  ;;  %v1680_v57 = vmul.f32 %v4101_v25, %v4099_v61  ;;  %v7797_v61 = vld [vmem:[#allocation28_spill] sm:$0xff]  ;;  %v7798_v25 = vld [vmem:[#allocation29_spill] sm:$0xff] }
 0x587   :  { %v1679_v34 = vmul.f32 %v4103_v55, %v5427_v60  ;;  %v4105_v46 = vpop.eup %4104  ;;  %v7775_v60 = vld [vmem:[#allocation6_spill] sm:$0xff] }
 0x588   :  { %v7799_v55 = vld [vmem:[#allocation30_spill] sm:$0xff] }
 0x589   :  { %v5866_v54 = vadd.f32 %v1680_v57, %v1679_v34  ;;  %v7800_v57 = vld [vmem:[#allocation31_spill] sm:$0xff] }
 0x58b   :  { %4106 = vtanh.f32 %v5866_v54 }
 0x595   :  { %v4107_v17 = vpop.eup %4106 }
 0x596   :  { %v1683_v18 = vmul.f32 %v4107_v17, %v4105_v46  ;;  %v7801_v46 = vld [vmem:[#allocation92_spill] sm:$0xff] }
 0x598   :  { %v5869_v19 = vpack.c.bf16 %v1683_v18, %v1683_v18 }
 0x59a   :  { %1718 = vmatmul.mubr.bf16.vlgmr.msra.gmra.mrb[32].mxu0 %v5869_v19  ;;  %1759 = vmatmul.mubr.bf16.vlgmr.msra.gmra.mrb[32].mxu1 %v5869_v19 }
 0x59b   :  { %1797 = vmatpush1.bf16.msra.mxu0 %v5437_v56  ;;  %1838 = vmatpush1.bf16.msra.mxu1 %v5443_v52 }
 0x59c   :  { %1798 = vmatprep.subr.bf16.mxu0 %v5449_v2  ;;  %1839 = vmatprep.subr.bf16.mxu1 %v5455_v53 }
 0x59d   :  { %1828 = vmatprep.mubr.bf16.mxu0 %v7600_v4  ;;  %1869 = vmatprep.mubr.bf16.mxu1 %v7600_v4 }
 0x59f   :  { %1799 = vmatpush1.bf16.msra.mxu0 %v5463_v3  ;;  %1840 = vmatpush1.bf16.msra.mxu1 %v5469_v48 }
 0x5a0   :  { %1800 = vmatprep.subr.bf16.mxu0 %v7775_v60  ;;  %1841 = vmatprep.subr.bf16.mxu1 %v7776_v20 }
 0x5a3   :  { %1801 = vmatpush1.bf16.msra.mxu0 %v7777_v21  ;;  %1842 = vmatpush1.bf16.msra.mxu1 %v7778_v22 }
 0x5a4   :  { %1802 = vmatprep.subr.bf16.mxu0 %v7779_v23  ;;  %1843 = vmatprep.subr.bf16.mxu1 %v7780_v24 }
 0x5a7   :  { %1803 = vmatpush1.bf16.msra.mxu0 %v7781_v26  ;;  %1844 = vmatpush1.bf16.msra.mxu1 %v7782_v51 }
 0x5a8   :  { %1804 = vmatprep.subr.bf16.mxu0 %v7783_v27  ;;  %1845 = vmatprep.subr.bf16.mxu1 %v7784_v29 }
 0x5ab   :  { %1805 = vmatpush1.bf16.msra.mxu0 %v7785_v30  ;;  %1846 = vmatpush1.bf16.msra.mxu1 %v7786_v32 }
 0x5ac   :  { %1806 = vmatprep.subr.bf16.mxu0 %v7787_v33  ;;  %1847 = vmatprep.subr.bf16.mxu1 %v7788_v35 }
 0x5af   :  { %1807 = vmatpush1.bf16.msra.mxu0 %v7789_v36  ;;  %1848 = vmatpush1.bf16.msra.mxu1 %v7790_v37 }
 0x5b0   :  { %1808 = vmatprep.subr.bf16.mxu0 %v7791_v38  ;;  %1849 = vmatprep.subr.bf16.mxu1 %v7792_v39 }
 0x5b3   :  { %1809 = vmatpush1.bf16.msra.mxu0 %v7793_v40  ;;  %1850 = vmatpush1.bf16.msra.mxu1 %v7794_v41 }
 0x5b4   :  { %1810 = vmatprep.subr.bf16.mxu0 %v7795_v42  ;;  %1851 = vmatprep.subr.bf16.mxu1 %v7796_v5 }
 0x5b7   :  { %1811 = vmatpush1.bf16.msra.mxu0 %v7797_v61  ;;  %1852 = vmatpush1.bf16.msra.mxu1 %v7798_v25 }
 0x5b8   :  { %1878 = vmatprep.subr.bf16.mxu0 %v7799_v55  ;;  %1919 = vmatprep.subr.bf16.mxu1 %v7800_v57 }
 0x66d   :  { %v1719_v14 = vpop.f32.mrb[32].mxu0  ;;  %v1760_v34 = vpop.f32.mrb[32].mxu1 }
 0x66e   :  { %v3781_v17 = vadd.f32 %v1719_v14, %v7801_v46  ;;  %v1721_v18 = vpop.f32.mrb[33].mxu0  ;;  %v1762_v40 = vpop.f32.mrb[33].mxu1  ;;  %v3783_v57 = vadd.f32 %v1760_v34, %v5336_v31  ;;  %v7804_v34 = vld [vmem:[#allocation34_spill] sm:$0xff] }
 0x66f   :  { %v3782_v41 = vadd.f32 %v1721_v18, %v5325_v12  ;;  %v1723_v39 = vpop.f32.mrb[34].mxu0  ;;  %v1764_v42 = vpop.f32.mrb[34].mxu1  ;;  %v3784_v55 = vadd.f32 %v1762_v40, %v5331_v28  ;;  %v7807_v18 = vld [vmem:[#allocation37_spill] sm:$0xff] }
 0x670   :  { %v3637_v38 = vmul.f32 -1.442695, %v3781_v17  ;;  %v1724_v5 = vpop.f32.mrb[35].mxu0  ;;  %v1765_v37 = vpop.f32.mrb[35].mxu1  ;;  %v7806_v17 = vld [vmem:[#allocation36_spill] sm:$0xff] }
 0x671   :  { %v3638_v61 = vmul.f32 -1.442695, %v3782_v41  ;;  %v3639_v25 = vmul.f32 -1.442695, %v3784_v55 }
 0x672   :  { %4108 = vpow2.f32 %v3637_v38 }
 0x673   :  { %4110 = vpow2.f32 %v3638_v61 }
 0x674   :  { %4112 = vpow2.f32 %v3639_v25 }
 0x675   :  { %4114 = vtanh.f32 %v3783_v57 }
 0x67c   :  { %v4109_v36 = vpop.eup %4108 }
 0x67d   :  { %v4111_v35 = vpop.eup %4110  ;;  %v1774_v14 = vadd.f32 1.0, %v4109_v36 }
 0x67e   :  { %v1780_v46 = vadd.f32 1.0, %v4111_v35  ;;  %v4113_v39 = vpop.eup %4112  ;;  %v7803_v35 = vld [vmem:[#allocation33_spill] sm:$0xff] }
 0x67f   :  { %4116 = vrcp.f32 %v1774_v14  ;;  %v4115_v42 = vpop.eup %4114  ;;  %v1787_v38 = vadd.f32 1.0, %v4113_v39  ;;  %v7808_v14 = vld [vmem:[#allocation38_spill] sm:$0xff]  ;;  %v7809_v39 = vld [vmem:[#allocation39_spill] sm:$0xff] }
 0x680   :  { %4118 = vrcp.f32 %v1780_v46  ;;  %v7805_v46 = vld [vmem:[#allocation35_spill] sm:$0xff] }
 0x681   :  { %4120 = vrcp.f32 %v1787_v38  ;;  %v7814_v38 = vld [vmem:[#allocation44_spill] sm:$0xff] }
 0x689   :  { %v4117_v5 = vpop.eup %4116 }
 0x68a   :  { %v4119_v37 = vpop.eup %4118  ;;  %v1791_v41 = vmul.f32 %v4117_v5, %v4115_v42  ;;  %v7810_v42 = vld [vmem:[#allocation40_spill] sm:$0xff]  ;;  %v7811_v5 = vld [vmem:[#allocation41_spill] sm:$0xff] }
 0x68b   :  { %v1790_v61 = vmul.f32 %v4119_v37, %v5633_v45  ;;  %v4121_v55 = vpop.eup %4120  ;;  %v7802_v45 = vld [vmem:[#allocation32_spill] sm:$0xff]  ;;  %v7812_v37 = vld [vmem:[#allocation42_spill] sm:$0xff] }
 0x68d   :  { %v5912_v40 = vadd.f32 %v1791_v41, %v1790_v61  ;;  %v7813_v41 = vld [vmem:[#allocation43_spill] sm:$0xff] }
 0x68e   :  { %v5951_v61 = vld [vmem:[%s7207_s4 + $0xc] ss:$16 sps:$4 sm:$0xff]  }
 0x68f   :  { %4122 = vtanh.f32 %v5912_v40  ;;  %7815 = vst [vmem:[#allocation49_spill] sm:$0xff] %v5951_v61 }
 0x699   :  { %v4123_v36 = vpop.eup %4122 }
 0x69a   :  { %v1794_v25 = vmul.f32 %v4123_v36, %v4121_v55  ;;  %v5959_v55 = vld [vmem:[%s7207_s4] ss:$16 sps:$4 sm:$0xff]   ;;  %v5965_v36 = vld [vmem:[%s7207_s4 + $0x8] ss:$16 sps:$4 sm:$0xff]  }
 0x69b   :  { %7816 = vst [vmem:[#allocation50_spill] sm:$0xff] %v5959_v55  ;;  %7817 = vst [vmem:[#allocation51_spill] sm:$0xff] %v5965_v36 }
 0x69c   :  { %v1795_v57 = vpack.c.bf16 %v1794_v25, %v1794_v25  ;;  %v5971_v25 = vld [vmem:[%s7207_s4 + $0x24] ss:$16 sps:$4 sm:$0xff]  }
 0x69d   :  { %7818 = vst [vmem:[#allocation52_spill] sm:$0xff] %v5971_v25 }
 0x69e   :  { %1829 = vmatmul.mubr.bf16.vlgmr.msra.gmra.mrb[40].mxu0 %v1795_v57  ;;  %1870 = vmatmul.mubr.bf16.vlgmr.msra.gmra.mrb[40].mxu1 %v1795_v57  ;;  %v5985_v57 = vld [vmem:[%s7207_s4 + $0x20] ss:$16 sps:$4 sm:$0xff]  }
 0x69f   :  { %1879 = vmatpush1.bf16.msra.mxu0 %v5639_v10  ;;  %1920 = vmatpush1.bf16.msra.mxu1 %v5645_v58  ;;  %7820 = vst [vmem:[#allocation54_spill] sm:$0xff] %v5985_v57 }
 0x6a0   :  { %1880 = vmatprep.subr.bf16.mxu0 %v5651_v49  ;;  %1921 = vmatprep.subr.bf16.mxu1 %v5657_v6 }
 0x6a1   :  { %1910 = vmatprep.mubr.bf16.mxu0 %v7600_v4  ;;  %1951 = vmatprep.mubr.bf16.mxu1 %v7600_v4 }
 0x6a3   :  { %1881 = vmatpush1.bf16.msra.mxu0 %v5665_v7  ;;  %1922 = vmatpush1.bf16.msra.mxu1 %v5671_v1 }
 0x6a4   :  { %1882 = vmatprep.subr.bf16.mxu0 %v5677_v63  ;;  %1923 = vmatprep.subr.bf16.mxu1 %v5683_v16 }
 0x6a7   :  { %1883 = vmatpush1.bf16.msra.mxu0 %v5689_v62  ;;  %1924 = vmatpush1.bf16.msra.mxu1 %v5695_v13 }
 0x6a8   :  { %1884 = vmatprep.subr.bf16.mxu0 %v5701_v43  ;;  %1925 = vmatprep.subr.bf16.mxu1 %v5707_v0 }
 0x6ab   :  { %1885 = vmatpush1.bf16.msra.mxu0 %v5713_v15  ;;  %1926 = vmatpush1.bf16.msra.mxu1 %v5719_v11 }
 0x6ac   :  { %1886 = vmatprep.subr.bf16.mxu0 %v7802_v45  ;;  %1927 = vmatprep.subr.bf16.mxu1 %v7803_v35 }
 0x6af   :  { %1887 = vmatpush1.bf16.msra.mxu0 %v7804_v34  ;;  %1928 = vmatpush1.bf16.msra.mxu1 %v7805_v46 }
 0x6b0   :  { %1888 = vmatprep.subr.bf16.mxu0 %v7806_v17  ;;  %1929 = vmatprep.subr.bf16.mxu1 %v7807_v18 }
 0x6b3   :  { %1889 = vmatpush1.bf16.msra.mxu0 %v7808_v14  ;;  %1930 = vmatpush1.bf16.msra.mxu1 %v7809_v39 }
 0x6b4   :  { %1890 = vmatprep.subr.bf16.mxu0 %v7810_v42  ;;  %1931 = vmatprep.subr.bf16.mxu1 %v7811_v5 }
 0x6b7   :  { %1891 = vmatpush1.bf16.msra.mxu0 %v7812_v37  ;;  %1932 = vmatpush1.bf16.msra.mxu1 %v7813_v41  ;;  %v7849_v41 = vld [vmem:[#allocation75_spill] sm:$0xff] }
 0x6b8   :  { %1892 = vmatprep.subr.bf16.mxu0 %v7814_v38  ;;  %1933 = vmatprep.subr.bf16.mxu1 %v5803_v50 }
 0x6bb   :  { %1893 = vmatpush1.bf16.msra.mxu0 %v5809_v8  ;;  %1934 = vmatpush1.bf16.msra.mxu1 %v5815_v44 }
 0x6bc   :  { %1989 = vmatprep.subr.bf16.mxu0 %v5821_v9  ;;  %2030 = vmatprep.subr.bf16.mxu1 %v5951_v61  ;;  %v7847_v9 = vld [vmem:[#allocation74_spill] sm:$0xff] }
 0x6be   :  { %1911 = vmatmul.mubr.bf16.vlgmr.msra.gmra.mrb[44].mxu0 %v5869_v19  ;;  %1952 = vmatmul.mubr.bf16.vlgmr.msra.gmra.mrb[44].mxu1 %v5869_v19  ;;  %v5977_v19 = vld [vmem:[%s7207_s4 + $0x2c] ss:$16 sps:$4 sm:$0xff]  }
 0x6bf   :  { %1990 = vmatpush1.bf16.msra.mxu0 %v5959_v55  ;;  %2031 = vmatpush1.bf16.msra.mxu1 %v5965_v36  ;;  %7819 = vst [vmem:[#allocation53_spill] sm:$0xff] %v5977_v19  ;;  %v6003_v36 = vld [vmem:[%s7207_s4 + $0x4c] ss:$16 sps:$4 sm:$0xff]  }
 0x6c0   :  { %1991 = vmatprep.subr.bf16.mxu0 %v5971_v25  ;;  %2032 = vmatprep.subr.bf16.mxu1 %v5977_v19  ;;  %v5991_v25 = vld [vmem:[%s7207_s4 + $0x28] ss:$16 sps:$4 sm:$0xff]   ;;  %v5997_v19 = vld [vmem:[%s7207_s4 + $0x44] ss:$16 sps:$4 sm:$0xff]   ;;  %7823 = vst [vmem:[#allocation57_spill] sm:$0xff] %v6003_v36 }
 0x6c1   :  { %2021 = vmatprep.mubr.bf16.mxu0 %v7600_v4  ;;  %2062 = vmatprep.mubr.bf16.mxu1 %v7600_v4  ;;  %7821 = vst [vmem:[#allocation55_spill] sm:$0xff] %v5991_v25  ;;  %7822 = vst [vmem:[#allocation56_spill] sm:$0xff] %v5997_v19  ;;  %v7846_v55 = vld [vmem:[#allocation71_spill] sm:$0xff] }
 0x6c3   :  { %1992 = vmatpush1.bf16.msra.mxu0 %v5985_v57  ;;  %2033 = vmatpush1.bf16.msra.mxu1 %v5991_v25  ;;  %v6009_v57 = vld [vmem:[%s7207_s4 + $0x40] ss:$16 sps:$4 sm:$0xff]   ;;  %v6015_v25 = vld [vmem:[%s7207_s4 + $0x48] ss:$16 sps:$4 sm:$0xff]  }
 0x6c4   :  { %1993 = vmatprep.subr.bf16.mxu0 %v5997_v19  ;;  %2034 = vmatprep.subr.bf16.mxu1 %v6003_v36  ;;  %7824 = vst [vmem:[#allocation58_spill] sm:$0xff] %v6009_v57  ;;  %7825 = vst [vmem:[#allocation59_spill] sm:$0xff] %v6015_v25  ;;  %v6021_v19 = vld [vmem:[%s7207_s4 + $0x64] ss:$16 sps:$4 sm:$0xff]   ;;  %v6027_v36 = vld [vmem:[%s7207_s4 + $0x6c] ss:$16 sps:$4 sm:$0xff]  }
 0x6c5   :  { %7826 = vst [vmem:[#allocation60_spill] sm:$0xff] %v6021_v19  ;;  %7827 = vst [vmem:[#allocation61_spill] sm:$0xff] %v6027_v36 }
 0x6c7   :  { %1994 = vmatpush1.bf16.msra.mxu0 %v6009_v57  ;;  %2035 = vmatpush1.bf16.msra.mxu1 %v6015_v25  ;;  %v6033_v57 = vld [vmem:[%s7207_s4 + $0x60] ss:$16 sps:$4 sm:$0xff]   ;;  %v6039_v25 = vld [vmem:[%s7207_s4 + $0x68] ss:$16 sps:$4 sm:$0xff]  }
 0x6c8   :  { %1995 = vmatprep.subr.bf16.mxu0 %v6021_v19  ;;  %2036 = vmatprep.subr.bf16.mxu1 %v6027_v36  ;;  %7828 = vst [vmem:[#allocation62_spill] sm:$0xff] %v6033_v57  ;;  %7829 = vst [vmem:[#allocation63_spill] sm:$0xff] %v6039_v25  ;;  %v6045_v19 = vld [vmem:[%s7207_s4 + $0x84] ss:$16 sps:$4 sm:$0xff]   ;;  %v6051_v36 = vld [vmem:[%s7207_s4 + $0x8c] ss:$16 sps:$4 sm:$0xff]  }
 0x6c9   :  { %7830 = vst [vmem:[#allocation64_spill] sm:$0xff] %v6045_v19  ;;  %7831 = vst [vmem:[#allocation66_spill] sm:$0xff] %v6051_v36 }
 0x6cb   :  { %1996 = vmatpush1.bf16.msra.mxu0 %v6033_v57  ;;  %2037 = vmatpush1.bf16.msra.mxu1 %v6039_v25  ;;  %v6057_v57 = vld [vmem:[%s7207_s4 + $0x80] ss:$16 sps:$4 sm:$0xff]   ;;  %v6063_v25 = vld [vmem:[%s7207_s4 + $0x88] ss:$16 sps:$4 sm:$0xff]  }
 0x6cc   :  { %1997 = vmatprep.subr.bf16.mxu0 %v6045_v19  ;;  %2038 = vmatprep.subr.bf16.mxu1 %v6051_v36  ;;  %7832 = vst [vmem:[#allocation65_spill] sm:$0xff] %v6057_v57  ;;  %7833 = vst [vmem:[#allocation67_spill] sm:$0xff] %v6063_v25  ;;  %v6069_v19 = vld [vmem:[%s7207_s4 + $0xa4] ss:$16 sps:$4 sm:$0xff]   ;;  %v6075_v36 = vld [vmem:[%s7207_s4 + $0xac] ss:$16 sps:$4 sm:$0xff]  }
 0x6cd   :  { %7834 = vst [vmem:[#allocation68_spill] sm:$0xff] %v6069_v19  ;;  %7835 = vst [vmem:[#allocation70_spill] sm:$0xff] %v6075_v36 }
 0x6cf   :  { %1998 = vmatpush1.bf16.msra.mxu0 %v6057_v57  ;;  %2039 = vmatpush1.bf16.msra.mxu1 %v6063_v25  ;;  %v6081_v57 = vld [vmem:[%s7207_s4 + $0xa0] ss:$16 sps:$4 sm:$0xff]   ;;  %v6087_v25 = vld [vmem:[%s7207_s4 + $0xa8] ss:$16 sps:$4 sm:$0xff]  }
 0x6d0   :  { %1999 = vmatprep.subr.bf16.mxu0 %v6069_v19  ;;  %2040 = vmatprep.subr.bf16.mxu1 %v6075_v36  ;;  %7836 = vst [vmem:[#allocation69_spill] sm:$0xff] %v6081_v57  ;;  %7837 = vst [vmem:[#allocation72_spill] sm:$0xff] %v6087_v25  ;;  %v6093_v19 = vld [vmem:[%s7207_s4 + $0xc4] ss:$16 sps:$4 sm:$0xff]   ;;  %v6099_v36 = vld [vmem:[%s7207_s4 + $0xcc] ss:$16 sps:$4 sm:$0xff]  }
 0x6d1   :  { %7838 = vst [vmem:[#allocation6_spill] sm:$0xff] %v6093_v19  ;;  %7839 = vst [vmem:[#allocation7_spill] sm:$0xff] %v6099_v36 }
 0x6d3   :  { %2000 = vmatpush1.bf16.msra.mxu0 %v6081_v57  ;;  %2041 = vmatpush1.bf16.msra.mxu1 %v6087_v25  ;;  %v6105_v57 = vld [vmem:[%s7207_s4 + $0xc0] ss:$16 sps:$4 sm:$0xff]   ;;  %v6111_v25 = vld [vmem:[%s7207_s4 + $0xc8] ss:$16 sps:$4 sm:$0xff]  }
 0x6d4   :  { %2001 = vmatprep.subr.bf16.mxu0 %v6093_v19  ;;  %2042 = vmatprep.subr.bf16.mxu1 %v6099_v36  ;;  %7840 = vst [vmem:[#allocation8_spill] sm:$0xff] %v6105_v57  ;;  %7841 = vst [vmem:[#allocation9_spill] sm:$0xff] %v6111_v25  ;;  %v6117_v19 = vld [vmem:[%s7207_s4 + $0xe4] ss:$16 sps:$4 sm:$0xff]   ;;  %v6123_v36 = vld [vmem:[%s7207_s4 + $0xec] ss:$16 sps:$4 sm:$0xff]  }
 0x6d5   :  { %7842 = vst [vmem:[#allocation10_spill] sm:$0xff] %v6117_v19  ;;  %7843 = vst [vmem:[#allocation11_spill] sm:$0xff] %v6123_v36 }
 0x6d7   :  { %2002 = vmatpush1.bf16.msra.mxu0 %v6105_v57  ;;  %2043 = vmatpush1.bf16.msra.mxu1 %v6111_v25  ;;  %v6129_v57 = vld [vmem:[%s7207_s4 + $0xe0] ss:$16 sps:$4 sm:$0xff]   ;;  %v6135_v25 = vld [vmem:[%s7207_s4 + $0xe8] ss:$16 sps:$4 sm:$0xff]  }
 0x6d8   :  { %2003 = vmatprep.subr.bf16.mxu0 %v6117_v19  ;;  %2044 = vmatprep.subr.bf16.mxu1 %v6123_v36  ;;  %7844 = vst [vmem:[#allocation12_spill] sm:$0xff] %v6129_v57  ;;  %7845 = vst [vmem:[#allocation13_spill] sm:$0xff] %v6135_v25 }
 0x6db   :  { %2004 = vmatpush1.bf16.msra.mxu0 %v6129_v57  ;;  %2045 = vmatpush1.bf16.msra.mxu1 %v6135_v25  ;;  %v7848_v57 = vld [vmem:[#allocation73_spill] sm:$0xff] }
 0x6dc   :  { %2100 = vmatprep.subr.bf16.mxu0 %v5413_v59  ;;  %2141 = vmatprep.subr.bf16.mxu1 %v5419_v47 }
 0x791   :  { %v1912_v19 = vpop.f32.mrb[44].mxu0  ;;  %v1953_v36 = vpop.f32.mrb[44].mxu1 }
 0x792   :  { %v1960_v61 = vadd.f32 %v1912_v19, %v7846_v55  ;;  %v1962_v44 = vadd.f32 %v1953_v36, %v7847_v9  ;;  %v1914_v8 = vpop.f32.mrb[45].mxu0  ;;  %v1955_v50 = vpop.f32.mrb[45].mxu1 }
 0x793   :  { %v1961_v38 = vadd.f32 %v1914_v8, %v7848_v57  ;;  %v1963_v37 = vadd.f32 %v1955_v50, %v7849_v41  ;;  %v1916_v5 = vpop.f32.mrb[46].mxu0  ;;  %v1957_v42 = vpop.f32.mrb[46].mxu1 }
 0x794   :  { %v3640_v39 = vmul.f32 -1.442695, %v1960_v61  ;;  %v1917_v25 = vpop.f32.mrb[47].mxu0  ;;  %v1958_v14 = vpop.f32.mrb[47].mxu1 }
 0x795   :  { %v3641_v59 = vmul.f32 -1.442695, %v1961_v38  ;;  %v3642_v47 = vmul.f32 -1.442695, %v1963_v37 }
 0x796   :  { %4124 = vpow2.f32 %v3640_v39 }
 0x797   :  { %4126 = vpow2.f32 %v3641_v59 }
 0x798   :  { %4128 = vpow2.f32 %v3642_v47 }
 0x799   :  { %4130 = vtanh.f32 %v1962_v44 }
 0x7a0   :  { %v4125_v18 = vpop.eup %4124 }
 0x7a1   :  { %v4127_v17 = vpop.eup %4126  ;;  %v1967_v55 = vadd.f32 1.0, %v4125_v18 }
 0x7a2   :  { %v1973_v9 = vadd.f32 1.0, %v4127_v17  ;;  %v4129_v8 = vpop.eup %4128 }
 0x7a3   :  { %4132 = vrcp.f32 %v1967_v55  ;;  %v4131_v36 = vpop.eup %4130  ;;  %v1980_v41 = vadd.f32 1.0, %v4129_v8 }
 0x7a4   :  { %4134 = vrcp.f32 %v1973_v9 }
 0x7a5   :  { %4136 = vrcp.f32 %v1980_v41 }
 0x7ad   :  { %v4133_v50 = vpop.eup %4132 }
 0x7ae   :  { %v4135_v5 = vpop.eup %4134  ;;  %v1984_v42 = vmul.f32 %v4133_v50, %v4131_v36 }
 0x7af   :  { %v1983_v14 = vmul.f32 %v4135_v5, %v5866_v54  ;;  %v4137_v39 = vpop.eup %4136  ;;  %v7856_v54 = vld [vmem:[#allocation25_spill] sm:$0xff] }
 0x7b1   :  { %v6145_v38 = vadd.f32 %v1984_v42, %v1983_v14 }
 0x7b3   :  { %4138 = vtanh.f32 %v6145_v38 }
 0x7bd   :  { %v4139_v18 = vpop.eup %4138 }
 0x7be   :  { %v1987_v37 = vmul.f32 %v4139_v18, %v4137_v39 }
 0x7c0   :  { %v6148_v44 = vpack.c.bf16 %v1987_v37, %v1987_v37 }
 0x7c2   :  { %2022 = vmatmul.mubr.bf16.vlgmr.msra.gmra.mrb[40].mxu0 %v6148_v44  ;;  %2063 = vmatmul.mubr.bf16.vlgmr.msra.gmra.mrb[40].mxu1 %v6148_v44 }
 0x7c3   :  { %2101 = vmatpush1.bf16.msra.mxu0 %v5437_v56  ;;  %2142 = vmatpush1.bf16.msra.mxu1 %v5443_v52  ;;  %v7850_v56 = vld [vmem:[#allocation19_spill] sm:$0xff]  ;;  %v7851_v52 = vld [vmem:[#allocation20_spill] sm:$0xff] }
 0x7c4   :  { %2102 = vmatprep.subr.bf16.mxu0 %v5449_v2  ;;  %2143 = vmatprep.subr.bf16.mxu1 %v5455_v53  ;;  %v7852_v2 = vld [vmem:[#allocation21_spill] sm:$0xff]  ;;  %v7853_v53 = vld [vmem:[#allocation22_spill] sm:$0xff] }
 0x7c5   :  { %2132 = vmatprep.mubr.bf16.mxu0 %v7600_v4  ;;  %2173 = vmatprep.mubr.bf16.mxu1 %v7600_v4 }
 0x7c7   :  { %2103 = vmatpush1.bf16.msra.mxu0 %v5463_v3  ;;  %2144 = vmatpush1.bf16.msra.mxu1 %v5469_v48  ;;  %v7854_v3 = vld [vmem:[#allocation23_spill] sm:$0xff]  ;;  %v7855_v48 = vld [vmem:[#allocation24_spill] sm:$0xff] }
 0x7c8   :  { %2104 = vmatprep.subr.bf16.mxu0 %v7775_v60  ;;  %2145 = vmatprep.subr.bf16.mxu1 %v7776_v20  ;;  %v7857_v60 = vld [vmem:[#allocation26_spill] sm:$0xff]  ;;  %v7858_v20 = vld [vmem:[#allocation27_spill] sm:$0xff] }
 0x7cb   :  { %2105 = vmatpush1.bf16.msra.mxu0 %v7777_v21  ;;  %2146 = vmatpush1.bf16.msra.mxu1 %v7778_v22  ;;  %v7859_v21 = vld [vmem:[#allocation28_spill] sm:$0xff]  ;;  %v7860_v22 = vld [vmem:[#allocation29_spill] sm:$0xff] }
 0x7cc   :  { %2106 = vmatprep.subr.bf16.mxu0 %v7779_v23  ;;  %2147 = vmatprep.subr.bf16.mxu1 %v7780_v24  ;;  %v7861_v23 = vld [vmem:[#allocation30_spill] sm:$0xff]  ;;  %v7862_v24 = vld [vmem:[#allocation31_spill] sm:$0xff] }
 0x7cf   :  { %2107 = vmatpush1.bf16.msra.mxu0 %v7781_v26  ;;  %2148 = vmatpush1.bf16.msra.mxu1 %v7782_v51 }
 0x7d0   :  { %2108 = vmatprep.subr.bf16.mxu0 %v7783_v27  ;;  %2149 = vmatprep.subr.bf16.mxu1 %v7784_v29  ;;  %v7863_v27 = vld [vmem:[#allocation92_spill] sm:$0xff] }
 0x7d3   :  { %2109 = vmatpush1.bf16.msra.mxu0 %v7785_v30  ;;  %2150 = vmatpush1.bf16.msra.mxu1 %v7786_v32 }
 0x7d4   :  { %2110 = vmatprep.subr.bf16.mxu0 %v7787_v33  ;;  %2151 = vmatprep.subr.bf16.mxu1 %v7850_v56 }
 0x7d7   :  { %2111 = vmatpush1.bf16.msra.mxu0 %v7851_v52  ;;  %2152 = vmatpush1.bf16.msra.mxu1 %v7852_v2 }
 0x7d8   :  { %2112 = vmatprep.subr.bf16.mxu0 %v7853_v53  ;;  %2153 = vmatprep.subr.bf16.mxu1 %v7854_v3 }
 0x7db   :  { %2113 = vmatpush1.bf16.msra.mxu0 %v7855_v48  ;;  %2154 = vmatpush1.bf16.msra.mxu1 %v7856_v54  ;;  %v7883_v54 = vld [vmem:[#allocation55_spill] sm:$0xff] }
 0x7dc   :  { %2114 = vmatprep.subr.bf16.mxu0 %v7857_v60  ;;  %2155 = vmatprep.subr.bf16.mxu1 %v7858_v20  ;;  %v7884_v60 = vld [vmem:[#allocation56_spill] sm:$0xff]  ;;  %v7885_v20 = vld [vmem:[#allocation57_spill] sm:$0xff] }
 0x7df   :  { %2115 = vmatpush1.bf16.msra.mxu0 %v7859_v21  ;;  %2156 = vmatpush1.bf16.msra.mxu1 %v7860_v22  ;;  %v7887_v21 = vld [vmem:[#allocation59_spill] sm:$0xff]  ;;  %v7888_v22 = vld [vmem:[#allocation60_spill] sm:$0xff] }
 0x7e0   :  { %2182 = vmatprep.subr.bf16.mxu0 %v7861_v23  ;;  %2223 = vmatprep.subr.bf16.mxu1 %v7862_v24  ;;  %v7889_v23 = vld [vmem:[#allocation61_spill] sm:$0xff]  ;;  %v7890_v24 = vld [vmem:[#allocation62_spill] sm:$0xff] }
 0x895   :  { %v2023_v26 = vpop.f32.mrb[40].mxu0  ;;  %v2064_v51 = vpop.f32.mrb[40].mxu1 }
 0x896   :  { %v3785_v29 = vadd.f32 %v2023_v26, %v7863_v27  ;;  %v2025_v30 = vpop.f32.mrb[41].mxu0  ;;  %v2066_v32 = vpop.f32.mrb[41].mxu1  ;;  %v3787_v9 = vadd.f32 %v2064_v51, %v5336_v31  ;;  %v7891_v26 = vld [vmem:[#allocation63_spill] sm:$0xff]  ;;  %v7892_v51 = vld [vmem:[#allocation64_spill] sm:$0xff] }
 0x897   :  { %v3786_v33 = vadd.f32 %v2025_v30, %v5325_v12  ;;  %v2027_v17 = vpop.f32.mrb[42].mxu0  ;;  %v2068_v61 = vpop.f32.mrb[42].mxu1  ;;  %v3788_v47 = vadd.f32 %v2066_v32, %v5331_v28  ;;  %v7894_v30 = vld [vmem:[#allocation65_spill] sm:$0xff]  ;;  %v7895_v32 = vld [vmem:[#allocation67_spill] sm:$0xff] }
 0x898   :  { %v3643_v25 = vmul.f32 -1.442695, %v3785_v29  ;;  %v2028_v19 = vpop.f32.mrb[43].mxu0  ;;  %v2069_v57 = vpop.f32.mrb[43].mxu1  ;;  %v7893_v29 = vld [vmem:[#allocation66_spill] sm:$0xff]  ;;  %v7898_v61 = vld [vmem:[#allocation69_spill] sm:$0xff] }
 0x899   :  { %v3644_v59 = vmul.f32 -1.442695, %v3786_v33  ;;  %v3645_v55 = vmul.f32 -1.442695, %v3788_v47  ;;  %v7896_v33 = vld [vmem:[#allocation68_spill] sm:$0xff]  ;;  %v7897_v17 = vld [vmem:[#allocation70_spill] sm:$0xff] }
 0x89a   :  { %4140 = vpow2.f32 %v3643_v25  ;;  %v7899_v25 = vld [vmem:[#allocation72_spill] sm:$0xff]  ;;  %v7900_v19 = vld [vmem:[#allocation6_spill] sm:$0xff]  ;;  %v7901_v57 = vld [vmem:[#allocation7_spill] sm:$0xff] }
 0x89b   :  { %4142 = vpow2.f32 %v3644_v59  ;;  %v7902_v59 = vld [vmem:[#allocation8_spill] sm:$0xff]  ;;  %v7903_v47 = vld [vmem:[#allocation9_spill] sm:$0xff] }
 0x89c   :  { %4144 = vpow2.f32 %v3645_v55  ;;  %v7904_v55 = vld [vmem:[#allocation10_spill] sm:$0xff] }
 0x89d   :  { %4146 = vtanh.f32 %v3787_v9  ;;  %v7905_v9 = vld [vmem:[#allocation11_spill] sm:$0xff] }
 0x8a4   :  { %v4141_v8 = vpop.eup %4140 }
 0x8a5   :  { %v4143_v36 = vpop.eup %4142  ;;  %v2078_v50 = vadd.f32 1.0, %v4141_v8  ;;  %v7906_v8 = vld [vmem:[#allocation12_spill] sm:$0xff] }
 0x8a6   :  { %v2084_v5 = vadd.f32 1.0, %v4143_v36  ;;  %v4145_v42 = vpop.eup %4144  ;;  %v7907_v36 = vld [vmem:[#allocation13_spill] sm:$0xff] }
 0x8a7   :  { %4148 = vrcp.f32 %v2078_v50  ;;  %v4147_v41 = vpop.eup %4146  ;;  %v2091_v37 = vadd.f32 1.0, %v4145_v42  ;;  %v6265_v50 = vld [vmem:[%s7205_s5 + $0x4] ss:$16 sps:$4 sm:$0xff]  }
 0x8a8   :  { %4150 = vrcp.f32 %v2084_v5  ;;  %v6271_v5 = vld [vmem:[%s7205_s5 + $0xc] ss:$16 sps:$4 sm:$0xff]  }
 0x8a9   :  { %4152 = vrcp.f32 %v2091_v37 }
 0x8b1   :  { %v4149_v14 = vpop.eup %4148 }
 0x8b2   :  { %v4151_v39 = vpop.eup %4150  ;;  %v2095_v18 = vmul.f32 %v4149_v14, %v4147_v41  ;;  %v7908_v14 = vld [vmem:[#allocation76_spill] sm:$0xff] }
 0x8b3   :  { %v2094_v56 = vmul.f32 %v4151_v39, %v5912_v40  ;;  %v4153_v2 = vpop.eup %4152  ;;  %v7878_v40 = vld [vmem:[#allocation50_spill] sm:$0xff] }
 0x8b5   :  { %v6191_v52 = vadd.f32 %v2095_v18, %v2094_v56  ;;  %v7909_v18 = vld [vmem:[#allocation78_spill] sm:$0xff] }
 0x8b7   :  { %4154 = vtanh.f32 %v6191_v52 }
 0x8c1   :  { %v4155_v53 = vpop.eup %4154 }
 0x8c2   :  { %v2098_v3 = vmul.f32 %v4155_v53, %v4153_v2  ;;  %v7910_v53 = vld [vmem:[#allocation77_spill] sm:$0xff] }
 0x8c4   :  { %v2099_v48 = vpack.c.bf16 %v2098_v3, %v2098_v3 }
 0x8c6   :  { %2133 = vmatmul.mubr.bf16.vlgmr.msra.gmra.mrb[48].mxu0 %v2099_v48  ;;  %2174 = vmatmul.mubr.bf16.vlgmr.msra.gmra.mrb[48].mxu1 %v2099_v48  ;;  %v7911_v48 = vld [vmem:[#allocation80_spill] sm:$0xff] }
 0x8c7   :  { %2183 = vmatpush1.bf16.msra.mxu0 %v5639_v10  ;;  %2224 = vmatpush1.bf16.msra.mxu1 %v5645_v58  ;;  %v7864_v10 = vld [vmem:[#allocation36_spill] sm:$0xff]  ;;  %v7865_v58 = vld [vmem:[#allocation37_spill] sm:$0xff] }
 0x8c8   :  { %2184 = vmatprep.subr.bf16.mxu0 %v5651_v49  ;;  %2225 = vmatprep.subr.bf16.mxu1 %v5657_v6  ;;  %v7866_v49 = vld [vmem:[#allocation38_spill] sm:$0xff]  ;;  %v7867_v6 = vld [vmem:[#allocation39_spill] sm:$0xff] }
 0x8c9   :  { %2214 = vmatprep.mubr.bf16.mxu0 %v7600_v4  ;;  %2255 = vmatprep.mubr.bf16.mxu1 %v7600_v4 }
 0x8cb   :  { %2185 = vmatpush1.bf16.msra.mxu0 %v5665_v7  ;;  %2226 = vmatpush1.bf16.msra.mxu1 %v5671_v1  ;;  %v7868_v7 = vld [vmem:[#allocation40_spill] sm:$0xff]  ;;  %v7869_v1 = vld [vmem:[#allocation41_spill] sm:$0xff] }
 0x8cc   :  { %2186 = vmatprep.subr.bf16.mxu0 %v5677_v63  ;;  %2227 = vmatprep.subr.bf16.mxu1 %v5683_v16  ;;  %v7870_v63 = vld [vmem:[#allocation42_spill] sm:$0xff]  ;;  %v7871_v16 = vld [vmem:[#allocation43_spill] sm:$0xff] }
 0x8cf   :  { %2187 = vmatpush1.bf16.msra.mxu0 %v5689_v62  ;;  %2228 = vmatpush1.bf16.msra.mxu1 %v5695_v13  ;;  %v7872_v62 = vld [vmem:[#allocation44_spill] sm:$0xff]  ;;  %v7873_v13 = vld [vmem:[#allocation45_spill] sm:$0xff] }
 0x8d0   :  { %2188 = vmatprep.subr.bf16.mxu0 %v5701_v43  ;;  %2229 = vmatprep.subr.bf16.mxu1 %v5707_v0  ;;  %v7874_v43 = vld [vmem:[#allocation46_spill] sm:$0xff]  ;;  %v7875_v0 = vld [vmem:[#allocation47_spill] sm:$0xff] }
 0x8d3   :  { %2189 = vmatpush1.bf16.msra.mxu0 %v5713_v15  ;;  %2230 = vmatpush1.bf16.msra.mxu1 %v5719_v11  ;;  %v7876_v15 = vld [vmem:[#allocation48_spill] sm:$0xff]  ;;  %v7877_v11 = vld [vmem:[#allocation49_spill] sm:$0xff] }
 0x8d4   :  { %2190 = vmatprep.subr.bf16.mxu0 %v7802_v45  ;;  %2231 = vmatprep.subr.bf16.mxu1 %v7803_v35  ;;  %v7879_v45 = vld [vmem:[#allocation51_spill] sm:$0xff]  ;;  %v7880_v35 = vld [vmem:[#allocation52_spill] sm:$0xff] }
 0x8d7   :  { %2191 = vmatpush1.bf16.msra.mxu0 %v7804_v34  ;;  %2232 = vmatpush1.bf16.msra.mxu1 %v7805_v46  ;;  %v7881_v34 = vld [vmem:[#allocation53_spill] sm:$0xff]  ;;  %v7882_v46 = vld [vmem:[#allocation54_spill] sm:$0xff] }
 0x8d8   :  { %2192 = vmatprep.subr.bf16.mxu0 %v7864_v10  ;;  %2233 = vmatprep.subr.bf16.mxu1 %v7865_v58 }
 0x8db   :  { %2193 = vmatpush1.bf16.msra.mxu0 %v7866_v49  ;;  %2234 = vmatpush1.bf16.msra.mxu1 %v7867_v6 }
 0x8dc   :  { %2194 = vmatprep.subr.bf16.mxu0 %v7868_v7  ;;  %2235 = vmatprep.subr.bf16.mxu1 %v7869_v1 }
 0x8df   :  { %2195 = vmatpush1.bf16.msra.mxu0 %v7870_v63  ;;  %2236 = vmatpush1.bf16.msra.mxu1 %v7871_v16 }
 0x8e0   :  { %2196 = vmatprep.subr.bf16.mxu0 %v7872_v62  ;;  %2237 = vmatprep.subr.bf16.mxu1 %v7873_v13 }
 0x8e3   :  { %2197 = vmatpush1.bf16.msra.mxu0 %v7874_v43  ;;  %2238 = vmatpush1.bf16.msra.mxu1 %v7875_v0 }
 0x8e4   :  { %2293 = vmatprep.subr.bf16.mxu0 %v7876_v15  ;;  %2334 = vmatprep.subr.bf16.mxu1 %v7877_v11 }
 0x8e6   :  { %2215 = vmatmul.mubr.bf16.vlgmr.msra.gmra.mrb[52].mxu0 %v6148_v44  ;;  %2256 = vmatmul.mubr.bf16.vlgmr.msra.gmra.mrb[52].mxu1 %v6148_v44  ;;  %v7886_v44 = vld [vmem:[#allocation58_spill] sm:$0xff] }
 0x8e7   :  { %2294 = vmatpush1.bf16.msra.mxu0 %v7878_v40  ;;  %2335 = vmatpush1.bf16.msra.mxu1 %v7879_v45 }
 0x8e8   :  { %2295 = vmatprep.subr.bf16.mxu0 %v7880_v35  ;;  %2336 = vmatprep.subr.bf16.mxu1 %v7881_v34 }
 0x8e9   :  { %2325 = vmatprep.mubr.bf16.mxu0 %v7600_v4  ;;  %2366 = vmatprep.mubr.bf16.mxu1 %v7600_v4 }
 0x8eb   :  { %2296 = vmatpush1.bf16.msra.mxu0 %v7882_v46  ;;  %2337 = vmatpush1.bf16.msra.mxu1 %v7883_v54 }
 0x8ec   :  { %2297 = vmatprep.subr.bf16.mxu0 %v7884_v60  ;;  %2338 = vmatprep.subr.bf16.mxu1 %v7885_v20 }
 0x8ef   :  { %2298 = vmatpush1.bf16.msra.mxu0 %v7886_v44  ;;  %2339 = vmatpush1.bf16.msra.mxu1 %v7887_v21 }
 0x8f0   :  { %2299 = vmatprep.subr.bf16.mxu0 %v7888_v22  ;;  %2340 = vmatprep.subr.bf16.mxu1 %v7889_v23 }
 0x8f3   :  { %2300 = vmatpush1.bf16.msra.mxu0 %v7890_v24  ;;  %2341 = vmatpush1.bf16.msra.mxu1 %v7891_v26 }
 0x8f4   :  { %2301 = vmatprep.subr.bf16.mxu0 %v7892_v51  ;;  %2342 = vmatprep.subr.bf16.mxu1 %v7893_v29 }
 0x8f7   :  { %2302 = vmatpush1.bf16.msra.mxu0 %v7894_v30  ;;  %2343 = vmatpush1.bf16.msra.mxu1 %v7895_v32 }
 0x8f8   :  { %2303 = vmatprep.subr.bf16.mxu0 %v7896_v33  ;;  %2344 = vmatprep.subr.bf16.mxu1 %v7897_v17 }
 0x8fb   :  { %2304 = vmatpush1.bf16.msra.mxu0 %v7898_v61  ;;  %2345 = vmatpush1.bf16.msra.mxu1 %v7899_v25 }
 0x8fc   :  { %2305 = vmatprep.subr.bf16.mxu0 %v7900_v19  ;;  %2346 = vmatprep.subr.bf16.mxu1 %v7901_v57 }
 0x8ff   :  { %2306 = vmatpush1.bf16.msra.mxu0 %v7902_v59  ;;  %2347 = vmatpush1.bf16.msra.mxu1 %v7903_v47 }
 0x900   :  { %2307 = vmatprep.subr.bf16.mxu0 %v7904_v55  ;;  %2348 = vmatprep.subr.bf16.mxu1 %v7905_v9 }
 0x903   :  { %2308 = vmatpush1.bf16.msra.mxu0 %v7906_v8  ;;  %2349 = vmatpush1.bf16.msra.mxu1 %v7907_v36 }
 0x904   :  { %2404 = vmatprep.subr.bf16.mxu0 %v6265_v50  ;;  %2445 = vmatprep.subr.bf16.mxu1 %v6271_v5 }
 0x9b9   :  { %v2216_v42 = vpop.f32.mrb[52].mxu0  ;;  %v2257_v41 = vpop.f32.mrb[52].mxu1 }
 0x9ba   :  { %v2264_v39 = vadd.f32 %v2216_v42, %v7908_v14  ;;  %v2266_v37 = vadd.f32 %v2257_v41, %v7909_v18  ;;  %v2218_v56 = vpop.f32.mrb[53].mxu0  ;;  %v2259_v2 = vpop.f32.mrb[53].mxu1 }
 0x9bb   :  { %v2265_v3 = vadd.f32 %v2218_v56, %v7910_v53  ;;  %v2267_v10 = vadd.f32 %v2259_v2, %v7911_v48  ;;  %v2220_v58 = vpop.f32.mrb[54].mxu0  ;;  %v2261_v49 = vpop.f32.mrb[54].mxu1 }
 0x9bc   :  { %v3646_v6 = vmul.f32 -1.442695, %v2264_v39  ;;  %v2221_v7 = vpop.f32.mrb[55].mxu0  ;;  %v2262_v1 = vpop.f32.mrb[55].mxu1  ;;  %v6301_v58 = vld [vmem:[%s7205_s5 + $0x24] ss:$16 sps:$4 sm:$0xff]  }
 0x9bd   :  { %v3647_v63 = vmul.f32 -1.442695, %v2265_v3  ;;  %v3648_v16 = vmul.f32 -1.442695, %v2267_v10  ;;  %v6289_v10 = vld [vmem:[%s7205_s5] ss:$16 sps:$4 sm:$0xff]  }
 0x9be   :  { %4156 = vpow2.f32 %v3646_v6  ;;  %v6307_v49 = vld [vmem:[%s7205_s5 + $0x2c] ss:$16 sps:$4 sm:$0xff]   ;;  %v6315_v6 = vld [vmem:[%s7205_s5 + $0x20] ss:$16 sps:$4 sm:$0xff]   ;;  %v6321_v7 = vld [vmem:[%s7205_s5 + $0x28] ss:$16 sps:$4 sm:$0xff]  }
 0x9bf   :  { %4158 = vpow2.f32 %v3647_v63  ;;  %v6327_v1 = vld [vmem:[%s7205_s5 + $0x44] ss:$16 sps:$4 sm:$0xff]   ;;  %v6333_v63 = vld [vmem:[%s7205_s5 + $0x4c] ss:$16 sps:$4 sm:$0xff]  }
 0x9c0   :  { %4160 = vpow2.f32 %v3648_v16  ;;  %7912 = vst [vmem:[#allocation14_spill] sm:$0xff] %v6327_v1  ;;  %7913 = vst [vmem:[#allocation15_spill] sm:$0xff] %v6333_v63  ;;  %v6339_v16 = vld [vmem:[%s7205_s5 + $0x40] ss:$16 sps:$4 sm:$0xff]  }
 0x9c1   :  { %4162 = vtanh.f32 %v2266_v37  ;;  %7914 = vst [vmem:[#allocation16_spill] sm:$0xff] %v6339_v16 }
 0x9c8   :  { %v4157_v62 = vpop.eup %4156 }
 0x9c9   :  { %v4159_v13 = vpop.eup %4158  ;;  %v2271_v43 = vadd.f32 1.0, %v4157_v62  ;;  %v6345_v62 = vld [vmem:[%s7205_s5 + $0x48] ss:$16 sps:$4 sm:$0xff]  }
 0x9ca   :  { %v2277_v0 = vadd.f32 1.0, %v4159_v13  ;;  %v4161_v15 = vpop.eup %4160  ;;  %7915 = vst [vmem:[#allocation17_spill] sm:$0xff] %v6345_v62  ;;  %v6351_v13 = vld [vmem:[%s7205_s5 + $0x64] ss:$16 sps:$4 sm:$0xff]  }
 0x9cb   :  { %4164 = vrcp.f32 %v2271_v43  ;;  %v4163_v42 = vpop.eup %4162  ;;  %v2284_v39 = vadd.f32 1.0, %v4161_v15  ;;  %7916 = vst [vmem:[#allocation18_spill] sm:$0xff] %v6351_v13  ;;  %v6357_v43 = vld [vmem:[%s7205_s5 + $0x6c] ss:$16 sps:$4 sm:$0xff]   ;;  %v6369_v15 = vld [vmem:[%s7205_s5 + $0x68] ss:$16 sps:$4 sm:$0xff]  }
 0x9cc   :  { %4166 = vrcp.f32 %v2277_v0  ;;  %7917 = vst [vmem:[#allocation32_spill] sm:$0xff] %v6357_v43  ;;  %v6363_v0 = vld [vmem:[%s7205_s5 + $0x60] ss:$16 sps:$4 sm:$0xff]   ;;  %7919 = vst [vmem:[#allocation34_spill] sm:$0xff] %v6369_v15 }
 0x9cd   :  { %4168 = vrcp.f32 %v2284_v39  ;;  %7918 = vst [vmem:[#allocation33_spill] sm:$0xff] %v6363_v0  ;;  %v6399_v39 = vld [vmem:[%s7205_s5 + $0xa4] ss:$16 sps:$4 sm:$0xff]  }
 0x9ce   :  { %7924 = vst [vmem:[#allocation75_spill] sm:$0xff] %v6399_v39 }
 0x9d5   :  { %v4165_v41 = vpop.eup %4164 }
 0x9d6   :  { %v4167_v14 = vpop.eup %4166  ;;  %v2288_v18 = vmul.f32 %v4165_v41, %v4163_v42  ;;  %v6375_v42 = vld [vmem:[%s7205_s5 + $0x84] ss:$16 sps:$4 sm:$0xff]   ;;  %v6381_v41 = vld [vmem:[%s7205_s5 + $0x8c] ss:$16 sps:$4 sm:$0xff]  }
 0x9d7   :  { %v2287_v56 = vmul.f32 %v4167_v14, %v6145_v38  ;;  %v4169_v53 = vpop.eup %4168  ;;  %v6295_v38 = vld [vmem:[%s7205_s5 + $0x8] ss:$16 sps:$4 sm:$0xff]   ;;  %7920 = vst [vmem:[#allocation35_spill] sm:$0xff] %v6375_v42  ;;  %7921 = vst [vmem:[#allocation71_spill] sm:$0xff] %v6381_v41  ;;  %v6387_v14 = vld [vmem:[%s7205_s5 + $0x80] ss:$16 sps:$4 sm:$0xff]  }
 0x9d8   :  { %7922 = vst [vmem:[#allocation74_spill] sm:$0xff] %v6387_v14 }
 0x9d9   :  { %v6279_v2 = vadd.f32 %v2288_v18, %v2287_v56  ;;  %v6393_v18 = vld [vmem:[%s7205_s5 + $0x88] ss:$16 sps:$4 sm:$0xff]   ;;  %v6405_v56 = vld [vmem:[%s7205_s5 + $0xac] ss:$16 sps:$4 sm:$0xff]  }
 0x9da   :  { %7923 = vst [vmem:[#allocation73_spill] sm:$0xff] %v6393_v18  ;;  %7925 = vst [vmem:[#allocation19_spill] sm:$0xff] %v6405_v56 }
 0x9db   :  { %4170 = vtanh.f32 %v6279_v2 }
 0x9e5   :  { %v4171_v3 = vpop.eup %4170 }
 0x9e6   :  { %v2291_v48 = vmul.f32 %v4171_v3, %v4169_v53  ;;  %v6411_v53 = vld [vmem:[%s7205_s5 + $0xa0] ss:$16 sps:$4 sm:$0xff]   ;;  %v6417_v3 = vld [vmem:[%s7205_s5 + $0xa8] ss:$16 sps:$4 sm:$0xff]  }
 0x9e7   :  { %7926 = vst [vmem:[#allocation20_spill] sm:$0xff] %v6411_v53  ;;  %7927 = vst [vmem:[#allocation21_spill] sm:$0xff] %v6417_v3 }
 0x9e8   :  { %v6282_v37 = vpack.c.bf16 %v2291_v48, %v2291_v48  ;;  %v6423_v48 = vld [vmem:[%s7205_s5 + $0xc4] ss:$16 sps:$4 sm:$0xff]  }
 0x9e9   :  { %7928 = vst [vmem:[#allocation22_spill] sm:$0xff] %v6423_v48 }
 0x9ea   :  { %2326 = vmatmul.mubr.bf16.vlgmr.msra.gmra.mrb[48].mxu0 %v6282_v37  ;;  %2367 = vmatmul.mubr.bf16.vlgmr.msra.gmra.mrb[48].mxu1 %v6282_v37 }
 0x9eb   :  { %2405 = vmatpush1.bf16.msra.mxu0 %v6289_v10  ;;  %2446 = vmatpush1.bf16.msra.mxu1 %v6295_v38 }
 0x9ec   :  { %2406 = vmatprep.subr.bf16.mxu0 %v6301_v58  ;;  %2447 = vmatprep.subr.bf16.mxu1 %v6307_v49 }
 0x9ed   :  { %2436 = vmatprep.mubr.bf16.mxu0 %v7600_v4  ;;  %2477 = vmatprep.mubr.bf16.mxu1 %v7600_v4 }
 0x9ef   :  { %2407 = vmatpush1.bf16.msra.mxu0 %v6315_v6  ;;  %2448 = vmatpush1.bf16.msra.mxu1 %v6321_v7 }
 0x9f0   :  { %2408 = vmatprep.subr.bf16.mxu0 %v6327_v1  ;;  %2449 = vmatprep.subr.bf16.mxu1 %v6333_v63 }
 0x9f3   :  { %2409 = vmatpush1.bf16.msra.mxu0 %v6339_v16  ;;  %2450 = vmatpush1.bf16.msra.mxu1 %v6345_v62 }
 0x9f4   :  { %2410 = vmatprep.subr.bf16.mxu0 %v6351_v13  ;;  %2451 = vmatprep.subr.bf16.mxu1 %v6357_v43 }
 0x9f7   :  { %2411 = vmatpush1.bf16.msra.mxu0 %v6363_v0  ;;  %2452 = vmatpush1.bf16.msra.mxu1 %v6369_v15 }
 0x9f8   :  { %2412 = vmatprep.subr.bf16.mxu0 %v6375_v42  ;;  %2453 = vmatprep.subr.bf16.mxu1 %v6381_v41 }
 0x9fb   :  { %2413 = vmatpush1.bf16.msra.mxu0 %v6387_v14  ;;  %2454 = vmatpush1.bf16.msra.mxu1 %v6393_v18 }
 0x9fc   :  { %2414 = vmatprep.subr.bf16.mxu0 %v6399_v39  ;;  %2455 = vmatprep.subr.bf16.mxu1 %v6405_v56  ;;  %v6429_v56 = vld [vmem:[%s7205_s5 + $0xcc] ss:$16 sps:$4 sm:$0xff]  }
 0x9fd   :  { %7929 = vst [vmem:[#allocation23_spill] sm:$0xff] %v6429_v56 }
 0x9ff   :  { %2415 = vmatpush1.bf16.msra.mxu0 %v6411_v53  ;;  %2456 = vmatpush1.bf16.msra.mxu1 %v6417_v3  ;;  %v6435_v53 = vld [vmem:[%s7205_s5 + $0xc0] ss:$16 sps:$4 sm:$0xff]   ;;  %v6441_v3 = vld [vmem:[%s7205_s5 + $0xc8] ss:$16 sps:$4 sm:$0xff]  }
 0xa00   :  { %2416 = vmatprep.subr.bf16.mxu0 %v6423_v48  ;;  %2457 = vmatprep.subr.bf16.mxu1 %v6429_v56  ;;  %7930 = vst [vmem:[#allocation24_spill] sm:$0xff] %v6435_v53  ;;  %7931 = vst [vmem:[#allocation25_spill] sm:$0xff] %v6441_v3  ;;  %v6447_v48 = vld [vmem:[%s7205_s5 + $0xe4] ss:$16 sps:$4 sm:$0xff]   ;;  %v6453_v56 = vld [vmem:[%s7205_s5 + $0xec] ss:$16 sps:$4 sm:$0xff]  }
 0xa01   :  { %7932 = vst [vmem:[#allocation26_spill] sm:$0xff] %v6447_v48  ;;  %7933 = vst [vmem:[#allocation27_spill] sm:$0xff] %v6453_v56 }
 0xa03   :  { %2417 = vmatpush1.bf16.msra.mxu0 %v6435_v53  ;;  %2458 = vmatpush1.bf16.msra.mxu1 %v6441_v3  ;;  %v6459_v53 = vld [vmem:[%s7205_s5 + $0xe0] ss:$16 sps:$4 sm:$0xff]   ;;  %v6465_v3 = vld [vmem:[%s7205_s5 + $0xe8] ss:$16 sps:$4 sm:$0xff]  }
 0xa04   :  { %2418 = vmatprep.subr.bf16.mxu0 %v6447_v48  ;;  %2459 = vmatprep.subr.bf16.mxu1 %v6453_v56  ;;  %7934 = vst [vmem:[#allocation28_spill] sm:$0xff] %v6459_v53  ;;  %7935 = vst [vmem:[#allocation29_spill] sm:$0xff] %v6465_v3  ;;  %v6471_v48 = vld [vmem:[%s7206_s2 + $0x4] ss:$16 sps:$4 sm:$0xff]   ;;  %v6477_v56 = vld [vmem:[%s7206_s2 + $0xc] ss:$16 sps:$4 sm:$0xff]  }
 0xa05   :  { %7936 = vst [vmem:[#allocation30_spill] sm:$0xff] %v6471_v48  ;;  %7937 = vst [vmem:[#allocation31_spill] sm:$0xff] %v6477_v56 }
 0xa07   :  { %2419 = vmatpush1.bf16.msra.mxu0 %v6459_v53  ;;  %2460 = vmatpush1.bf16.msra.mxu1 %v6465_v3 }
 0xa08   :  { %2486 = vmatprep.subr.bf16.mxu0 %v6471_v48  ;;  %2527 = vmatprep.subr.bf16.mxu1 %v6477_v56 }
 0xabd   :  { %v2327_v53 = vpop.f32.mrb[48].mxu0  ;;  %v2368_v39 = vpop.f32.mrb[48].mxu1 }
 0xabe   :  { %v3789_v18 = vadd.f32 %v2327_v53, %v7863_v27  ;;  %v2329_v14 = vpop.f32.mrb[49].mxu0  ;;  %v2370_v3 = vpop.f32.mrb[49].mxu1  ;;  %v3791_v56 = vadd.f32 %v2368_v39, %v5336_v31 }
 0xabf   :  { %v3790_v41 = vadd.f32 %v2329_v14, %v5325_v12  ;;  %v2331_v42 = vpop.f32.mrb[50].mxu0  ;;  %v2372_v15 = vpop.f32.mrb[50].mxu1  ;;  %v3792_v62 = vadd.f32 %v2370_v3, %v5331_v28  ;;  %v6517_v3 = vld [vmem:[%s7206_s2 + $0x20] ss:$16 sps:$4 sm:$0xff]  }
 0xac0   :  { %v3649_v0 = vmul.f32 -1.442695, %v3789_v18  ;;  %v2332_v43 = vpop.f32.mrb[51].mxu0  ;;  %v2373_v48 = vpop.f32.mrb[51].mxu1 }
 0xac1   :  { %v3650_v13 = vmul.f32 -1.442695, %v3790_v41  ;;  %v3651_v16 = vmul.f32 -1.442695, %v3792_v62  ;;  %v6523_v48 = vld [vmem:[%s7206_s2 + $0x28] ss:$16 sps:$4 sm:$0xff]  }
 0xac2   :  { %4172 = vpow2.f32 %v3649_v0 }
 0xac3   :  { %4174 = vpow2.f32 %v3650_v13 }
 0xac4   :  { %4176 = vpow2.f32 %v3651_v16 }
 0xac5   :  { %4178 = vtanh.f32 %v3791_v56  ;;  %v6509_v56 = vld [vmem:[%s7206_s2 + $0x2c] ss:$16 sps:$4 sm:$0xff]  }
 0xacc   :  { %v4173_v63 = vpop.eup %4172 }
 0xacd   :  { %v4175_v1 = vpop.eup %4174  ;;  %v2382_v53 = vadd.f32 1.0, %v4173_v63 }
 0xace   :  { %v2388_v27 = vadd.f32 1.0, %v4175_v1  ;;  %v4177_v15 = vpop.eup %4176  ;;  %v6503_v1 = vld [vmem:[%s7206_s2 + $0x24] ss:$16 sps:$4 sm:$0xff]  }
 0xacf   :  { %4180 = vrcp.f32 %v2382_v53  ;;  %v4179_v42 = vpop.eup %4178  ;;  %v2395_v0 = vadd.f32 1.0, %v4177_v15  ;;  %v6529_v53 = vld [vmem:[%s7206_s2 + $0x44] ss:$16 sps:$4 sm:$0xff]   ;;  %v6535_v15 = vld [vmem:[%s7206_s2 + $0x4c] ss:$16 sps:$4 sm:$0xff]  }
 0xad0   :  { %4182 = vrcp.f32 %v2388_v27  ;;  %v6491_v27 = vld [vmem:[%s7206_s2] ss:$16 sps:$4 sm:$0xff]  }
 0xad1   :  { %4184 = vrcp.f32 %v2395_v0  ;;  %v6565_v0 = vld [vmem:[%s7206_s2 + $0x60] ss:$16 sps:$4 sm:$0xff]  }
 0xad9   :  { %v4181_v43 = vpop.eup %4180 }
 0xada   :  { %v4183_v14 = vpop.eup %4182  ;;  %v2399_v41 = vmul.f32 %v4181_v43, %v4179_v42  ;;  %v6541_v42 = vld [vmem:[%s7206_s2 + $0x40] ss:$16 sps:$4 sm:$0xff]   ;;  %v6547_v43 = vld [vmem:[%s7206_s2 + $0x48] ss:$16 sps:$4 sm:$0xff]  }
 0xadb   :  { %v2398_v13 = vmul.f32 %v4183_v14, %v6191_v52  ;;  %v4185_v62 = vpop.eup %4184  ;;  %v6497_v52 = vld [vmem:[%s7206_s2 + $0x8] ss:$16 sps:$4 sm:$0xff]   ;;  %v6553_v14 = vld [vmem:[%s7206_s2 + $0x64] ss:$16 sps:$4 sm:$0xff]  }
 0xadd   :  { %v6485_v18 = vadd.f32 %v2399_v41, %v2398_v13  ;;  %v6559_v41 = vld [vmem:[%s7206_s2 + $0x6c] ss:$16 sps:$4 sm:$0xff]   ;;  %v6571_v13 = vld [vmem:[%s7206_s2 + $0x68] ss:$16 sps:$4 sm:$0xff]  }
 0xadf   :  { %4186 = vtanh.f32 %v6485_v18 }
 0xae9   :  { %v4187_v63 = vpop.eup %4186 }
 0xaea   :  { %v2402_v16 = vmul.f32 %v4187_v63, %v4185_v62  ;;  %v6577_v62 = vld [vmem:[%s7206_s2 + $0x84] ss:$16 sps:$4 sm:$0xff]   ;;  %v6583_v63 = vld [vmem:[%s7206_s2 + $0x8c] ss:$16 sps:$4 sm:$0xff]  }
 0xaeb   :  { %7938 = vst [vmem:[#allocation36_spill] sm:$0xff] %v6577_v62  ;;  %7939 = vst [vmem:[#allocation37_spill] sm:$0xff] %v6583_v63 }
 0xaec   :  { %v2403_v39 = vpack.c.bf16 %v2402_v16, %v2402_v16  ;;  %v6589_v16 = vld [vmem:[%s7206_s2 + $0x80] ss:$16 sps:$4 sm:$0xff]  }
 0xaed   :  { %7940 = vst [vmem:[#allocation38_spill] sm:$0xff] %v6589_v16 }
 0xaee   :  { %2437 = vmatmul.mubr.bf16.vlgmr.msra.gmra.mrb[56].mxu0 %v2403_v39  ;;  %2478 = vmatmul.mubr.bf16.vlgmr.msra.gmra.mrb[56].mxu1 %v2403_v39  ;;  %v6595_v39 = vld [vmem:[%s7206_s2 + $0x88] ss:$16 sps:$4 sm:$0xff]  }
 0xaef   :  { %2487 = vmatpush1.bf16.msra.mxu0 %v6491_v27  ;;  %2528 = vmatpush1.bf16.msra.mxu1 %v6497_v52  ;;  %7941 = vst [vmem:[#allocation39_spill] sm:$0xff] %v6595_v39 }
 0xaf0   :  { %2488 = vmatprep.subr.bf16.mxu0 %v6503_v1  ;;  %2529 = vmatprep.subr.bf16.mxu1 %v6509_v56 }
 0xaf1   :  { %2518 = vmatprep.mubr.bf16.mxu0 %v7600_v4  ;;  %2559 = vmatprep.mubr.bf16.mxu1 %v7600_v4 }
 0xaf3   :  { %2489 = vmatpush1.bf16.msra.mxu0 %v6517_v3  ;;  %2530 = vmatpush1.bf16.msra.mxu1 %v6523_v48 }
 0xaf4   :  { %2490 = vmatprep.subr.bf16.mxu0 %v6529_v53  ;;  %2531 = vmatprep.subr.bf16.mxu1 %v6535_v15 }
 0xaf7   :  { %2491 = vmatpush1.bf16.msra.mxu0 %v6541_v42  ;;  %2532 = vmatpush1.bf16.msra.mxu1 %v6547_v43 }
 0xaf8   :  { %2492 = vmatprep.subr.bf16.mxu0 %v6553_v14  ;;  %2533 = vmatprep.subr.bf16.mxu1 %v6559_v41 }
 0xafb   :  { %2493 = vmatpush1.bf16.msra.mxu0 %v6565_v0  ;;  %2534 = vmatpush1.bf16.msra.mxu1 %v6571_v13 }
 0xafc   :  { %2494 = vmatprep.subr.bf16.mxu0 %v6577_v62  ;;  %2535 = vmatprep.subr.bf16.mxu1 %v6583_v63  ;;  %v6601_v62 = vld [vmem:[%s7206_s2 + $0xa4] ss:$16 sps:$4 sm:$0xff]   ;;  %v6607_v63 = vld [vmem:[%s7206_s2 + $0xac] ss:$16 sps:$4 sm:$0xff]  }
 0xafd   :  { %7942 = vst [vmem:[#allocation40_spill] sm:$0xff] %v6601_v62  ;;  %7943 = vst [vmem:[#allocation41_spill] sm:$0xff] %v6607_v63 }
 0xaff   :  { %2495 = vmatpush1.bf16.msra.mxu0 %v6589_v16  ;;  %2536 = vmatpush1.bf16.msra.mxu1 %v6595_v39  ;;  %v6613_v16 = vld [vmem:[%s7206_s2 + $0xa0] ss:$16 sps:$4 sm:$0xff]   ;;  %v6619_v39 = vld [vmem:[%s7206_s2 + $0xa8] ss:$16 sps:$4 sm:$0xff]  }
 0xb00   :  { %2496 = vmatprep.subr.bf16.mxu0 %v6601_v62  ;;  %2537 = vmatprep.subr.bf16.mxu1 %v6607_v63  ;;  %7944 = vst [vmem:[#allocation42_spill] sm:$0xff] %v6613_v16  ;;  %7945 = vst [vmem:[#allocation43_spill] sm:$0xff] %v6619_v39  ;;  %v6625_v62 = vld [vmem:[%s7206_s2 + $0xc4] ss:$16 sps:$4 sm:$0xff]   ;;  %v6631_v63 = vld [vmem:[%s7206_s2 + $0xcc] ss:$16 sps:$4 sm:$0xff]  }
 0xb01   :  { %7946 = vst [vmem:[#allocation44_spill] sm:$0xff] %v6625_v62  ;;  %7947 = vst [vmem:[#allocation45_spill] sm:$0xff] %v6631_v63 }
 0xb03   :  { %2497 = vmatpush1.bf16.msra.mxu0 %v6613_v16  ;;  %2538 = vmatpush1.bf16.msra.mxu1 %v6619_v39  ;;  %v6637_v16 = vld [vmem:[%s7206_s2 + $0xc0] ss:$16 sps:$4 sm:$0xff]   ;;  %v6643_v39 = vld [vmem:[%s7206_s2 + $0xc8] ss:$16 sps:$4 sm:$0xff]  }
 0xb04   :  { %2498 = vmatprep.subr.bf16.mxu0 %v6625_v62  ;;  %2539 = vmatprep.subr.bf16.mxu1 %v6631_v63  ;;  %7948 = vst [vmem:[#allocation46_spill] sm:$0xff] %v6637_v16  ;;  %7949 = vst [vmem:[#allocation47_spill] sm:$0xff] %v6643_v39  ;;  %v6649_v62 = vld [vmem:[%s7206_s2 + $0xe4] ss:$16 sps:$4 sm:$0xff]   ;;  %v6655_v63 = vld [vmem:[%s7206_s2 + $0xec] ss:$16 sps:$4 sm:$0xff]  }
 0xb05   :  { %7950 = vst [vmem:[#allocation48_spill] sm:$0xff] %v6649_v62  ;;  %7951 = vst [vmem:[#allocation49_spill] sm:$0xff] %v6655_v63 }
 0xb07   :  { %2499 = vmatpush1.bf16.msra.mxu0 %v6637_v16  ;;  %2540 = vmatpush1.bf16.msra.mxu1 %v6643_v39  ;;  %v6661_v16 = vld [vmem:[%s7206_s2 + $0xe0] ss:$16 sps:$4 sm:$0xff]   ;;  %v6667_v39 = vld [vmem:[%s7206_s2 + $0xe8] ss:$16 sps:$4 sm:$0xff]  }
 0xb08   :  { %2500 = vmatprep.subr.bf16.mxu0 %v6649_v62  ;;  %2541 = vmatprep.subr.bf16.mxu1 %v6655_v63  ;;  %7952 = vst [vmem:[#allocation50_spill] sm:$0xff] %v6661_v16  ;;  %7953 = vst [vmem:[#allocation51_spill] sm:$0xff] %v6667_v39  ;;  %v6673_v62 = vld [vmem:[%s7207_s4 + $0x4] ss:$16 sps:$4 sm:$0xff]  }
 0xb09   :  { %7954 = vst [vmem:[#allocation52_spill] sm:$0xff] %v6673_v62 }
 0xb0b   :  { %2501 = vmatpush1.bf16.msra.mxu0 %v6661_v16  ;;  %2542 = vmatpush1.bf16.msra.mxu1 %v6667_v39 }
 0xb0c   :  { %2597 = vmatprep.subr.bf16.mxu0 %v6673_v62  ;;  %2638 = vmatprep.subr.bf16.mxu1 %v7877_v11 }
 0xb0e   :  { %2519 = vmatmul.mubr.bf16.vlgmr.msra.gmra.mrb[60].mxu0 %v6282_v37  ;;  %2560 = vmatmul.mubr.bf16.vlgmr.msra.gmra.mrb[60].mxu1 %v6282_v37 }
 0xb0f   :  { %2598 = vmatpush1.bf16.msra.mxu0 %v7878_v40  ;;  %2639 = vmatpush1.bf16.msra.mxu1 %v7879_v45  ;;  %v7955_v45 = vld [vmem:[#allocation79_spill] sm:$0xff] }
 0xb10   :  { %2599 = vmatprep.subr.bf16.mxu0 %v7880_v35  ;;  %2640 = vmatprep.subr.bf16.mxu1 %v7881_v34  ;;  %v7956_v34 = vld [vmem:[#allocation82_spill] sm:$0xff] }
 0xb11   :  { %2629 = vmatprep.mubr.bf16.mxu0 %v7600_v4  ;;  %2670 = vmatprep.mubr.bf16.mxu1 %v7600_v4 }
 0xb13   :  { %2600 = vmatpush1.bf16.msra.mxu0 %v7882_v46  ;;  %2641 = vmatpush1.bf16.msra.mxu1 %v7883_v54 }
 0xb14   :  { %2601 = vmatprep.subr.bf16.mxu0 %v7884_v60  ;;  %2642 = vmatprep.subr.bf16.mxu1 %v7885_v20  ;;  %v7957_v20 = vld [vmem:[#allocation81_spill] sm:$0xff] }
 0xb17   :  { %2602 = vmatpush1.bf16.msra.mxu0 %v7886_v44  ;;  %2643 = vmatpush1.bf16.msra.mxu1 %v7887_v21  ;;  %v7958_v21 = vld [vmem:[#allocation83_spill] sm:$0xff] }
 0xb18   :  { %2603 = vmatprep.subr.bf16.mxu0 %v7888_v22  ;;  %2644 = vmatprep.subr.bf16.mxu1 %v7889_v23 }
 0xb1b   :  { %2604 = vmatpush1.bf16.msra.mxu0 %v7890_v24  ;;  %2645 = vmatpush1.bf16.msra.mxu1 %v7891_v26 }
 0xb1c   :  { %2605 = vmatprep.subr.bf16.mxu0 %v7892_v51  ;;  %2646 = vmatprep.subr.bf16.mxu1 %v7893_v29 }
 0xb1f   :  { %2606 = vmatpush1.bf16.msra.mxu0 %v7894_v30  ;;  %2647 = vmatpush1.bf16.msra.mxu1 %v7895_v32 }
 0xb20   :  { %2607 = vmatprep.subr.bf16.mxu0 %v7896_v33  ;;  %2648 = vmatprep.subr.bf16.mxu1 %v7897_v17 }
 0xb23   :  { %2608 = vmatpush1.bf16.msra.mxu0 %v7898_v61  ;;  %2649 = vmatpush1.bf16.msra.mxu1 %v7899_v25 }
 0xb24   :  { %2609 = vmatprep.subr.bf16.mxu0 %v7900_v19  ;;  %2650 = vmatprep.subr.bf16.mxu1 %v7901_v57 }
 0xb27   :  { %2610 = vmatpush1.bf16.msra.mxu0 %v7902_v59  ;;  %2651 = vmatpush1.bf16.msra.mxu1 %v7903_v47 }
 0xb28   :  { %2611 = vmatprep.subr.bf16.mxu0 %v7904_v55  ;;  %2652 = vmatprep.subr.bf16.mxu1 %v7905_v9 }
 0xb2b   :  { %2612 = vmatpush1.bf16.msra.mxu0 %v7906_v8  ;;  %2653 = vmatpush1.bf16.msra.mxu1 %v7907_v36 }
 0xb2c   :  { %2708 = vmatprep.subr.bf16.mxu0 %v6265_v50  ;;  %2749 = vmatprep.subr.bf16.mxu1 %v6271_v5 }
 0xbe1   :  { %v2520_v11 = vpop.f32.mrb[60].mxu0  ;;  %v2561_v40 = vpop.f32.mrb[60].mxu1 }
 0xbe2   :  { %v2568_v35 = vadd.f32 %v2520_v11, %v7955_v45  ;;  %v2570_v46 = vadd.f32 %v2561_v40, %v7956_v34  ;;  %v2522_v54 = vpop.f32.mrb[61].mxu0  ;;  %v2563_v60 = vpop.f32.mrb[61].mxu1  ;;  %v7961_v34 = vld [vmem:[#allocation16_spill] sm:$0xff] }
 0xbe3   :  { %v2569_v44 = vadd.f32 %v2522_v54, %v7957_v20  ;;  %v2571_v22 = vadd.f32 %v2563_v60, %v7958_v21  ;;  %v2524_v23 = vpop.f32.mrb[62].mxu0  ;;  %v2565_v24 = vpop.f32.mrb[62].mxu1  ;;  %v7963_v54 = vld [vmem:[#allocation18_spill] sm:$0xff]  ;;  %v7964_v60 = vld [vmem:[#allocation32_spill] sm:$0xff]  ;;  %v7965_v20 = vld [vmem:[#allocation33_spill] sm:$0xff] }
 0xbe4   :  { %v3652_v26 = vmul.f32 -1.442695, %v2568_v35  ;;  %v2525_v51 = vpop.f32.mrb[63].mxu0  ;;  %v2566_v29 = vpop.f32.mrb[63].mxu1  ;;  %v7960_v35 = vld [vmem:[#allocation15_spill] sm:$0xff]  ;;  %v7969_v23 = vld [vmem:[#allocation74_spill] sm:$0xff] }
 0xbe5   :  { %v3653_v30 = vmul.f32 -1.442695, %v2569_v44  ;;  %v3654_v32 = vmul.f32 -1.442695, %v2571_v22  ;;  %v7966_v44 = vld [vmem:[#allocation34_spill] sm:$0xff]  ;;  %v7967_v21 = vld [vmem:[#allocation35_spill] sm:$0xff] }
 0xbe6   :  { %4188 = vpow2.f32 %v3652_v26  ;;  %v7968_v22 = vld [vmem:[#allocation71_spill] sm:$0xff]  ;;  %v7970_v24 = vld [vmem:[#allocation73_spill] sm:$0xff]  ;;  %v7973_v29 = vld [vmem:[#allocation20_spill] sm:$0xff] }
 0xbe7   :  { %4190 = vpow2.f32 %v3653_v30  ;;  %v7971_v26 = vld [vmem:[#allocation75_spill] sm:$0xff]  ;;  %v7974_v30 = vld [vmem:[#allocation21_spill] sm:$0xff] }
 0xbe8   :  { %4192 = vpow2.f32 %v3654_v32  ;;  %v7972_v51 = vld [vmem:[#allocation19_spill] sm:$0xff]  ;;  %v7975_v32 = vld [vmem:[#allocation22_spill] sm:$0xff] }
 0xbe9   :  { %4194 = vtanh.f32 %v2570_v46  ;;  %v7962_v46 = vld [vmem:[#allocation17_spill] sm:$0xff] }
 0xbf0   :  { %v4189_v33 = vpop.eup %4188 }
 0xbf1   :  { %v4191_v17 = vpop.eup %4190  ;;  %v2575_v61 = vadd.f32 1.0, %v4189_v33  ;;  %v7976_v33 = vld [vmem:[#allocation23_spill] sm:$0xff] }
 0xbf2   :  { %v2581_v25 = vadd.f32 1.0, %v4191_v17  ;;  %v4193_v19 = vpop.eup %4192  ;;  %v7977_v17 = vld [vmem:[#allocation24_spill] sm:$0xff] }
 0xbf3   :  { %4196 = vrcp.f32 %v2575_v61  ;;  %v4195_v57 = vpop.eup %4194  ;;  %v2588_v9 = vadd.f32 1.0, %v4193_v19  ;;  %v7978_v61 = vld [vmem:[#allocation25_spill] sm:$0xff]  ;;  %v7980_v19 = vld [vmem:[#allocation27_spill] sm:$0xff] }
 0xbf4   :  { %4198 = vrcp.f32 %v2581_v25  ;;  %v7979_v25 = vld [vmem:[#allocation26_spill] sm:$0xff] }
 0xbf5   :  { %4200 = vrcp.f32 %v2588_v9 }
 0xbfd   :  { %v4197_v59 = vpop.eup %4196 }
 0xbfe   :  { %v4199_v47 = vpop.eup %4198  ;;  %v2592_v55 = vmul.f32 %v4197_v59, %v4195_v57  ;;  %v7981_v57 = vld [vmem:[#allocation28_spill] sm:$0xff]  ;;  %v7982_v59 = vld [vmem:[#allocation29_spill] sm:$0xff] }
 0xbff   :  { %v2591_v8 = vmul.f32 %v4199_v47, %v6279_v2  ;;  %v4201_v37 = vpop.eup %4200  ;;  %v7959_v2 = vld [vmem:[#allocation14_spill] sm:$0xff] }
 0xc00   :  { %v7983_v47 = vld [vmem:[#allocation30_spill] sm:$0xff] }
 0xc01   :  { %v6718_v36 = vadd.f32 %v2592_v55, %v2591_v8  ;;  %v7984_v55 = vld [vmem:[#allocation31_spill] sm:$0xff] }
 0xc03   :  { %4202 = vtanh.f32 %v6718_v36 }
 0xc0d   :  { %v4203_v11 = vpop.eup %4202 }
 0xc0e   :  { %v2595_v40 = vmul.f32 %v4203_v11, %v4201_v37  ;;  %v7985_v37 = vld [vmem:[#allocation92_spill] sm:$0xff] }
 0xc10   :  { %v6721_v45 = vpack.c.bf16 %v2595_v40, %v2595_v40 }
 0xc12   :  { %2630 = vmatmul.mubr.bf16.vlgmr.msra.gmra.mrb[56].mxu0 %v6721_v45  ;;  %2671 = vmatmul.mubr.bf16.vlgmr.msra.gmra.mrb[56].mxu1 %v6721_v45 }
 0xc13   :  { %2709 = vmatpush1.bf16.msra.mxu0 %v6289_v10  ;;  %2750 = vmatpush1.bf16.msra.mxu1 %v6295_v38 }
 0xc14   :  { %2710 = vmatprep.subr.bf16.mxu0 %v6301_v58  ;;  %2751 = vmatprep.subr.bf16.mxu1 %v6307_v49 }
 0xc15   :  { %2740 = vmatprep.mubr.bf16.mxu0 %v7600_v4  ;;  %2781 = vmatprep.mubr.bf16.mxu1 %v7600_v4 }
 0xc17   :  { %2711 = vmatpush1.bf16.msra.mxu0 %v6315_v6  ;;  %2752 = vmatpush1.bf16.msra.mxu1 %v6321_v7 }
 0xc18   :  { %2712 = vmatprep.subr.bf16.mxu0 %v7959_v2  ;;  %2753 = vmatprep.subr.bf16.mxu1 %v7960_v35 }
 0xc1b   :  { %2713 = vmatpush1.bf16.msra.mxu0 %v7961_v34  ;;  %2754 = vmatpush1.bf16.msra.mxu1 %v7962_v46 }
 0xc1c   :  { %2714 = vmatprep.subr.bf16.mxu0 %v7963_v54  ;;  %2755 = vmatprep.subr.bf16.mxu1 %v7964_v60 }
 0xc1f   :  { %2715 = vmatpush1.bf16.msra.mxu0 %v7965_v20  ;;  %2756 = vmatpush1.bf16.msra.mxu1 %v7966_v44 }
 0xc20   :  { %2716 = vmatprep.subr.bf16.mxu0 %v7967_v21  ;;  %2757 = vmatprep.subr.bf16.mxu1 %v7968_v22 }
 0xc23   :  { %2717 = vmatpush1.bf16.msra.mxu0 %v7969_v23  ;;  %2758 = vmatpush1.bf16.msra.mxu1 %v7970_v24 }
 0xc24   :  { %2718 = vmatprep.subr.bf16.mxu0 %v7971_v26  ;;  %2759 = vmatprep.subr.bf16.mxu1 %v7972_v51 }
 0xc27   :  { %2719 = vmatpush1.bf16.msra.mxu0 %v7973_v29  ;;  %2760 = vmatpush1.bf16.msra.mxu1 %v7974_v30 }
 0xc28   :  { %2720 = vmatprep.subr.bf16.mxu0 %v7975_v32  ;;  %2761 = vmatprep.subr.bf16.mxu1 %v7976_v33 }
 0xc2b   :  { %2721 = vmatpush1.bf16.msra.mxu0 %v7977_v17  ;;  %2762 = vmatpush1.bf16.msra.mxu1 %v7978_v61 }
 0xc2c   :  { %2722 = vmatprep.subr.bf16.mxu0 %v7979_v25  ;;  %2763 = vmatprep.subr.bf16.mxu1 %v7980_v19 }
 0xc2f   :  { %2723 = vmatpush1.bf16.msra.mxu0 %v7981_v57  ;;  %2764 = vmatpush1.bf16.msra.mxu1 %v7982_v59 }
 0xc30   :  { %2790 = vmatprep.subr.bf16.mxu0 %v7983_v47  ;;  %2831 = vmatprep.subr.bf16.mxu1 %v7984_v55 }
 0xce5   :  { %v2631_v9 = vpop.f32.mrb[56].mxu0  ;;  %v2672_v8 = vpop.f32.mrb[56].mxu1 }
 0xce6   :  { %v3793_v11 = vadd.f32 %v2631_v9, %v7985_v37  ;;  %v2633_v40 = vpop.f32.mrb[57].mxu0  ;;  %v2674_v17 = vpop.f32.mrb[57].mxu1  ;;  %v3795_v55 = vadd.f32 %v2672_v8, %v5336_v31  ;;  %v7988_v8 = vld [vmem:[#allocation38_spill] sm:$0xff] }
 0xce7   :  { %v3794_v61 = vadd.f32 %v2633_v40, %v5325_v12  ;;  %v2635_v33 = vpop.f32.mrb[58].mxu0  ;;  %v2676_v25 = vpop.f32.mrb[58].mxu1  ;;  %v3796_v47 = vadd.f32 %v2674_v17, %v5331_v28  ;;  %v7991_v40 = vld [vmem:[#allocation41_spill] sm:$0xff] }
 0xce8   :  { %v3655_v32 = vmul.f32 -1.442695, %v3793_v11  ;;  %v2636_v19 = vpop.f32.mrb[59].mxu0  ;;  %v2677_v30 = vpop.f32.mrb[59].mxu1  ;;  %v7990_v11 = vld [vmem:[#allocation40_spill] sm:$0xff] }
 0xce9   :  { %v3656_v57 = vmul.f32 -1.442695, %v3794_v61  ;;  %v3657_v59 = vmul.f32 -1.442695, %v3796_v47 }
 0xcea   :  { %4204 = vpow2.f32 %v3655_v32 }
 0xceb   :  { %4206 = vpow2.f32 %v3656_v57 }
 0xcec   :  { %4208 = vpow2.f32 %v3657_v59 }
 0xced   :  { %4210 = vtanh.f32 %v3795_v55 }
 0xcf4   :  { %v4205_v29 = vpop.eup %4204 }
 0xcf5   :  { %v4207_v51 = vpop.eup %4206  ;;  %v2686_v9 = vadd.f32 1.0, %v4205_v29 }
 0xcf6   :  { %v2692_v37 = vadd.f32 1.0, %v4207_v51  ;;  %v4209_v33 = vpop.eup %4208  ;;  %v7987_v51 = vld [vmem:[#allocation37_spill] sm:$0xff] }
 0xcf7   :  { %4212 = vrcp.f32 %v2686_v9  ;;  %v4211_v25 = vpop.eup %4210  ;;  %v2699_v32 = vadd.f32 1.0, %v4209_v33  ;;  %v7992_v9 = vld [vmem:[#allocation42_spill] sm:$0xff]  ;;  %v7993_v33 = vld [vmem:[#allocation43_spill] sm:$0xff] }
 0xcf8   :  { %4214 = vrcp.f32 %v2692_v37  ;;  %v7989_v37 = vld [vmem:[#allocation39_spill] sm:$0xff] }
 0xcf9   :  { %4216 = vrcp.f32 %v2699_v32  ;;  %v7998_v32 = vld [vmem:[#allocation48_spill] sm:$0xff] }
 0xd01   :  { %v4213_v19 = vpop.eup %4212 }
 0xd02   :  { %v4215_v30 = vpop.eup %4214  ;;  %v2703_v61 = vmul.f32 %v4213_v19, %v4211_v25  ;;  %v7994_v25 = vld [vmem:[#allocation44_spill] sm:$0xff]  ;;  %v7995_v19 = vld [vmem:[#allocation45_spill] sm:$0xff] }
 0xd03   :  { %v2702_v57 = vmul.f32 %v4215_v30, %v6485_v18  ;;  %v4217_v47 = vpop.eup %4216  ;;  %v7986_v18 = vld [vmem:[#allocation36_spill] sm:$0xff]  ;;  %v7996_v30 = vld [vmem:[#allocation46_spill] sm:$0xff] }
 0xd05   :  { %v6764_v17 = vadd.f32 %v2703_v61, %v2702_v57  ;;  %v7997_v61 = vld [vmem:[#allocation47_spill] sm:$0xff] }
 0xd06   :  { %v6803_v57 = vld [vmem:[%s7207_s4 + $0xc] ss:$16 sps:$4 sm:$0xff]  }
 0xd07   :  { %4218 = vtanh.f32 %v6764_v17  ;;  %7999 = vst [vmem:[#allocation53_spill] sm:$0xff] %v6803_v57 }
 0xd11   :  { %v4219_v29 = vpop.eup %4218 }
 0xd12   :  { %v2706_v59 = vmul.f32 %v4219_v29, %v4217_v47  ;;  %v6811_v47 = vld [vmem:[%s7207_s4] ss:$16 sps:$4 sm:$0xff]   ;;  %v6817_v29 = vld [vmem:[%s7207_s4 + $0x8] ss:$16 sps:$4 sm:$0xff]  }
 0xd13   :  { %8000 = vst [vmem:[#allocation54_spill] sm:$0xff] %v6811_v47  ;;  %8001 = vst [vmem:[#allocation55_spill] sm:$0xff] %v6817_v29 }
 0xd14   :  { %v2707_v55 = vpack.c.bf16 %v2706_v59, %v2706_v59  ;;  %v6823_v59 = vld [vmem:[%s7207_s4 + $0x24] ss:$16 sps:$4 sm:$0xff]  }
 0xd15   :  { %8002 = vst [vmem:[#allocation56_spill] sm:$0xff] %v6823_v59 }
 0xd16   :  { %2741 = vmatmul.mubr.bf16.vlgmr.msra.gmra.mrb[64].mxu0 %v2707_v55  ;;  %2782 = vmatmul.mubr.bf16.vlgmr.msra.gmra.mrb[64].mxu1 %v2707_v55  ;;  %v6837_v55 = vld [vmem:[%s7207_s4 + $0x20] ss:$16 sps:$4 sm:$0xff]  }
 0xd17   :  { %2791 = vmatpush1.bf16.msra.mxu0 %v6491_v27  ;;  %2832 = vmatpush1.bf16.msra.mxu1 %v6497_v52  ;;  %8004 = vst [vmem:[#allocation58_spill] sm:$0xff] %v6837_v55 }
 0xd18   :  { %2792 = vmatprep.subr.bf16.mxu0 %v6503_v1  ;;  %2833 = vmatprep.subr.bf16.mxu1 %v6509_v56 }
 0xd19   :  { %2822 = vmatprep.mubr.bf16.mxu0 %v7600_v4  ;;  %2863 = vmatprep.mubr.bf16.mxu1 %v7600_v4 }
 0xd1b   :  { %2793 = vmatpush1.bf16.msra.mxu0 %v6517_v3  ;;  %2834 = vmatpush1.bf16.msra.mxu1 %v6523_v48 }
 0xd1c   :  { %2794 = vmatprep.subr.bf16.mxu0 %v6529_v53  ;;  %2835 = vmatprep.subr.bf16.mxu1 %v6535_v15 }
 0xd1f   :  { %2795 = vmatpush1.bf16.msra.mxu0 %v6541_v42  ;;  %2836 = vmatpush1.bf16.msra.mxu1 %v6547_v43 }
 0xd20   :  { %2796 = vmatprep.subr.bf16.mxu0 %v6553_v14  ;;  %2837 = vmatprep.subr.bf16.mxu1 %v6559_v41 }
 0xd23   :  { %2797 = vmatpush1.bf16.msra.mxu0 %v6565_v0  ;;  %2838 = vmatpush1.bf16.msra.mxu1 %v6571_v13 }
 0xd24   :  { %2798 = vmatprep.subr.bf16.mxu0 %v7986_v18  ;;  %2839 = vmatprep.subr.bf16.mxu1 %v7987_v51 }
 0xd27   :  { %2799 = vmatpush1.bf16.msra.mxu0 %v7988_v8  ;;  %2840 = vmatpush1.bf16.msra.mxu1 %v7989_v37 }
 0xd28   :  { %2800 = vmatprep.subr.bf16.mxu0 %v7990_v11  ;;  %2841 = vmatprep.subr.bf16.mxu1 %v7991_v40 }
 0xd2b   :  { %2801 = vmatpush1.bf16.msra.mxu0 %v7992_v9  ;;  %2842 = vmatpush1.bf16.msra.mxu1 %v7993_v33 }
 0xd2c   :  { %2802 = vmatprep.subr.bf16.mxu0 %v7994_v25  ;;  %2843 = vmatprep.subr.bf16.mxu1 %v7995_v19 }
 0xd2f   :  { %2803 = vmatpush1.bf16.msra.mxu0 %v7996_v30  ;;  %2844 = vmatpush1.bf16.msra.mxu1 %v7997_v61  ;;  %v8033_v61 = vld [vmem:[#allocation88_spill] sm:$0xff] }
 0xd30   :  { %2804 = vmatprep.subr.bf16.mxu0 %v7998_v32  ;;  %2845 = vmatprep.subr.bf16.mxu1 %v6655_v63 }
 0xd33   :  { %2805 = vmatpush1.bf16.msra.mxu0 %v6661_v16  ;;  %2846 = vmatpush1.bf16.msra.mxu1 %v6667_v39 }
 0xd34   :  { %2901 = vmatprep.subr.bf16.mxu0 %v6673_v62  ;;  %2942 = vmatprep.subr.bf16.mxu1 %v6803_v57  ;;  %v8031_v62 = vld [vmem:[#allocation86_spill] sm:$0xff] }
 0xd36   :  { %2823 = vmatmul.mubr.bf16.vlgmr.msra.gmra.mrb[68].mxu0 %v6721_v45  ;;  %2864 = vmatmul.mubr.bf16.vlgmr.msra.gmra.mrb[68].mxu1 %v6721_v45  ;;  %v6829_v45 = vld [vmem:[%s7207_s4 + $0x2c] ss:$16 sps:$4 sm:$0xff]  }
 0xd37   :  { %2902 = vmatpush1.bf16.msra.mxu0 %v6811_v47  ;;  %2943 = vmatpush1.bf16.msra.mxu1 %v6817_v29  ;;  %8003 = vst [vmem:[#allocation57_spill] sm:$0xff] %v6829_v45  ;;  %v6855_v29 = vld [vmem:[%s7207_s4 + $0x4c] ss:$16 sps:$4 sm:$0xff]   ;;  %v8030_v47 = vld [vmem:[#allocation84_spill] sm:$0xff] }
 0xd38   :  { %2903 = vmatprep.subr.bf16.mxu0 %v6823_v59  ;;  %2944 = vmatprep.subr.bf16.mxu1 %v6829_v45  ;;  %v6843_v59 = vld [vmem:[%s7207_s4 + $0x28] ss:$16 sps:$4 sm:$0xff]   ;;  %v6849_v45 = vld [vmem:[%s7207_s4 + $0x44] ss:$16 sps:$4 sm:$0xff]   ;;  %8007 = vst [vmem:[#allocation61_spill] sm:$0xff] %v6855_v29 }
 0xd39   :  { %2933 = vmatprep.mubr.bf16.mxu0 %v7600_v4  ;;  %2974 = vmatprep.mubr.bf16.mxu1 %v7600_v4  ;;  %8005 = vst [vmem:[#allocation59_spill] sm:$0xff] %v6843_v59  ;;  %8006 = vst [vmem:[#allocation60_spill] sm:$0xff] %v6849_v45 }
 0xd3b   :  { %2904 = vmatpush1.bf16.msra.mxu0 %v6837_v55  ;;  %2945 = vmatpush1.bf16.msra.mxu1 %v6843_v59  ;;  %v6861_v55 = vld [vmem:[%s7207_s4 + $0x40] ss:$16 sps:$4 sm:$0xff]   ;;  %v6867_v59 = vld [vmem:[%s7207_s4 + $0x48] ss:$16 sps:$4 sm:$0xff]  }
 0xd3c   :  { %2905 = vmatprep.subr.bf16.mxu0 %v6849_v45  ;;  %2946 = vmatprep.subr.bf16.mxu1 %v6855_v29  ;;  %8008 = vst [vmem:[#allocation62_spill] sm:$0xff] %v6861_v55  ;;  %8009 = vst [vmem:[#allocation63_spill] sm:$0xff] %v6867_v59  ;;  %v6873_v45 = vld [vmem:[%s7207_s4 + $0x64] ss:$16 sps:$4 sm:$0xff]   ;;  %v6879_v29 = vld [vmem:[%s7207_s4 + $0x6c] ss:$16 sps:$4 sm:$0xff]  }
 0xd3d   :  { %8010 = vst [vmem:[#allocation64_spill] sm:$0xff] %v6873_v45  ;;  %8011 = vst [vmem:[#allocation66_spill] sm:$0xff] %v6879_v29 }
 0xd3f   :  { %2906 = vmatpush1.bf16.msra.mxu0 %v6861_v55  ;;  %2947 = vmatpush1.bf16.msra.mxu1 %v6867_v59  ;;  %v6885_v55 = vld [vmem:[%s7207_s4 + $0x60] ss:$16 sps:$4 sm:$0xff]   ;;  %v6891_v59 = vld [vmem:[%s7207_s4 + $0x68] ss:$16 sps:$4 sm:$0xff]  }
 0xd40   :  { %2907 = vmatprep.subr.bf16.mxu0 %v6873_v45  ;;  %2948 = vmatprep.subr.bf16.mxu1 %v6879_v29  ;;  %8012 = vst [vmem:[#allocation65_spill] sm:$0xff] %v6885_v55  ;;  %8013 = vst [vmem:[#allocation67_spill] sm:$0xff] %v6891_v59  ;;  %v6897_v45 = vld [vmem:[%s7207_s4 + $0x84] ss:$16 sps:$4 sm:$0xff]   ;;  %v6903_v29 = vld [vmem:[%s7207_s4 + $0x8c] ss:$16 sps:$4 sm:$0xff]  }
 0xd41   :  { %8014 = vst [vmem:[#allocation68_spill] sm:$0xff] %v6897_v45  ;;  %8015 = vst [vmem:[#allocation70_spill] sm:$0xff] %v6903_v29 }
 0xd43   :  { %2908 = vmatpush1.bf16.msra.mxu0 %v6885_v55  ;;  %2949 = vmatpush1.bf16.msra.mxu1 %v6891_v59  ;;  %v6909_v55 = vld [vmem:[%s7207_s4 + $0x80] ss:$16 sps:$4 sm:$0xff]   ;;  %v6915_v59 = vld [vmem:[%s7207_s4 + $0x88] ss:$16 sps:$4 sm:$0xff]  }
 0xd44   :  { %2909 = vmatprep.subr.bf16.mxu0 %v6897_v45  ;;  %2950 = vmatprep.subr.bf16.mxu1 %v6903_v29  ;;  %8016 = vst [vmem:[#allocation69_spill] sm:$0xff] %v6909_v55  ;;  %8017 = vst [vmem:[#allocation72_spill] sm:$0xff] %v6915_v59  ;;  %v6921_v45 = vld [vmem:[%s7207_s4 + $0xa4] ss:$16 sps:$4 sm:$0xff]   ;;  %v6927_v29 = vld [vmem:[%s7207_s4 + $0xac] ss:$16 sps:$4 sm:$0xff]  }
 0xd45   :  { %8018 = vst [vmem:[#allocation6_spill] sm:$0xff] %v6921_v45  ;;  %8019 = vst [vmem:[#allocation7_spill] sm:$0xff] %v6927_v29 }
 0xd47   :  { %2910 = vmatpush1.bf16.msra.mxu0 %v6909_v55  ;;  %2951 = vmatpush1.bf16.msra.mxu1 %v6915_v59  ;;  %v6933_v55 = vld [vmem:[%s7207_s4 + $0xa0] ss:$16 sps:$4 sm:$0xff]   ;;  %v6939_v59 = vld [vmem:[%s7207_s4 + $0xa8] ss:$16 sps:$4 sm:$0xff]  }
 0xd48   :  { %2911 = vmatprep.subr.bf16.mxu0 %v6921_v45  ;;  %2952 = vmatprep.subr.bf16.mxu1 %v6927_v29  ;;  %8020 = vst [vmem:[#allocation8_spill] sm:$0xff] %v6933_v55  ;;  %8021 = vst [vmem:[#allocation9_spill] sm:$0xff] %v6939_v59  ;;  %v6945_v45 = vld [vmem:[%s7207_s4 + $0xc4] ss:$16 sps:$4 sm:$0xff]   ;;  %v6951_v29 = vld [vmem:[%s7207_s4 + $0xcc] ss:$16 sps:$4 sm:$0xff]  }
 0xd49   :  { %8022 = vst [vmem:[#allocation10_spill] sm:$0xff] %v6945_v45  ;;  %8023 = vst [vmem:[#allocation11_spill] sm:$0xff] %v6951_v29 }
 0xd4b   :  { %2912 = vmatpush1.bf16.msra.mxu0 %v6933_v55  ;;  %2953 = vmatpush1.bf16.msra.mxu1 %v6939_v59  ;;  %v6957_v55 = vld [vmem:[%s7207_s4 + $0xc0] ss:$16 sps:$4 sm:$0xff]   ;;  %v6963_v59 = vld [vmem:[%s7207_s4 + $0xc8] ss:$16 sps:$4 sm:$0xff]  }
 0xd4c   :  { %2913 = vmatprep.subr.bf16.mxu0 %v6945_v45  ;;  %2954 = vmatprep.subr.bf16.mxu1 %v6951_v29  ;;  %8024 = vst [vmem:[#allocation12_spill] sm:$0xff] %v6957_v55  ;;  %8025 = vst [vmem:[#allocation13_spill] sm:$0xff] %v6963_v59  ;;  %v6969_v45 = vld [vmem:[%s7207_s4 + $0xe4] ss:$16 sps:$4 sm:$0xff]   ;;  %v6975_v29 = vld [vmem:[%s7207_s4 + $0xec] ss:$16 sps:$4 sm:$0xff]  }
 0xd4d   :  { %8026 = vst [vmem:[#allocation76_spill] sm:$0xff] %v6969_v45  ;;  %8027 = vst [vmem:[#allocation78_spill] sm:$0xff] %v6975_v29 }
 0xd4f   :  { %2914 = vmatpush1.bf16.msra.mxu0 %v6957_v55  ;;  %2955 = vmatpush1.bf16.msra.mxu1 %v6963_v59  ;;  %v6981_v55 = vld [vmem:[%s7207_s4 + $0xe0] ss:$16 sps:$4 sm:$0xff]   ;;  %v6987_v59 = vld [vmem:[%s7207_s4 + $0xe8] ss:$16 sps:$4 sm:$0xff]  }
 0xd50   :  { %2915 = vmatprep.subr.bf16.mxu0 %v6969_v45  ;;  %2956 = vmatprep.subr.bf16.mxu1 %v6975_v29  ;;  %8028 = vst [vmem:[#allocation77_spill] sm:$0xff] %v6981_v55  ;;  %8029 = vst [vmem:[#allocation80_spill] sm:$0xff] %v6987_v59 }
 0xd53   :  { %2916 = vmatpush1.bf16.msra.mxu0 %v6981_v55  ;;  %2957 = vmatpush1.bf16.msra.mxu1 %v6987_v59  ;;  %v8032_v55 = vld [vmem:[#allocation85_spill] sm:$0xff] }
 0xd54   :  { %3012 = vmatprep.subr.bf16.mxu0 %v6265_v50  ;;  %3053 = vmatprep.subr.bf16.mxu1 %v6271_v5 }
 0xe09   :  { %v2824_v45 = vpop.f32.mrb[68].mxu0  ;;  %v2865_v29 = vpop.f32.mrb[68].mxu1 }
 0xe0a   :  { %v2872_v57 = vadd.f32 %v2824_v45, %v8030_v47  ;;  %v2874_v39 = vadd.f32 %v2865_v29, %v8031_v62  ;;  %v2826_v16 = vpop.f32.mrb[69].mxu0  ;;  %v2867_v63 = vpop.f32.mrb[69].mxu1 }
 0xe0b   :  { %v2873_v32 = vadd.f32 %v2826_v16, %v8032_v55  ;;  %v2875_v30 = vadd.f32 %v2867_v63, %v8033_v61  ;;  %v2828_v19 = vpop.f32.mrb[70].mxu0  ;;  %v2869_v25 = vpop.f32.mrb[70].mxu1 }
 0xe0c   :  { %v3658_v33 = vmul.f32 -1.442695, %v2872_v57  ;;  %v2829_v59 = vpop.f32.mrb[71].mxu0  ;;  %v2870_v9 = vpop.f32.mrb[71].mxu1 }
 0xe0d   :  { %v3659_v50 = vmul.f32 -1.442695, %v2873_v32  ;;  %v3660_v5 = vmul.f32 -1.442695, %v2875_v30 }
 0xe0e   :  { %4220 = vpow2.f32 %v3658_v33 }
 0xe0f   :  { %4222 = vpow2.f32 %v3659_v50 }
 0xe10   :  { %4224 = vpow2.f32 %v3660_v5 }
 0xe11   :  { %4226 = vtanh.f32 %v2874_v39 }
 0xe18   :  { %v4221_v40 = vpop.eup %4220 }
 0xe19   :  { %v4223_v11 = vpop.eup %4222  ;;  %v2879_v47 = vadd.f32 1.0, %v4221_v40 }
 0xe1a   :  { %v2885_v62 = vadd.f32 1.0, %v4223_v11  ;;  %v4225_v16 = vpop.eup %4224 }
 0xe1b   :  { %4228 = vrcp.f32 %v2879_v47  ;;  %v4227_v29 = vpop.eup %4226  ;;  %v2892_v61 = vadd.f32 1.0, %v4225_v16 }
 0xe1c   :  { %4230 = vrcp.f32 %v2885_v62 }
 0xe1d   :  { %4232 = vrcp.f32 %v2892_v61 }
 0xe25   :  { %v4229_v63 = vpop.eup %4228 }
 0xe26   :  { %v4231_v19 = vpop.eup %4230  ;;  %v2896_v25 = vmul.f32 %v4229_v63, %v4227_v29 }
 0xe27   :  { %v2895_v9 = vmul.f32 %v4231_v19, %v6718_v36  ;;  %v4233_v33 = vpop.eup %4232  ;;  %v8040_v36 = vld [vmem:[#allocation25_spill] sm:$0xff] }
 0xe29   :  { %v6997_v32 = vadd.f32 %v2896_v25, %v2895_v9 }
 0xe2b   :  { %4234 = vtanh.f32 %v6997_v32 }
 0xe35   :  { %v4235_v40 = vpop.eup %4234 }
 0xe36   :  { %v2899_v30 = vmul.f32 %v4235_v40, %v4233_v33 }
 0xe38   :  { %v7000_v39 = vpack.c.bf16 %v2899_v30, %v2899_v30 }
 0xe3a   :  { %2934 = vmatmul.mubr.bf16.vlgmr.msra.gmra.mrb[64].mxu0 %v7000_v39  ;;  %2975 = vmatmul.mubr.bf16.vlgmr.msra.gmra.mrb[64].mxu1 %v7000_v39 }
 0xe3b   :  { %3013 = vmatpush1.bf16.msra.mxu0 %v6289_v10  ;;  %3054 = vmatpush1.bf16.msra.mxu1 %v6295_v38  ;;  %v8034_v10 = vld [vmem:[#allocation19_spill] sm:$0xff]  ;;  %v8035_v38 = vld [vmem:[#allocation20_spill] sm:$0xff] }
 0xe3c   :  { %3014 = vmatprep.subr.bf16.mxu0 %v6301_v58  ;;  %3055 = vmatprep.subr.bf16.mxu1 %v6307_v49  ;;  %v8036_v58 = vld [vmem:[#allocation21_spill] sm:$0xff]  ;;  %v8037_v49 = vld [vmem:[#allocation22_spill] sm:$0xff] }
 0xe3d   :  { %3044 = vmatprep.mubr.bf16.mxu0 %v7600_v4  ;;  %3085 = vmatprep.mubr.bf16.mxu1 %v7600_v4 }
 0xe3f   :  { %3015 = vmatpush1.bf16.msra.mxu0 %v6315_v6  ;;  %3056 = vmatpush1.bf16.msra.mxu1 %v6321_v7  ;;  %v8038_v6 = vld [vmem:[#allocation23_spill] sm:$0xff]  ;;  %v8039_v7 = vld [vmem:[#allocation24_spill] sm:$0xff] }
 0xe40   :  { %3016 = vmatprep.subr.bf16.mxu0 %v7959_v2  ;;  %3057 = vmatprep.subr.bf16.mxu1 %v7960_v35  ;;  %v8041_v2 = vld [vmem:[#allocation26_spill] sm:$0xff]  ;;  %v8042_v35 = vld [vmem:[#allocation27_spill] sm:$0xff] }
 0xe43   :  { %3017 = vmatpush1.bf16.msra.mxu0 %v7961_v34  ;;  %3058 = vmatpush1.bf16.msra.mxu1 %v7962_v46  ;;  %v8043_v34 = vld [vmem:[#allocation28_spill] sm:$0xff]  ;;  %v8044_v46 = vld [vmem:[#allocation29_spill] sm:$0xff] }
 0xe44   :  { %3018 = vmatprep.subr.bf16.mxu0 %v7963_v54  ;;  %3059 = vmatprep.subr.bf16.mxu1 %v7964_v60  ;;  %v8045_v54 = vld [vmem:[#allocation30_spill] sm:$0xff]  ;;  %v8046_v60 = vld [vmem:[#allocation31_spill] sm:$0xff] }
 0xe47   :  { %3019 = vmatpush1.bf16.msra.mxu0 %v7965_v20  ;;  %3060 = vmatpush1.bf16.msra.mxu1 %v7966_v44 }
 0xe48   :  { %3020 = vmatprep.subr.bf16.mxu0 %v7967_v21  ;;  %3061 = vmatprep.subr.bf16.mxu1 %v7968_v22  ;;  %v8047_v21 = vld [vmem:[#allocation92_spill] sm:$0xff] }
 0xe4b   :  { %3021 = vmatpush1.bf16.msra.mxu0 %v7969_v23  ;;  %3062 = vmatpush1.bf16.msra.mxu1 %v7970_v24 }
 0xe4c   :  { %3022 = vmatprep.subr.bf16.mxu0 %v7971_v26  ;;  %3063 = vmatprep.subr.bf16.mxu1 %v8034_v10 }
 0xe4f   :  { %3023 = vmatpush1.bf16.msra.mxu0 %v8035_v38  ;;  %3064 = vmatpush1.bf16.msra.mxu1 %v8036_v58 }
 0xe50   :  { %3024 = vmatprep.subr.bf16.mxu0 %v8037_v49  ;;  %3065 = vmatprep.subr.bf16.mxu1 %v8038_v6 }
 0xe53   :  { %3025 = vmatpush1.bf16.msra.mxu0 %v8039_v7  ;;  %3066 = vmatpush1.bf16.msra.mxu1 %v8040_v36  ;;  %v8067_v36 = vld [vmem:[#allocation59_spill] sm:$0xff] }
 0xe54   :  { %3026 = vmatprep.subr.bf16.mxu0 %v8041_v2  ;;  %3067 = vmatprep.subr.bf16.mxu1 %v8042_v35  ;;  %v8068_v2 = vld [vmem:[#allocation60_spill] sm:$0xff]  ;;  %v8069_v35 = vld [vmem:[#allocation61_spill] sm:$0xff] }
 0xe57   :  { %3027 = vmatpush1.bf16.msra.mxu0 %v8043_v34  ;;  %3068 = vmatpush1.bf16.msra.mxu1 %v8044_v46  ;;  %v8071_v34 = vld [vmem:[#allocation63_spill] sm:$0xff]  ;;  %v8072_v46 = vld [vmem:[#allocation64_spill] sm:$0xff] }
 0xe58   :  { %3094 = vmatprep.subr.bf16.mxu0 %v8045_v54  ;;  %3135 = vmatprep.subr.bf16.mxu1 %v8046_v60  ;;  %v8073_v54 = vld [vmem:[#allocation66_spill] sm:$0xff]  ;;  %v8074_v60 = vld [vmem:[#allocation65_spill] sm:$0xff] }
 0xf0d   :  { %v2935_v20 = vpop.f32.mrb[64].mxu0  ;;  %v2976_v44 = vpop.f32.mrb[64].mxu1 }
 0xf0e   :  { %v3797_v22 = vadd.f32 %v2935_v20, %v8047_v21  ;;  %v2937_v23 = vpop.f32.mrb[65].mxu0  ;;  %v2978_v24 = vpop.f32.mrb[65].mxu1  ;;  %v3799_v62 = vadd.f32 %v2976_v44, %v5336_v31  ;;  %v8075_v20 = vld [vmem:[#allocation67_spill] sm:$0xff]  ;;  %v8077_v44 = vld [vmem:[#allocation70_spill] sm:$0xff] }
 0xf0f   :  { %v3798_v26 = vadd.f32 %v2937_v23, %v5325_v12  ;;  %v2939_v11 = vpop.f32.mrb[66].mxu0  ;;  %v2980_v57 = vpop.f32.mrb[66].mxu1  ;;  %v3800_v5 = vadd.f32 %v2978_v24, %v5331_v28  ;;  %v8079_v23 = vld [vmem:[#allocation72_spill] sm:$0xff]  ;;  %v8080_v24 = vld [vmem:[#allocation6_spill] sm:$0xff] }
 0xf10   :  { %v3661_v59 = vmul.f32 -1.442695, %v3797_v22  ;;  %v2940_v45 = vpop.f32.mrb[67].mxu0  ;;  %v2981_v55 = vpop.f32.mrb[67].mxu1  ;;  %v8078_v22 = vld [vmem:[#allocation69_spill] sm:$0xff]  ;;  %v8082_v11 = vld [vmem:[#allocation8_spill] sm:$0xff] }
 0xf11   :  { %v3662_v50 = vmul.f32 -1.442695, %v3798_v26  ;;  %v3663_v47 = vmul.f32 -1.442695, %v3800_v5  ;;  %v8081_v26 = vld [vmem:[#allocation7_spill] sm:$0xff]  ;;  %v8083_v57 = vld [vmem:[#allocation9_spill] sm:$0xff] }
 0xf12   :  { %4236 = vpow2.f32 %v3661_v59  ;;  %v8084_v59 = vld [vmem:[#allocation10_spill] sm:$0xff]  ;;  %v8085_v45 = vld [vmem:[#allocation11_spill] sm:$0xff]  ;;  %v8086_v55 = vld [vmem:[#allocation12_spill] sm:$0xff] }
 0xf13   :  { %4238 = vpow2.f32 %v3662_v50  ;;  %v8087_v50 = vld [vmem:[#allocation13_spill] sm:$0xff]  ;;  %v8088_v5 = vld [vmem:[#allocation76_spill] sm:$0xff] }
 0xf14   :  { %4240 = vpow2.f32 %v3663_v47  ;;  %v8089_v47 = vld [vmem:[#allocation78_spill] sm:$0xff] }
 0xf15   :  { %4242 = vtanh.f32 %v3799_v62  ;;  %v8090_v62 = vld [vmem:[#allocation77_spill] sm:$0xff] }
 0xf1c   :  { %v4237_v16 = vpop.eup %4236 }
 0xf1d   :  { %v4239_v29 = vpop.eup %4238  ;;  %v2990_v63 = vadd.f32 1.0, %v4237_v16  ;;  %v8091_v16 = vld [vmem:[#allocation80_spill] sm:$0xff] }
 0xf1e   :  { %v2996_v19 = vadd.f32 1.0, %v4239_v29  ;;  %v4241_v25 = vpop.eup %4240  ;;  %v8092_v29 = vmov 0.0|0.0  }
 0xf1f   :  { %4244 = vrcp.f32 %v2990_v63  ;;  %v4243_v61 = vpop.eup %4242  ;;  %v3003_v30 = vadd.f32 1.0, %v4241_v25  ;;  %v8093_v25 = vld [vmem:[#allocation87_spill] sm:$0xff] }
 0xf20   :  { %4246 = vrcp.f32 %v2996_v19 }
 0xf21   :  { %4248 = vrcp.f32 %v3003_v30 }
 0xf29   :  { %v4245_v9 = vpop.eup %4244 }
 0xf2a   :  { %v4247_v33 = vpop.eup %4246  ;;  %v3007_v40 = vmul.f32 %v4245_v9, %v4243_v61  ;;  %v8094_v9 = vld [vmem:[#allocation90_spill] sm:$0xff] }
 0xf2b   :  { %v3006_v10 = vmul.f32 %v4247_v33, %v6764_v17  ;;  %v4249_v58 = vpop.eup %4248  ;;  %v8062_v17 = vld [vmem:[#allocation54_spill] sm:$0xff] }
 0xf2d   :  { %v7043_v38 = vadd.f32 %v3007_v40, %v3006_v10  ;;  %v8095_v10 = vld [vmem:[#allocation89_spill] sm:$0xff] }
 0xf2f   :  { %4250 = vtanh.f32 %v7043_v38 }
 0xf39   :  { %v4251_v49 = vpop.eup %4250 }
 0xf3a   :  { %v3010_v6 = vmul.f32 %v4251_v49, %v4249_v58  ;;  %v8096_v49 = vld [vmem:[#allocation91_spill] sm:$0xff] }
 0xf3c   :  { %v3011_v7 = vpack.c.bf16 %v3010_v6, %v3010_v6 }
 0xf3e   :  { %3045 = vmatmul.mubr.bf16.vlgmr.msra.gmra.mrb[72].mxu0 %v3011_v7  ;;  %3086 = vmatmul.mubr.bf16.vlgmr.msra.gmra.mrb[72].mxu1 %v3011_v7 }
 0xf3f   :  { %3095 = vmatpush1.bf16.msra.mxu0 %v6491_v27  ;;  %3136 = vmatpush1.bf16.msra.mxu1 %v6497_v52  ;;  %v8048_v27 = vld [vmem:[#allocation40_spill] sm:$0xff]  ;;  %v8049_v52 = vld [vmem:[#allocation41_spill] sm:$0xff] }
 0xf40   :  { %3096 = vmatprep.subr.bf16.mxu0 %v6503_v1  ;;  %3137 = vmatprep.subr.bf16.mxu1 %v6509_v56  ;;  %v8050_v1 = vld [vmem:[#allocation42_spill] sm:$0xff]  ;;  %v8051_v56 = vld [vmem:[#allocation43_spill] sm:$0xff] }
 0xf41   :  { %3126 = vmatprep.mubr.bf16.mxu0 %v7600_v4  ;;  %3167 = vmatprep.mubr.bf16.mxu1 %v7600_v4 }
 0xf43   :  { %3097 = vmatpush1.bf16.msra.mxu0 %v6517_v3  ;;  %3138 = vmatpush1.bf16.msra.mxu1 %v6523_v48  ;;  %v8052_v3 = vld [vmem:[#allocation44_spill] sm:$0xff]  ;;  %v8053_v48 = vld [vmem:[#allocation45_spill] sm:$0xff] }
 0xf44   :  { %3098 = vmatprep.subr.bf16.mxu0 %v6529_v53  ;;  %3139 = vmatprep.subr.bf16.mxu1 %v6535_v15  ;;  %v8054_v53 = vld [vmem:[#allocation46_spill] sm:$0xff]  ;;  %v8055_v15 = vld [vmem:[#allocation47_spill] sm:$0xff] }
 0xf47   :  { %3099 = vmatpush1.bf16.msra.mxu0 %v6541_v42  ;;  %3140 = vmatpush1.bf16.msra.mxu1 %v6547_v43  ;;  %v8056_v42 = vld [vmem:[#allocation48_spill] sm:$0xff]  ;;  %v8057_v43 = vld [vmem:[#allocation49_spill] sm:$0xff] }
 0xf48   :  { %3100 = vmatprep.subr.bf16.mxu0 %v6553_v14  ;;  %3141 = vmatprep.subr.bf16.mxu1 %v6559_v41  ;;  %v8058_v14 = vld [vmem:[#allocation50_spill] sm:$0xff]  ;;  %v8059_v41 = vld [vmem:[#allocation51_spill] sm:$0xff] }
 0xf4b   :  { %3101 = vmatpush1.bf16.msra.mxu0 %v6565_v0  ;;  %3142 = vmatpush1.bf16.msra.mxu1 %v6571_v13  ;;  %v8060_v0 = vld [vmem:[#allocation52_spill] sm:$0xff]  ;;  %v8061_v13 = vld [vmem:[#allocation53_spill] sm:$0xff] }
 0xf4c   :  { %3102 = vmatprep.subr.bf16.mxu0 %v7986_v18  ;;  %3143 = vmatprep.subr.bf16.mxu1 %v7987_v51  ;;  %v8063_v18 = vld [vmem:[#allocation55_spill] sm:$0xff]  ;;  %v8064_v51 = vld [vmem:[#allocation56_spill] sm:$0xff] }
 0xf4f   :  { %3103 = vmatpush1.bf16.msra.mxu0 %v7988_v8  ;;  %3144 = vmatpush1.bf16.msra.mxu1 %v7989_v37  ;;  %v8065_v8 = vld [vmem:[#allocation57_spill] sm:$0xff]  ;;  %v8066_v37 = vld [vmem:[#allocation58_spill] sm:$0xff] }
 0xf50   :  { %3104 = vmatprep.subr.bf16.mxu0 %v8048_v27  ;;  %3145 = vmatprep.subr.bf16.mxu1 %v8049_v52 }
 0xf53   :  { %3105 = vmatpush1.bf16.msra.mxu0 %v8050_v1  ;;  %3146 = vmatpush1.bf16.msra.mxu1 %v8051_v56 }
 0xf54   :  { %3106 = vmatprep.subr.bf16.mxu0 %v8052_v3  ;;  %3147 = vmatprep.subr.bf16.mxu1 %v8053_v48 }
 0xf57   :  { %3107 = vmatpush1.bf16.msra.mxu0 %v8054_v53  ;;  %3148 = vmatpush1.bf16.msra.mxu1 %v8055_v15 }
 0xf58   :  { %3108 = vmatprep.subr.bf16.mxu0 %v8056_v42  ;;  %3149 = vmatprep.subr.bf16.mxu1 %v8057_v43 }
 0xf5b   :  { %3109 = vmatpush1.bf16.msra.mxu0 %v8058_v14  ;;  %3150 = vmatpush1.bf16.msra.mxu1 %v8059_v41 }
 0xf5c   :  { %3205 = vmatprep.subr.bf16.mxu0 %v8060_v0  ;;  %3246 = vmatprep.subr.bf16.mxu1 %v8061_v13 }
 0xf5e   :  { %3127 = vmatmul.mubr.bf16.vlgmr.msra.gmra.mrb[76].mxu0 %v7000_v39  ;;  %3168 = vmatmul.mubr.bf16.vlgmr.msra.gmra.mrb[76].mxu1 %v7000_v39  ;;  %v8070_v39 = vld [vmem:[#allocation62_spill] sm:$0xff] }
 0xf5f   :  { %3206 = vmatpush1.bf16.msra.mxu0 %v8062_v17  ;;  %3247 = vmatpush1.bf16.msra.mxu1 %v8063_v18 }
 0xf60   :  { %3207 = vmatprep.subr.bf16.mxu0 %v8064_v51  ;;  %3248 = vmatprep.subr.bf16.mxu1 %v8065_v8 }
 0xf61   :  { %3237 = vmatprep.mubr.bf16.mxu0 %v7600_v4  ;;  %3278 = vmatprep.mubr.bf16.mxu1 %v7600_v4  ;;  %v8076_v4 = vld [vmem:[#allocation68_spill] sm:$0xff] }
 0xf63   :  { %3208 = vmatpush1.bf16.msra.mxu0 %v8066_v37  ;;  %3249 = vmatpush1.bf16.msra.mxu1 %v8067_v36 }
 0xf64   :  { %3209 = vmatprep.subr.bf16.mxu0 %v8068_v2  ;;  %3250 = vmatprep.subr.bf16.mxu1 %v8069_v35 }
 0xf67   :  { %3210 = vmatpush1.bf16.msra.mxu0 %v8070_v39  ;;  %3251 = vmatpush1.bf16.msra.mxu1 %v8071_v34  ;;  %v3322_v39 = vld [vmem:[%s7210_s7] sm:$0xff]  ;;  %v3323_v34 = vld [vmem:[%s7210_s7 + $0x8] sm:$0xff] }
 0xf68   :  { %3211 = vmatprep.subr.bf16.mxu0 %v8072_v46  ;;  %3252 = vmatprep.subr.bf16.mxu1 %v8073_v54  ;;  %v3743_v46 = vpack.c.bf16 %v3323_v34, %v3322_v39  ;;  %v3325_v54 = vld [vmem:[%s7210_s7 + $0x18] sm:$0xff] }
 0xf6b   :  { %3212 = vmatpush1.bf16.msra.mxu0 %v8074_v60  ;;  %3253 = vmatpush1.bf16.msra.mxu1 %v8075_v20  ;;  %v3326_v20 = vld [vmem:[%s7210_s7 + $0x20] sm:$0xff] }
 0xf6c   :  { %3213 = vmatprep.subr.bf16.mxu0 %v8076_v4  ;;  %3254 = vmatprep.subr.bf16.mxu1 %v8077_v44  ;;  %v3327_v4 = vld [vmem:[%s7210_s7 + $0x28] sm:$0xff] }
 0xf6d   :  { %v3749_v44 = vpack.c.bf16 %v3327_v4, %v3326_v20 }
 0xf6f   :  { %3214 = vmatpush1.bf16.msra.mxu0 %v8078_v22  ;;  %3255 = vmatpush1.bf16.msra.mxu1 %v8079_v23  ;;  %v3328_v22 = vld [vmem:[%s7210_s7 + $0x30] sm:$0xff]  ;;  %v3329_v23 = vld [vmem:[%s7210_s7 + $0x38] sm:$0xff] }
 0xf70   :  { %3215 = vmatprep.subr.bf16.mxu0 %v8080_v24  ;;  %3256 = vmatprep.subr.bf16.mxu1 %v8081_v26  ;;  %v3752_v24 = vpack.c.bf16 %v3329_v23, %v3328_v22  ;;  %v3330_v26 = vld [vmem:[%s7210_s7 + $0x40] sm:$0xff] }
 0xf73   :  { %3216 = vmatpush1.bf16.msra.mxu0 %v8082_v11  ;;  %3257 = vmatpush1.bf16.msra.mxu1 %v8083_v57  ;;  %v3331_v11 = vld [vmem:[%s7210_s7 + $0x48] sm:$0xff] }
 0xf74   :  { %3217 = vmatprep.subr.bf16.mxu0 %v8084_v59  ;;  %3258 = vmatprep.subr.bf16.mxu1 %v8085_v45  ;;  %v3755_v57 = vpack.c.bf16 %v3331_v11, %v3330_v26  ;;  %v3332_v59 = vld [vmem:[%s7210_s7 + $0x50] sm:$0xff]  ;;  %v3333_v45 = vld [vmem:[%s7210_s7 + $0x58] sm:$0xff] }
 0xf77   :  { %3218 = vmatpush1.bf16.msra.mxu0 %v8086_v55  ;;  %3259 = vmatpush1.bf16.msra.mxu1 %v8087_v50  ;;  %v3334_v55 = vld [vmem:[%s7210_s7 + $0x60] sm:$0xff]  ;;  %v3758_v50 = vpack.c.bf16 %v3333_v45, %v3332_v59 }
 0xf78   :  { %3219 = vmatprep.subr.bf16.mxu0 %v8088_v5  ;;  %3260 = vmatprep.subr.bf16.mxu1 %v8089_v47  ;;  %v3335_v5 = vld [vmem:[%s7210_s7 + $0x68] sm:$0xff]  ;;  %v4479_v47 = vmov 0.0  }
 0xf7b   :  { %3220 = vmatpush1.bf16.msra.mxu0 %v8090_v62  ;;  %3261 = vmatpush1.bf16.msra.mxu1 %v8091_v16  ;;  %v3761_v62 = vpack.c.bf16 %v3335_v5, %v3334_v55  ;;  %v3336_v16 = vld [vmem:[%s7210_s7 + $0x70] sm:$0xff] }
 0xf7c   :  { %3742 = vmatprep.subr.bf16.mxu0 %v8092_v29  ;;  %3766 = vmatprep.subr.bf16.mxu1 %v8092_v29 }
0x1031   :  { %v3128_v63 = vpop.f32.mrb[76].mxu0  ;;  %v3169_v19 = vpop.f32.mrb[76].mxu1 }
0x1032   :  { %v3176_v61 = vadd.f32 %v3128_v63, %v8093_v25  ;;  %v3178_v33 = vadd.f32 %v3169_v19, %v8094_v9  ;;  %v3130_v40 = vpop.f32.mrb[77].mxu0  ;;  %v3171_v30 = vpop.f32.mrb[77].mxu1  ;;  %v3337_v63 = vld [vmem:[%s7210_s7 + $0x78] sm:$0xff]  ;;  %v3415_v25 = vld [vmem:[%s7211_s9] sm:$0xff]  ;;  %v3417_v9 = vld [vmem:[%s7211_s9 + $0x10] sm:$0xff] }
0x1033   :  { %v3177_v58 = vadd.f32 %v3130_v40, %v8095_v10  ;;  %v3179_v6 = vadd.f32 %v3171_v30, %v8096_v49  ;;  %v3132_v7 = vpop.f32.mrb[78].mxu0  ;;  %v3173_v27 = vpop.f32.mrb[78].mxu1  ;;  %v3764_v19 = vpack.c.bf16 %v3337_v63, %v3336_v16  ;;  %v3418_v40 = vld [vmem:[%s7211_s9 + $0x18] sm:$0x1] }
0x1034   :  { %v3664_v52 = vmul.f32 -1.442695, %v3176_v61  ;;  %v3133_v1 = vpop.f32.mrb[79].mxu0  ;;  %v3174_v56 = vpop.f32.mrb[79].mxu1  ;;  %v3416_v61 = vld [vmem:[%s7211_s9 + $0x8] sm:$0xff]  ;;  %v3770_v30 = vpack.c.bf16 %v3418_v40, %v3417_v9 }
0x1035   :  { %v3665_v3 = vmul.f32 -1.442695, %v3177_v58  ;;  %v3666_v48 = vmul.f32 -1.442695, %v3179_v6 }
0x1036   :  { %4252 = vpow2.f32 %v3664_v52 }
0x1037   :  { %4254 = vpow2.f32 %v3665_v3 }
0x1038   :  { %4256 = vpow2.f32 %v3666_v48 }
0x1039   :  { %4258 = vtanh.f32 %v3178_v33  ;;  %v3767_v33 = vpack.c.bf16 %v3416_v61, %v3415_v25 }
0x1040   :  { %v4253_v53 = vpop.eup %4252 }
0x1041   :  { %v4255_v15 = vpop.eup %4254  ;;  %v3183_v42 = vadd.f32 1.0, %v4253_v53 }
0x1042   :  { %v3189_v43 = vadd.f32 1.0, %v4255_v15  ;;  %v4257_v14 = vpop.eup %4256 }
0x1043   :  { %4260 = vrcp.f32 %v3183_v42  ;;  %v4259_v41 = vpop.eup %4258  ;;  %v3196_v18 = vadd.f32 1.0, %v4257_v14 }
0x1044   :  { %4262 = vrcp.f32 %v3189_v43 }
0x1045   :  { %4264 = vrcp.f32 %v3196_v18 }
0x104d   :  { %v4261_v0 = vpop.eup %4260 }
0x104e   :  { %v4263_v13 = vpop.eup %4262  ;;  %v3200_v17 = vmul.f32 %v4261_v0, %v4259_v41 }
0x104f   :  { %v3199_v51 = vmul.f32 %v4263_v13, %v6997_v32  ;;  %v4265_v37 = vpop.eup %4264  ;;  %v3324_v32 = vld [vmem:[%s7210_s7 + $0x10] sm:$0xff] }
0x1050   :  { %v3746_v60 = vpack.c.bf16 %v3325_v54, %v3324_v32 }
0x1051   :  { %v3201_v8 = vadd.f32 %v3200_v17, %v3199_v51 }
0x1053   :  { %4266 = vtanh.f32 %v3201_v8 }
0x105d   :  { %v4267_v36 = vpop.eup %4266 }
0x105e   :  { %v3203_v2 = vmul.f32 %v4267_v36, %v4265_v37 }
0x1060   :  { %v3204_v35 = vpack.c.bf16 %v3203_v2, %v3203_v2  ;;  %v3670_v2 = vld [vmem:[%s7212_s8] ss:$0 sm:$0xff] }
0x1062   :  { %3238 = vmatmul.mubr.bf16.vlgmr.msra.gmra.mrb[72].mxu0 %v3204_v35  ;;  %3279 = vmatmul.mubr.bf16.vlgmr.msra.gmra.mrb[72].mxu1 %v3204_v35 }
0x1063   :  { %3744 = vmatpush3.bf16.msra.mxu0 %v3743_v46  ;;  %3728 = vmatprep.mubr.msk.f32.mxu0 %vm4478_vm1, %v4479_v47 }
0x1064   :  { %3745 = vmatprep.subr.bf16.mxu0 %v8092_v29  ;;  %3739 = vmatprep.mubr.msk.f32.mxu1 %vm4478_vm1, %v4479_v47 }
0x1065   :  { %3768 = vmatpush3.bf16.msra.mxu1 %v3767_v33 }
0x1066   :  { %3769 = vmatprep.subr.bf16.mxu1 %v8092_v29 }
0x1067   :  { %3747 = vmatpush3.bf16.msra.mxu0 %v3746_v60 }
0x1068   :  { %3748 = vmatprep.subr.bf16.mxu0 %v8092_v29 }
0x1069   :  { %3772 = vmatpush3.bf16.msk.msra.mxu1 %vm3771_vm4, %v3770_v30 }
0x106b   :  { %3750 = vmatpush3.bf16.msra.mxu0 %v3749_v44 }
0x106c   :  { %3751 = vmatprep.subr.bf16.mxu0 %v8092_v29 }
0x106f   :  { %3753 = vmatpush3.bf16.msra.mxu0 %v3752_v24 }
0x1070   :  { %3754 = vmatprep.subr.bf16.mxu0 %v8092_v29 }
0x1073   :  { %3756 = vmatpush3.bf16.msra.mxu0 %v3755_v57 }
0x1074   :  { %3757 = vmatprep.subr.bf16.mxu0 %v8092_v29 }
0x1077   :  { %3759 = vmatpush3.bf16.msra.mxu0 %v3758_v50 }
0x1078   :  { %3760 = vmatprep.subr.bf16.mxu0 %v8092_v29 }
0x107b   :  { %3762 = vmatpush3.bf16.msra.mxu0 %v3761_v62 }
0x107c   :  { %3763 = vmatprep.subr.bf16.mxu0 %v8092_v29 }
0x107f   :  { %3765 = vmatpush3.bf16.msra.mxu0 %v3764_v19 }
0x1135   :  { %v3239_v10 = vpop.f32.mrb[72].mxu0  ;;  %v3280_v58 = vpop.f32.mrb[72].mxu1 }
0x1136   :  { %v3801_v49 = vadd.f32 %v3239_v10, %v8047_v21  ;;  %v3241_v6 = vpop.f32.mrb[73].mxu0  ;;  %v3282_v7 = vpop.f32.mrb[73].mxu1  ;;  %v3803_v42 = vadd.f32 %v3280_v58, %v5336_v31 }
0x1137   :  { %v3802_v27 = vadd.f32 %v3241_v6, %v5325_v12  ;;  %v3243_v52 = vpop.f32.mrb[74].mxu0  ;;  %v3284_v1 = vpop.f32.mrb[74].mxu1  ;;  %v3804_v29 = vadd.f32 %v3282_v7, %v5331_v28 }
0x1138   :  { %v3667_v56 = vmul.f32 -1.442695, %v3801_v49  ;;  %v3244_v3 = vpop.f32.mrb[75].mxu0  ;;  %v3285_v48 = vpop.f32.mrb[75].mxu1 }
0x1139   :  { %v3668_v53 = vmul.f32 -1.442695, %v3802_v27  ;;  %v3669_v15 = vmul.f32 -1.442695, %v3804_v29 }
0x113a   :  { %4268 = vpow2.f32 %v3667_v56 }
0x113b   :  { %4270 = vpow2.f32 %v3668_v53 }
0x113c   :  { %4272 = vpow2.f32 %v3669_v15 }
0x113d   :  { %4274 = vtanh.f32 %v3803_v42 }
0x1144   :  { %v4269_v43 = vpop.eup %4268 }
0x1145   :  { %v4271_v14 = vpop.eup %4270  ;;  %v3294_v21 = vadd.f32 1.0, %v4269_v43 }
0x1146   :  { %v3300_v41 = vadd.f32 1.0, %v4271_v14  ;;  %v4273_v12 = vpop.eup %4272 }
0x1147   :  { %4276 = vrcp.f32 %v3294_v21  ;;  %v4275_v0 = vpop.eup %4274  ;;  %v3307_v51 = vadd.f32 1.0, %v4273_v12 }
0x1148   :  { %4278 = vrcp.f32 %v3300_v41 }
0x1149   :  { %4280 = vrcp.f32 %v3307_v51 }
0x1151   :  { %v4277_v13 = vpop.eup %4276 }
0x1152   :  { %v4279_v17 = vpop.eup %4278  ;;  %v3311_v18 = vmul.f32 %v4277_v13, %v4275_v0 }
0x1153   :  { %v3310_v8 = vmul.f32 %v4279_v17, %v7043_v38  ;;  %v4281_v31 = vpop.eup %4280  ;;  %v3671_v38 = vld [vmem:[%s7213_s10] ss:$0 sm:$0xff] }
0x1155   :  { %v3312_v28 = vadd.f32 %v3311_v18, %v3310_v8 }
0x1157   :  { %4282 = vtanh.f32 %v3312_v28 }
0x1161   :  { %v4283_v37 = vpop.eup %4282 }
0x1162   :  { %v3314_v36 = vmul.f32 %v4283_v37, %v4281_v31 }
0x1164   :  { %3729 = vmatmul.mubr.f32.vlgmr.msra.gmra.mrb[80].mxu0 %v3314_v36 }
0x1237   :  { %v3411_v35 = vpop.f32.mrb[80].mxu0 }
0x1238   :  { %v3412_v39 = vadd.f32 %v3670_v2, %v3411_v35  ;;  %v3730_v34 = vpop.f32.mrb[81].mxu0 }
0x123a   :  { %3740 = vmatmul.mubr.msk.f32.vlgmr.msra.gmra.mrb[80].mxu1 %vm3426_vm5, %v3412_v39 }
0x130d   :  { %v3500_v46 = vpop.f32.mrb[80].mxu1 }
0x130e   :  { %v3501_v32 = vadd.f32 %v3671_v38, %v3500_v46  ;;  %v3741_v54 = vpop.f32.mrb[81].mxu1 }
0x1310   :  { %3505 = vst.msk [vmem:[%s7214_s11] sm:$0xff] %vm3504_vm6, %v3501_v32 }

</bundles_post_ra>
